<compile_context>
chip_gen: v6e
topology: v6e:2x2x1
jax: 0.10.0
libtpu: 0.0.40
codegen_flags: <defaults>
</compile_context>

<pallas_src>
import functools
import math

import jax
import jax.numpy as jnp
from jax import lax
from jax.experimental import pallas as pl
from jax.experimental.pallas import tpu as pltpu


# ----------------------------------------------------------------------------
# Fused kernel: one grid step == one batch element.
# ----------------------------------------------------------------------------
def _fused_attention_kernel(x_ref, m_ref, wqkv_ref, bqkv_ref, e_ref, wo_ref,
                            bo_ref, o_ref, *, num_head, head_dim, matmul_dtype):
    inner = num_head * head_dim
    mm = matmul_dtype

    x = x_ref[0]          # (S, D)
    m = m_ref[0]          # (1, S)   lane-major padding mask
    wqkv = wqkv_ref[...]  # (D, 3*inner)   pre-transposed fused Wq|Wk|Wv
    bqkv = bqkv_ref[...]  # (1, 3*inner)
    e = e_ref[...]        # (H, Lk, S)     Linformer projection
    wo = wo_ref[...]      # (inner, D)     pre-transposed output projection
    bo = bo_ref[...]      # (1, D)

    # Fused Q/K/V projection: single (S, D) @ (D, 3*inner) matmul, f32 accum.
    qkv = jnp.dot(x.astype(mm), wqkv.astype(mm),
                  preferred_element_type=jnp.float32) + bqkv          # (S, 3*inner)

    # Fold the padding mask into E once per batch (per-batch, not per-head):
    #   E_h @ (K_h * m[:, None]) == (E_h * m[None, :]) @ K_h
    em = (e * m).astype(mm)                                           # (H, Lk, S)

    inv_scale = 1.0 / math.sqrt(head_dim)

    head_outs = []
    for h in range(num_head):            # static, unrolled; slices are static
        q_h = qkv[:, h * head_dim:(h + 1) * head_dim]                 # (S, hd)
        k_h = qkv[:, inner + h * head_dim:inner + (h + 1) * head_dim]
        v_h = qkv[:, 2 * inner + h * head_dim:2 * inner + (h + 1) * head_dim]

        em_h = em[h]                                                  # (Lk, S)
        kp_h = jnp.dot(em_h, k_h.astype(mm),
                       preferred_element_type=jnp.float32)            # (Lk, hd)
        vp_h = jnp.dot(em_h, v_h.astype(mm),
                       preferred_element_type=jnp.float32)            # (Lk, hd)

        # Q @ K'^T expressed as an NT contraction (no transpose of kp_h).
        scores = lax.dot_general(
            q_h.astype(mm), kp_h.astype(mm),
            dimension_numbers=(((1,), (1,)), ((), ())),
            preferred_element_type=jnp.float32) * inv_scale           # (S, Lk)

        smax = jnp.max(scores, axis=-1, keepdims=True)
        p = jnp.exp(scores - smax)
        denom = jnp.sum(p, axis=-1, keepdims=True)
        attn = p * pl.reciprocal(denom, approx=True)                  # EUP slot

        head_outs.append(
            jnp.dot(attn.astype(mm), vp_h.astype(mm),
                    preferred_element_type=jnp.float32))              # (S, hd)

    attn_out = jnp.concatenate(head_outs, axis=-1)                    # (S, inner)

    # Output projection, fused into the same kernel.
    out = jnp.dot(attn_out.astype(mm), wo.astype(mm),
                  preferred_element_type=jnp.float32) + bo            # (S, D)
    o_ref[0] = out.astype(o_ref.dtype)


# ----------------------------------------------------------------------------
# Wrapper
# ----------------------------------------------------------------------------
def attention_forward(params, X, mask, *, matmul_dtype=jnp.float32):
    num_head = params["num_head"]
    head_dim = params["head_dim"]
    inner = num_head * head_dim
    B, S, D = X.shape
    Lk = params["E"].shape[1]

    # Mask enters the kernel lane-major: (B, 1, S).
    mask_l = mask.reshape(B, 1, S).astype(jnp.float32)

    kernel = functools.partial(
        _fused_attention_kernel,
        num_head=num_head, head_dim=head_dim, matmul_dtype=matmul_dtype)

    return pl.pallas_call(
        kernel,
        out_shape=jax.ShapeDtypeStruct((B, S, D), jnp.float32),
        grid=(B,),
        in_specs=[
            pl.BlockSpec((1, S, D), lambda b: (b, 0, 0)),          # X
            pl.BlockSpec((1, 1, S), lambda b: (b, 0, 0)),          # mask
            pl.BlockSpec((D, 3 * inner), lambda b: (0, 0)),        # fused Wqkv^T
            pl.BlockSpec((1, 3 * inner), lambda b: (0, 0)),        # fused bqkv
            pl.BlockSpec((num_head, Lk, S), lambda b: (0, 0, 0)),  # E
            pl.BlockSpec((inner, D), lambda b: (0, 0)),            # ff_w^T
            pl.BlockSpec((1, D), lambda b: (0, 0)),                # ff_b
        ],
        out_specs=pl.BlockSpec((1, S, D), lambda b: (b, 0, 0)),
        compiler_params=pltpu.CompilerParams(
            dimension_semantics=("parallel",)),
    )(X.astype(jnp.float32), mask_l,
      params["Wqkv_w_t"], params["Wqkv_b"], params["E"],
      params["ff_w_t"], params["ff_b"])


# ----------------------------------------------------------------------------
# Parameter initialization (weights stored pre-fused / pre-transposed).
# ----------------------------------------------------------------------------
def init_params(key, dim, num_head, head_dim, seq_len, linformer_k):
    ks = jax.random.split(key, 9)
    inner = num_head * head_dim
    scale = 0.02

    wq = jax.random.normal(ks[0], (inner, dim), dtype=jnp.float32) * scale
    bq = jax.random.normal(ks[1], (inner,), dtype=jnp.float32) * scale
    wk = jax.random.normal(ks[2], (inner, dim), dtype=jnp.float32) * scale
    bk = jax.random.normal(ks[3], (inner,), dtype=jnp.float32) * scale
    wv = jax.random.normal(ks[4], (inner, dim), dtype=jnp.float32) * scale
    bv = jax.random.normal(ks[5], (inner,), dtype=jnp.float32) * scale
    ff_w = jax.random.normal(ks[7], (dim, inner), dtype=jnp.float32) * scale
    ff_b = jax.random.normal(ks[8], (dim,), dtype=jnp.float32) * scale

    params = {
        "num_head": num_head,
        "head_dim": head_dim,
        # One-time prep (done at parameter-load time, not per step):
        # fuse Wq|Wk|Wv and transpose to (Din, Dout) so the kernel never
        # transposes a weight tile.
        "Wqkv_w_t": jnp.concatenate([wq, wk, wv], axis=0).T,   # (dim, 3*inner)
        "Wqkv_b": jnp.concatenate([bq, bk, bv])[None, :],      # (1, 3*inner)
        # projection_matrix = randn(H, k, S) / sqrt(k)
        "E": (jax.random.normal(ks[6], (num_head, linformer_k, seq_len),
                                dtype=jnp.float32)
              / math.sqrt(linformer_k)),
        "ff_w_t": ff_w.T,                                      # (inner, dim)
        "ff_b": ff_b[None, :],                                 # (1, dim)
    }
    return params


if __name__ == "__main__":
    # Small config consistent with the module; dim = num_head*head_dim = 128
    # keeps every kernel store lane-dense (full 128-lane vst).
    B, S, dim = 2, 128, 128
    num_head, head_dim, linformer_k = 4, 32, 32

    key = jax.random.PRNGKey(0)
    k_x, k_p = jax.random.split(key)

    X = jax.random.normal(k_x, (B, S, dim), dtype=jnp.float32)
    # Padding mask: batch 0 fully valid, batch 1 valid for first 96 positions.
    lengths = jnp.array([S, 96])
    mask = (jnp.arange(S)[None, :] < lengths[:, None]).astype(jnp.float32)  # (B, S)

    params = init_params(k_p, dim, num_head, head_dim, S, linformer_k)

    # Default matmul_dtype=float32 matches the torch .float() attention path;
    # pass matmul_dtype=jnp.bfloat16 on v6e/v7x for ~3x MXU throughput.
    out = attention_forward(params, X, mask)
    out = jax.block_until_ready(out)
    assert out.shape == (B, S, dim), out.shape
    assert bool(jnp.all(jnp.isfinite(out)))
    print("KERNEL_OK")
</pallas_src>

<mosaic_0001>
module attributes {stable_mosaic.version = 11 : i64} {
  func.func @_fused_attention_kernel(%arg0: i32, %arg1: memref<1x128x128xf32, #tpu.memory_space<vmem>>, %arg2: memref<1x1x128xf32, #tpu.memory_space<vmem>>, %arg3: memref<128x384xf32, #tpu.memory_space<vmem>>, %arg4: memref<1x384xf32, #tpu.memory_space<vmem>>, %arg5: memref<4x32x128xf32, #tpu.memory_space<vmem>>, %arg6: memref<128x128xf32, #tpu.memory_space<vmem>>, %arg7: memref<1x128xf32, #tpu.memory_space<vmem>>, %arg8: memref<1x128x128xf32, #tpu.memory_space<vmem>>) attributes {dimension_semantics = [#tpu.dimension_semantics<parallel>], iteration_bounds = array<i64: 2>, scalar_prefetch = 0 : i64, scratch_operands = 0 : i64, tpu.core_type = #tpu.core_type<tc>, window_params = [{transform_indices = @transform_0, window_bounds = array<i64: 1, 128, 128>}, {transform_indices = @transform_1, window_bounds = array<i64: 1, 1, 128>}, {pipeline_mode = #tpu.pipeline_mode<synchronous>, transform_indices = @transform_2, window_bounds = array<i64: 128, 384>}, {pipeline_mode = #tpu.pipeline_mode<synchronous>, transform_indices = @transform_3, window_bounds = array<i64: 1, 384>}, {pipeline_mode = #tpu.pipeline_mode<synchronous>, transform_indices = @transform_4, window_bounds = array<i64: 4, 32, 128>}, {pipeline_mode = #tpu.pipeline_mode<synchronous>, transform_indices = @transform_5, window_bounds = array<i64: 128, 128>}, {pipeline_mode = #tpu.pipeline_mode<synchronous>, transform_indices = @transform_6, window_bounds = array<i64: 1, 128>}, {transform_indices = @transform_7, window_bounds = array<i64: 1, 128, 128>}]} {
    %c0 = arith.constant 0 : index
    %c0_0 = arith.constant 0 : index
    %c0_1 = arith.constant 0 : index
    %0 = vector.load %arg1[%c0, %c0_0, %c0_1] : memref<1x128x128xf32, #tpu.memory_space<vmem>>, vector<1x128x128xf32>
    %1 = vector.shape_cast %0 : vector<1x128x128xf32> to vector<128x128xf32>
    %c0_2 = arith.constant 0 : index
    %c0_3 = arith.constant 0 : index
    %c0_4 = arith.constant 0 : index
    %2 = vector.load %arg2[%c0_2, %c0_3, %c0_4] : memref<1x1x128xf32, #tpu.memory_space<vmem>>, vector<1x1x128xf32>
    %3 = vector.shape_cast %2 : vector<1x1x128xf32> to vector<1x128xf32>
    %c0_5 = arith.constant 0 : index
    %c0_6 = arith.constant 0 : index
    %4 = vector.load %arg3[%c0_5, %c0_6] : memref<128x384xf32, #tpu.memory_space<vmem>>, vector<128x384xf32>
    %c0_7 = arith.constant 0 : index
    %c0_8 = arith.constant 0 : index
    %5 = vector.load %arg4[%c0_7, %c0_8] : memref<1x384xf32, #tpu.memory_space<vmem>>, vector<1x384xf32>
    %c0_9 = arith.constant 0 : index
    %c0_10 = arith.constant 0 : index
    %c0_11 = arith.constant 0 : index
    %6 = vector.load %arg5[%c0_9, %c0_10, %c0_11] : memref<4x32x128xf32, #tpu.memory_space<vmem>>, vector<4x32x128xf32>
    %c0_12 = arith.constant 0 : index
    %c0_13 = arith.constant 0 : index
    %7 = vector.load %arg6[%c0_12, %c0_13] : memref<128x128xf32, #tpu.memory_space<vmem>>, vector<128x128xf32>
    %c0_14 = arith.constant 0 : index
    %c0_15 = arith.constant 0 : index
    %8 = vector.load %arg7[%c0_14, %c0_15] : memref<1x128xf32, #tpu.memory_space<vmem>>, vector<1x128xf32>
    %cst = arith.constant dense<0.000000e+00> : vector<128x384xf32>
    %9 = tpu.matmul %1, %4, %cst {dimension_numbers = #tpu.dot_dimension_numbers<[1], [0], [0], [1], [0, 0, 1, 1], [], []>} : vector<128x128xf32>, vector<128x384xf32>, vector<128x384xf32> -> vector<128x384xf32>
    %10 = vector.broadcast %5 : vector<1x384xf32> to vector<128x384xf32>
    %11 = arith.addf %9, %10 : vector<128x384xf32>
    %12 = vector.shape_cast %3 : vector<1x128xf32> to vector<1x1x128xf32>
    %13 = vector.broadcast %12 : vector<1x1x128xf32> to vector<4x32x128xf32>
    %14 = arith.mulf %6, %13 : vector<4x32x128xf32>
    %15 = vector.extract_strided_slice %11 {offsets = [0, 0], sizes = [128, 32], strides = [1, 1]} : vector<128x384xf32> to vector<128x32xf32>
    %16 = vector.extract_strided_slice %11 {offsets = [0, 128], sizes = [128, 32], strides = [1, 1]} : vector<128x384xf32> to vector<128x32xf32>
    %17 = vector.extract_strided_slice %11 {offsets = [0, 256], sizes = [128, 32], strides = [1, 1]} : vector<128x384xf32> to vector<128x32xf32>
    %18 = vector.extract_strided_slice %14 {offsets = [0, 0, 0], sizes = [1, 32, 128], strides = [1, 1, 1]} : vector<4x32x128xf32> to vector<1x32x128xf32>
    %19 = vector.shape_cast %18 : vector<1x32x128xf32> to vector<32x128xf32>
    %cst_16 = arith.constant dense<0.000000e+00> : vector<32x32xf32>
    %20 = tpu.matmul %19, %16, %cst_16 {dimension_numbers = #tpu.dot_dimension_numbers<[1], [0], [0], [1], [0, 0, 1, 1], [], []>} : vector<32x128xf32>, vector<128x32xf32>, vector<32x32xf32> -> vector<32x32xf32>
    %cst_17 = arith.constant dense<0.000000e+00> : vector<32x32xf32>
    %21 = tpu.matmul %19, %17, %cst_17 {dimension_numbers = #tpu.dot_dimension_numbers<[1], [0], [0], [1], [0, 0, 1, 1], [], []>} : vector<32x128xf32>, vector<128x32xf32>, vector<32x32xf32> -> vector<32x32xf32>
    %cst_18 = arith.constant dense<0.000000e+00> : vector<128x32xf32>
    %22 = tpu.matmul %15, %20, %cst_18 {dimension_numbers = #tpu.dot_dimension_numbers<[1], [1], [0], [0], [0, 0, 1, 0], [], []>} : vector<128x32xf32>, vector<32x32xf32>, vector<128x32xf32> -> vector<128x32xf32>
    %cst_19 = arith.constant 0.176776692 : f32
    %23 = vector.broadcast %cst_19 : f32 to vector<128x32xf32>
    %24 = arith.mulf %22, %23 : vector<128x32xf32>
    %cst_20 = arith.constant dense<0xFF800000> : vector<128xf32>
    %25 = vector.multi_reduction <maximumf>, %24, %cst_20 [1] : vector<128x32xf32> to vector<128xf32>
    %26 = vector.shape_cast %25 : vector<128xf32> to vector<128x1xf32>
    %27 = vector.broadcast %26 : vector<128x1xf32> to vector<128x32xf32>
    %28 = arith.subf %24, %27 : vector<128x32xf32>
    %29 = math.exp %28 : vector<128x32xf32>
    %cst_21 = arith.constant dense<0.000000e+00> : vector<128xf32>
    %30 = vector.multi_reduction <add>, %29, %cst_21 [1] : vector<128x32xf32> to vector<128xf32>
    %31 = vector.shape_cast %30 : vector<128xf32> to vector<128x1xf32>
    %32 = tpu.reciprocal %31 {approx = true} : vector<128x1xf32> -> vector<128x1xf32>
    %33 = vector.broadcast %32 : vector<128x1xf32> to vector<128x32xf32>
    %34 = arith.mulf %29, %33 : vector<128x32xf32>
    %cst_22 = arith.constant dense<0.000000e+00> : vector<128x32xf32>
    %35 = tpu.matmul %34, %21, %cst_22 {dimension_numbers = #tpu.dot_dimension_numbers<[1], [0], [0], [1], [0, 0, 1, 1], [], []>} : vector<128x32xf32>, vector<32x32xf32>, vector<128x32xf32> -> vector<128x32xf32>
    %36 = vector.extract_strided_slice %11 {offsets = [0, 32], sizes = [128, 32], strides = [1, 1]} : vector<128x384xf32> to vector<128x32xf32>
    %37 = vector.extract_strided_slice %11 {offsets = [0, 160], sizes = [128, 32], strides = [1, 1]} : vector<128x384xf32> to vector<128x32xf32>
    %38 = vector.extract_strided_slice %11 {offsets = [0, 288], sizes = [128, 32], strides = [1, 1]} : vector<128x384xf32> to vector<128x32xf32>
    %39 = vector.extract_strided_slice %14 {offsets = [1, 0, 0], sizes = [1, 32, 128], strides = [1, 1, 1]} : vector<4x32x128xf32> to vector<1x32x128xf32>
    %40 = vector.shape_cast %39 : vector<1x32x128xf32> to vector<32x128xf32>
    %cst_23 = arith.constant dense<0.000000e+00> : vector<32x32xf32>
    %41 = tpu.matmul %40, %37, %cst_23 {dimension_numbers = #tpu.dot_dimension_numbers<[1], [0], [0], [1], [0, 0, 1, 1], [], []>} : vector<32x128xf32>, vector<128x32xf32>, vector<32x32xf32> -> vector<32x32xf32>
    %cst_24 = arith.constant dense<0.000000e+00> : vector<32x32xf32>
    %42 = tpu.matmul %40, %38, %cst_24 {dimension_numbers = #tpu.dot_dimension_numbers<[1], [0], [0], [1], [0, 0, 1, 1], [], []>} : vector<32x128xf32>, vector<128x32xf32>, vector<32x32xf32> -> vector<32x32xf32>
    %cst_25 = arith.constant dense<0.000000e+00> : vector<128x32xf32>
    %43 = tpu.matmul %36, %41, %cst_25 {dimension_numbers = #tpu.dot_dimension_numbers<[1], [1], [0], [0], [0, 0, 1, 0], [], []>} : vector<128x32xf32>, vector<32x32xf32>, vector<128x32xf32> -> vector<128x32xf32>
    %cst_26 = arith.constant 0.176776692 : f32
    %44 = vector.broadcast %cst_26 : f32 to vector<128x32xf32>
    %45 = arith.mulf %43, %44 : vector<128x32xf32>
    %cst_27 = arith.constant dense<0xFF800000> : vector<128xf32>
    %46 = vector.multi_reduction <maximumf>, %45, %cst_27 [1] : vector<128x32xf32> to vector<128xf32>
    %47 = vector.shape_cast %46 : vector<128xf32> to vector<128x1xf32>
    %48 = vector.broadcast %47 : vector<128x1xf32> to vector<128x32xf32>
    %49 = arith.subf %45, %48 : vector<128x32xf32>
    %50 = math.exp %49 : vector<128x32xf32>
    %cst_28 = arith.constant dense<0.000000e+00> : vector<128xf32>
    %51 = vector.multi_reduction <add>, %50, %cst_28 [1] : vector<128x32xf32> to vector<128xf32>
    %52 = vector.shape_cast %51 : vector<128xf32> to vector<128x1xf32>
    %53 = tpu.reciprocal %52 {approx = true} : vector<128x1xf32> -> vector<128x1xf32>
    %54 = vector.broadcast %53 : vector<128x1xf32> to vector<128x32xf32>
    %55 = arith.mulf %50, %54 : vector<128x32xf32>
    %cst_29 = arith.constant dense<0.000000e+00> : vector<128x32xf32>
    %56 = tpu.matmul %55, %42, %cst_29 {dimension_numbers = #tpu.dot_dimension_numbers<[1], [0], [0], [1], [0, 0, 1, 1], [], []>} : vector<128x32xf32>, vector<32x32xf32>, vector<128x32xf32> -> vector<128x32xf32>
    %57 = vector.extract_strided_slice %11 {offsets = [0, 64], sizes = [128, 32], strides = [1, 1]} : vector<128x384xf32> to vector<128x32xf32>
    %58 = vector.extract_strided_slice %11 {offsets = [0, 192], sizes = [128, 32], strides = [1, 1]} : vector<128x384xf32> to vector<128x32xf32>
    %59 = vector.extract_strided_slice %11 {offsets = [0, 320], sizes = [128, 32], strides = [1, 1]} : vector<128x384xf32> to vector<128x32xf32>
    %60 = vector.extract_strided_slice %14 {offsets = [2, 0, 0], sizes = [1, 32, 128], strides = [1, 1, 1]} : vector<4x32x128xf32> to vector<1x32x128xf32>
    %61 = vector.shape_cast %60 : vector<1x32x128xf32> to vector<32x128xf32>
    %cst_30 = arith.constant dense<0.000000e+00> : vector<32x32xf32>
    %62 = tpu.matmul %61, %58, %cst_30 {dimension_numbers = #tpu.dot_dimension_numbers<[1], [0], [0], [1], [0, 0, 1, 1], [], []>} : vector<32x128xf32>, vector<128x32xf32>, vector<32x32xf32> -> vector<32x32xf32>
    %cst_31 = arith.constant dense<0.000000e+00> : vector<32x32xf32>
    %63 = tpu.matmul %61, %59, %cst_31 {dimension_numbers = #tpu.dot_dimension_numbers<[1], [0], [0], [1], [0, 0, 1, 1], [], []>} : vector<32x128xf32>, vector<128x32xf32>, vector<32x32xf32> -> vector<32x32xf32>
    %cst_32 = arith.constant dense<0.000000e+00> : vector<128x32xf32>
    %64 = tpu.matmul %57, %62, %cst_32 {dimension_numbers = #tpu.dot_dimension_numbers<[1], [1], [0], [0], [0, 0, 1, 0], [], []>} : vector<128x32xf32>, vector<32x32xf32>, vector<128x32xf32> -> vector<128x32xf32>
    %cst_33 = arith.constant 0.176776692 : f32
    %65 = vector.broadcast %cst_33 : f32 to vector<128x32xf32>
    %66 = arith.mulf %64, %65 : vector<128x32xf32>
    %cst_34 = arith.constant dense<0xFF800000> : vector<128xf32>
    %67 = vector.multi_reduction <maximumf>, %66, %cst_34 [1] : vector<128x32xf32> to vector<128xf32>
    %68 = vector.shape_cast %67 : vector<128xf32> to vector<128x1xf32>
    %69 = vector.broadcast %68 : vector<128x1xf32> to vector<128x32xf32>
    %70 = arith.subf %66, %69 : vector<128x32xf32>
    %71 = math.exp %70 : vector<128x32xf32>
    %cst_35 = arith.constant dense<0.000000e+00> : vector<128xf32>
    %72 = vector.multi_reduction <add>, %71, %cst_35 [1] : vector<128x32xf32> to vector<128xf32>
    %73 = vector.shape_cast %72 : vector<128xf32> to vector<128x1xf32>
    %74 = tpu.reciprocal %73 {approx = true} : vector<128x1xf32> -> vector<128x1xf32>
    %75 = vector.broadcast %74 : vector<128x1xf32> to vector<128x32xf32>
    %76 = arith.mulf %71, %75 : vector<128x32xf32>
    %cst_36 = arith.constant dense<0.000000e+00> : vector<128x32xf32>
    %77 = tpu.matmul %76, %63, %cst_36 {dimension_numbers = #tpu.dot_dimension_numbers<[1], [0], [0], [1], [0, 0, 1, 1], [], []>} : vector<128x32xf32>, vector<32x32xf32>, vector<128x32xf32> -> vector<128x32xf32>
    %78 = vector.extract_strided_slice %11 {offsets = [0, 96], sizes = [128, 32], strides = [1, 1]} : vector<128x384xf32> to vector<128x32xf32>
    %79 = vector.extract_strided_slice %11 {offsets = [0, 224], sizes = [128, 32], strides = [1, 1]} : vector<128x384xf32> to vector<128x32xf32>
    %80 = vector.extract_strided_slice %11 {offsets = [0, 352], sizes = [128, 32], strides = [1, 1]} : vector<128x384xf32> to vector<128x32xf32>
    %81 = vector.extract_strided_slice %14 {offsets = [3, 0, 0], sizes = [1, 32, 128], strides = [1, 1, 1]} : vector<4x32x128xf32> to vector<1x32x128xf32>
    %82 = vector.shape_cast %81 : vector<1x32x128xf32> to vector<32x128xf32>
    %cst_37 = arith.constant dense<0.000000e+00> : vector<32x32xf32>
    %83 = tpu.matmul %82, %79, %cst_37 {dimension_numbers = #tpu.dot_dimension_numbers<[1], [0], [0], [1], [0, 0, 1, 1], [], []>} : vector<32x128xf32>, vector<128x32xf32>, vector<32x32xf32> -> vector<32x32xf32>
    %cst_38 = arith.constant dense<0.000000e+00> : vector<32x32xf32>
    %84 = tpu.matmul %82, %80, %cst_38 {dimension_numbers = #tpu.dot_dimension_numbers<[1], [0], [0], [1], [0, 0, 1, 1], [], []>} : vector<32x128xf32>, vector<128x32xf32>, vector<32x32xf32> -> vector<32x32xf32>
    %cst_39 = arith.constant dense<0.000000e+00> : vector<128x32xf32>
    %85 = tpu.matmul %78, %83, %cst_39 {dimension_numbers = #tpu.dot_dimension_numbers<[1], [1], [0], [0], [0, 0, 1, 0], [], []>} : vector<128x32xf32>, vector<32x32xf32>, vector<128x32xf32> -> vector<128x32xf32>
    %cst_40 = arith.constant 0.176776692 : f32
    %86 = vector.broadcast %cst_40 : f32 to vector<128x32xf32>
    %87 = arith.mulf %85, %86 : vector<128x32xf32>
    %cst_41 = arith.constant dense<0xFF800000> : vector<128xf32>
    %88 = vector.multi_reduction <maximumf>, %87, %cst_41 [1] : vector<128x32xf32> to vector<128xf32>
    %89 = vector.shape_cast %88 : vector<128xf32> to vector<128x1xf32>
    %90 = vector.broadcast %89 : vector<128x1xf32> to vector<128x32xf32>
    %91 = arith.subf %87, %90 : vector<128x32xf32>
    %92 = math.exp %91 : vector<128x32xf32>
    %cst_42 = arith.constant dense<0.000000e+00> : vector<128xf32>
    %93 = vector.multi_reduction <add>, %92, %cst_42 [1] : vector<128x32xf32> to vector<128xf32>
    %94 = vector.shape_cast %93 : vector<128xf32> to vector<128x1xf32>
    %95 = tpu.reciprocal %94 {approx = true} : vector<128x1xf32> -> vector<128x1xf32>
    %96 = vector.broadcast %95 : vector<128x1xf32> to vector<128x32xf32>
    %97 = arith.mulf %92, %96 : vector<128x32xf32>
    %cst_43 = arith.constant dense<0.000000e+00> : vector<128x32xf32>
    %98 = tpu.matmul %97, %84, %cst_43 {dimension_numbers = #tpu.dot_dimension_numbers<[1], [0], [0], [1], [0, 0, 1, 1], [], []>} : vector<128x32xf32>, vector<32x32xf32>, vector<128x32xf32> -> vector<128x32xf32>
    %99 = tpu.concatenate %35, %56, %77, %98 in 1 : vector<128x32xf32>, vector<128x32xf32>, vector<128x32xf32>, vector<128x32xf32> -> vector<128x128xf32>
    %cst_44 = arith.constant dense<0.000000e+00> : vector<128x128xf32>
    %100 = tpu.matmul %99, %7, %cst_44 {dimension_numbers = #tpu.dot_dimension_numbers<[1], [0], [0], [1], [0, 0, 1, 1], [], []>} : vector<128x128xf32>, vector<128x128xf32>, vector<128x128xf32> -> vector<128x128xf32>
    %101 = vector.broadcast %8 : vector<1x128xf32> to vector<128x128xf32>
    %102 = arith.addf %100, %101 : vector<128x128xf32>
    %c0_45 = arith.constant 0 : index
    %c0_46 = arith.constant 0 : index
    %c0_47 = arith.constant 0 : index
    %103 = vector.load %arg8[%c0_45, %c0_46, %c0_47] : memref<1x128x128xf32, #tpu.memory_space<vmem>>, vector<1x128x128xf32>
    %104 = vector.shape_cast %103 : vector<1x128x128xf32> to vector<128x128xf32>
    %105 = vector.shape_cast %102 : vector<128x128xf32> to vector<1x128x128xf32>
    tpu.vector_store %arg8[%c0_45, %c0_46, %c0_47], %105 {strides = array<i32>} : memref<1x128x128xf32, #tpu.memory_space<vmem>>, vector<1x128x128xf32>,
    return
  }
  func.func @transform_0(%arg0: i32) -> (i32, i32, i32) {
    %c0_i32 = arith.constant 0 : i32
    %c0_i32_0 = arith.constant 0 : i32
    %c0_i32_1 = arith.constant 0 : i32
    return %arg0, %c0_i32, %c0_i32_0 : i32, i32, i32
  }
  func.func @transform_1(%arg0: i32) -> (i32, i32, i32) {
    %c0_i32 = arith.constant 0 : i32
    %c0_i32_0 = arith.constant 0 : i32
    %c0_i32_1 = arith.constant 0 : i32
    return %arg0, %c0_i32, %c0_i32_0 : i32, i32, i32
  }
  func.func @transform_2(%arg0: i32) -> (i32, i32) {
    %c0_i32 = arith.constant 0 : i32
    %c0_i32_0 = arith.constant 0 : i32
    %c0_i32_1 = arith.constant 0 : i32
    return %c0_i32, %c0_i32_0 : i32, i32
  }
  func.func @transform_3(%arg0: i32) -> (i32, i32) {
    %c0_i32 = arith.constant 0 : i32
    %c0_i32_0 = arith.constant 0 : i32
    %c0_i32_1 = arith.constant 0 : i32
    return %c0_i32, %c0_i32_0 : i32, i32
  }
  func.func @transform_4(%arg0: i32) -> (i32, i32, i32) {
    %c0_i32 = arith.constant 0 : i32
    %c0_i32_0 = arith.constant 0 : i32
    %c0_i32_1 = arith.constant 0 : i32
    %c0_i32_2 = arith.constant 0 : i32
    return %c0_i32, %c0_i32_0, %c0_i32_1 : i32, i32, i32
  }
  func.func @transform_5(%arg0: i32) -> (i32, i32) {
    %c0_i32 = arith.constant 0 : i32
    %c0_i32_0 = arith.constant 0 : i32
    %c0_i32_1 = arith.constant 0 : i32
    return %c0_i32, %c0_i32_0 : i32, i32
  }
  func.func @transform_6(%arg0: i32) -> (i32, i32) {
    %c0_i32 = arith.constant 0 : i32
    %c0_i32_0 = arith.constant 0 : i32
    %c0_i32_1 = arith.constant 0 : i32
    return %c0_i32, %c0_i32_0 : i32, i32
  }
  func.func @transform_7(%arg0: i32) -> (i32, i32, i32) {
    %c0_i32 = arith.constant 0 : i32
    %c0_i32_0 = arith.constant 0 : i32
    %c0_i32_1 = arith.constant 0 : i32
    return %arg0, %c0_i32, %c0_i32_0 : i32, i32, i32
  }
}

</mosaic_0001>

<bundles_post_ra>
// kernel: tpu_custom_call.1
= control target key start
LH: loop header
LB: loop body
LE: loop exit
PB: predicated region body
PF: predicated region fallthrough
CT: control target
= control target key end

     0   :  { %s9248_s0 = inlined_call_operand.hbm [shape: f32[2,128,128], index: 0, kind: input, shape index: {}]   ;;  %s9249_s1 = inlined_call_operand.hbm [shape: f32[2,1,128], index: 1, kind: input, shape index: {}]   ;;  %s9250_s2 = inlined_call_operand.hbm [shape: f32[128,384], index: 2, kind: input, shape index: {}]   ;;  %s9251_s3 = inlined_call_operand.vmem [shape: f32[1,384], index: 3, kind: input, shape index: {}]   ;;  %s9252_s4 = inlined_call_operand.hbm [shape: f32[4,32,128], index: 4, kind: input, shape index: {}]   ;;  %s9253_s5 = inlined_call_operand.hbm [shape: f32[128,128], index: 5, kind: input, shape index: {}]   ;;  %s9254_s6 = inlined_call_operand.vmem [shape: f32[1,128], index: 6, kind: input, shape index: {}]   ;;  %s9255_s7 = inlined_call_operand.hbm [shape: f32[2,128,128], index: 7, kind: output, shape index: {}]  }
   0x1   :  { %9346 = sst [smem:[#allocation69_spill]] %s9248_s0 }
   0x2   :  { %9347 = sst [smem:[#allocation70_spill]] %s9250_s2 }
   0x3   :  { %9348 = sst [smem:[#allocation71_spill]] %s9252_s4 }
   0x4   :  { %9349 = sst [smem:[#allocation72_spill]] %s9253_s5 }
   0x5   :  { %12 = vsyncpa [#allocation3], 0 }
   0x6   :  { %14 = vsyncpa [#allocation3 + $0x1], 0 }
   0x7   :  { %15 = vsyncpa [#allocation6], 0 }
   0x8   :  { %17 = vsyncpa [#allocation6 + $0x1], 0 }
   0x9   :  { %18 = vsyncpa [#allocation9], 0 }
   0xa   :  { %19 = vsyncpa [#allocation4], 0 }
   0xb   :  { %21 = vsyncpa [#allocation4 + $0x1], 0  ;;  %s6764_s24 = smov 0   ;;  %s6766_s25 = smov 0  }
   0xc   :  { %s6768_s26 = smov 0   ;;  %s6770_s27 = smov 0  }
   0xd LB: > { %s6785_s28 = sadd.s32 4294967295, %s6706_s27   ;;  %s4770_s29 = sadd.s32 4294967294, %s6706_s27   ;;  %s6706_s27 = sphi %s6770_s27, %s9554_s27   ;;  %s6702_s26 = sphi %s6768_s26, %s9553_s26   ;;  %s6698_s25 = sphi %s6766_s25, %s9552_s25   ;;  %s6694_s24 = sphi %s6764_s24, %s9551_s24  }
   0xe   : > { %p47_p0 = scmp.ne.s32.totalorder %s6698_s25, %s6694_s24  ;;  %p9256_p1 = scmp.eq.s32.totalorder %s6785_s28, 0 }
   0xf   : > { %p208_p3 = scmp.eq.s32.totalorder %s4770_s29, 1  ;;  %p4771_p5 = scmp.ge.s32.totalorder %s6706_s27, 1 }
  0x10   : > { %p6794_p4 = por %p9256_p1, %p47_p0  ;;  %p215_p7 = scmp.lt.s32.totalorder %s6706_s27, 3 }
  0x11   : > { %p6799_p6 = por %p208_p3, %p47_p0  ;;  %s6708_s10 = smov [#allocation7]  }
  0x12   : > { %s9350_s30 = scalar_select %p6794_p4, 1, 0 }
  0x13   : > { %s9351_s8 = scalar_select %p6799_p6, 1, 0 }
  0x14   : > { %p6804_p8 = pnand %p4771_p5, %p215_p7  ;;  %s227_s11 = sshll.u32 %s6708_s10, 4  ;;  %s228_s11 = int_to_ptr.vmem [resolvable:$true] %s227_s11 }
  0x15   : > { %s6709_s13 = smov [#allocation8]   ;;  %s6507_s15 = scalar_lea.vmem %s228_s11, 6144 }
  0x16   : > { %s9352_s9 = scalar_select %p6804_p8, 1, 0 }
  0x17   : > { %p6045_p9 = pneg %p6804_p8  ;;  %s243_s14 = sshll.u32 %s6709_s13, 4  ;;  %s244_s14 = int_to_ptr.vmem [resolvable:$true] %s243_s14 }
  0x18   : > { %p6508_p13 = scmp.ne.s32.totalorder %s228_s11, %s6507_s15  ;;  %p6515_p5 = scmp.lt.s32.totalorder %s228_s11, %s228_s11 }
  0x19   : > { %p6813_p11 = pnand %p6045_p9, %p9256_p1  ;;  %p6516_p7 = scmp.lt.s32.totalorder %s6507_s15, %s6507_s15 }
  0x1b   : > { %p6498_p12 = pneg %p6813_p11  ;;  %p6517_p10 = por %p6516_p7, %p6515_p5 }
  0x1d   : > { %p6510_p0 = pnand %p6508_p13, %p6498_p12 }
  0x1f   : > { %p6511_p3 = pneg %p6510_p0 }
  0x21   : > { %p6518_p9 = pnand %p6517_p10, %p6511_p3 }
  0x23   : > { %6521 = shalt.err (!%p6518_p9)
}
  0x24   : > { %s6710_s16 = smov 384   ;;  %s6711_s17 = smov 24  }
  0x25   : > { %s9354_s2 = sld [smem:[#allocation70_spill]]  ;;  %s6533_s20 = scalar_lea.vmem %s244_s14, 2048 }
  0x26   : > { %p6534_p1 = scmp.ne.s32.totalorder %s244_s14, %s6533_s20  ;;  %p6541_p2 = scmp.lt.s32.totalorder %s244_s14, %s244_s14 }
  0x27   : > { %p6542_p6 = scmp.lt.s32.totalorder %s6533_s20, %s6533_s20 }
  0x28   : > { %p6536_p13 = pnand %p6534_p1, %p6498_p12 }
  0x29   : > { %p6543_p5 = por %p6542_p6, %p6541_p2 }
  0x2a   : > { %p6537_p0 = pneg %p6536_p13 }
  0x2b   : > { %6048 = dma.hbm_to_vmem [thread:$0]  (!%p6813_p11), %s9354_s2, 6144, %s228_s11, [#allocation6], %s6710_s16, %s6710_s16, %s6711_s17  }
  0x2c   : > { %p6544_p10 = pnand %p6543_p5, %p6537_p0 }
  0x2e   : > { %6547 = shalt.err (!%p6544_p10)
}
  0x2f   : > { %s9257_s21 = smov 128   ;;  %s9258_s22 = smov 8  }
  0x30   : > { %s9355_s4 = sld [smem:[#allocation71_spill]]  ;;  %s6714_s10 = smov [#allocation10]  }
  0x31   : > { %s256_s11 = sshll.u32 %s6714_s10, 4  ;;  %s6839_s13 = sadd.s32 1, %s6706_s27   ;;  %s257_s11 = int_to_ptr.vmem [resolvable:$true] %s256_s11 }
  0x32   : > { %s6559_s15 = scalar_lea.vmem %s257_s11, 2048  ;;  %p6567_p3 = scmp.lt.s32.totalorder %s257_s11, %s257_s11 }
  0x33   : > { %p6560_p1 = scmp.ne.s32.totalorder %s257_s11, %s6559_s15  ;;  %p6568_p7 = scmp.lt.s32.totalorder %s6559_s15, %s6559_s15 }
  0x35   : > { %p6562_p2 = pnand %p6560_p1, %p6498_p12  ;;  %p6569_p9 = por %p6568_p7, %p6567_p3 }
  0x36   : > { %6051 = dma.hbm_to_vmem [thread:$0]  (!%p6813_p11), %s9355_s4, 2048, %s244_s14, [#allocation9], %s9257_s21, %s9257_s21, %s9258_s22  }
  0x37   : > { %p6563_p6 = pneg %p6562_p2 }
  0x39   : > { %p6570_p13 = pnand %p6569_p9, %p6563_p6 }
  0x3b   : > { %6573 = shalt.err (!%p6570_p13)
}
  0x3c   : > { %s9356_s5 = sld [smem:[#allocation72_spill]]  ;;  %s31_s17 = ssub.s32 %s6706_s27, %s6839_s13 }
  0x3d   : > { %s34_s12 = sadd.s32 1, %s6702_s26  ;;  %p32_p12 = scmp.eq.s32.totalorder %s31_s17, 0 }
  0x3e   : > { %p41_p0 = scmp.ne.s32.totalorder %s6702_s26, %s6698_s25  ;;  %p42_p5 = scmp.eq.s32.totalorder %s6706_s27, 0 }
  0x3f   : > { %p6069_p10 = scmp.lt.s32.totalorder %s6706_s27, 2  ;;  %p9357_p2 = scmp.eq.s32.totalorder %s6785_s28, 1 }
  0x40   : > { %s6860_s18 = scalar_select %p32_p12, %s6702_s26, %s34_s12  }
  0x41   : > { %p43_p1 = por %p42_p5, %p41_p0  ;;  %p6864_p6 = por %p9357_p2, %p41_p0 }
  0x42   : > { %6054 = dma.hbm_to_vmem [thread:$0]  (!%p6813_p11), %s9356_s5, 2048, %s257_s11, [#allocation9], %s9257_s21, %s9257_s21, %s9258_s22  }
  0x43   : > { %s9358_s19 = scalar_select %p6864_p6, 1, 0 }
  0x44   : > { %s6869_s20 = sand.u32 1, %s6702_s26   ;;  %s4937_s23 = sshll.u32 %s6706_s27, 11 }
  0x45   : > { %s4776_s29 = sshll.u32 %s6869_s20, 7  ;;  %s9359_s0 = sld [smem:[#allocation69_spill]] }
  0x46   : > { %s277_s14 = scalar_lea.vmem [#allocation2], %s4776_s29  ;;  %p6878_p11 = pnand %p6069_p10, %p43_p1 }
  0x47   : > { %s284_s16 = sshll.u32 %s277_s14, 4  ;;  %s6882_s16 = int_to_ptr.vmem [resolvable:$true] %s284_s16 }
  0x48   : > { %p6576_p7 = pneg %p6878_p11 }
  0x4b   : > { %s6876_s15 = scalar_lea.hbm %s9359_s0, %s4937_s23  ;;  %s6579_s10 = scalar_lea.hbm %s9359_s0, 4096 }
  0x4c   : > { %s6574_s22 = scalar_lea.hbm %s6876_s15, 2048  ;;  %p6580_p12 = scmp.lt.s32.totalorder %s6876_s15, %s9359_s0 }
  0x4d   : > { %p6575_p3 = scmp.ne.s32.totalorder %s6876_s15, %s6574_s22  ;;  %p6581_p0 = scmp.lt.s32.totalorder %s6579_s10, %s6574_s22 }
  0x4f   : > { %p6577_p9 = pnand %p6576_p7, %p6575_p3  ;;  %p6582_p5 = por %p6581_p0, %p6580_p12 }
  0x51   : > { %p6578_p13 = pneg %p6577_p9 }
  0x53   : > { %p6583_p10 = pnand %p6582_p5, %p6578_p13 }
  0x55   : > { %6586 = shalt.err (!%p6583_p10)
}
  0x56   : > { %s6587_s12 = scalar_lea.vmem %s6882_s16, 2048  ;;  %s6715_s23 = smov [#allocation2]  }
  0x57   : > { %p6588_p1 = scmp.ne.s32.totalorder %s6882_s16, %s6587_s12  ;;  %s6592_s29 = sshll.u32 %s6715_s23, 4  ;;  %s6593_s29 = int_to_ptr.vmem [resolvable:$false] %s6592_s29 }
  0x58   : > { %s6594_s21 = scalar_lea.vmem %s6593_s29, 4096  ;;  %p6595_p9 = scmp.lt.s32.totalorder %s6882_s16, %s6593_s29 }
  0x59   : > { %p6590_p2 = pnand %p6588_p1, %p6576_p7  ;;  %p6596_p6 = scmp.lt.s32.totalorder %s6594_s21, %s6587_s12 }
  0x5b   : > { %p6591_p3 = pneg %p6590_p2  ;;  %p6597_p4 = por %p6596_p6, %p6595_p9 }
  0x5d   : > { %p6598_p12 = pnand %p6597_p4, %p6591_p3 }
  0x5f   : > { %6601 = shalt.err (!%p6598_p12)
}
  0x60   : > { %s9361_s22 = smov 8   ;;  %s9362_s10 = smov 128  }
  0x61   : > { %s9363_s11 = scalar_lea.sflag [#allocation3], %s6869_s20  ;;  %s4779_s14 = sshll.u32 %s6706_s27, 4 }
  0x62   : > { %6058 = dma.hbm_to_vmem [thread:$0]  (!%p6878_p11), %s6876_s15, 2048, %s6882_s16, %s9363_s11, %s9362_s10, %s9362_s10, %s9361_s22  }
  0x63   : > { %s6919_s12 = scalar_lea.hbm %s9249_s1, %s4779_s14  ;;  %s297_s29 = scalar_lea.vmem [#allocation5], %s6869_s20 }
  0x64   : > { %s304_s0 = sshll.u32 %s297_s29, 4  ;;  %s9364_s2 = sand.u32 1, %s6706_s27   ;;  %s305_s0 = int_to_ptr.vmem [resolvable:$true] %s304_s0 }
  0x65   : > { %s295_s4 = scalar_lea.sflag [#allocation6], %s9364_s2  ;;  %s6602_s5 = scalar_lea.hbm %s6919_s12, 16 }
  0x66   : > { %p6603_p4 = scmp.ne.s32.totalorder %s6919_s12, %s6602_s5  ;;  %s6607_s22 = scalar_lea.hbm %s9249_s1, 32 }
  0x67   : > { %p6608_p0 = scmp.lt.s32.totalorder %s6919_s12, %s9249_s1  ;;  %p6609_p5 = scmp.lt.s32.totalorder %s6607_s22, %s6602_s5 }
  0x68   : > { %p6605_p6 = pnand %p6603_p4, %p6576_p7 }
  0x69   : > { %p6610_p10 = por %p6609_p5, %p6608_p0 }
  0x6a   : > { %p6606_p13 = pneg %p6605_p6 }
  0x6c   : > { %p6611_p1 = pnand %p6610_p10, %p6606_p13 }
  0x6e   : > { %6614 = shalt.err (!%p6611_p1)
}
  0x6f   : > { %s6615_s20 = scalar_lea.vmem %s305_s0, 16  ;;  %s6716_s2 = smov [#allocation5]  }
  0x70   : > { %p6616_p2 = scmp.ne.s32.totalorder %s305_s0, %s6615_s20  ;;  %s6620_s14 = sshll.u32 %s6716_s2, 4  ;;  %s6621_s14 = int_to_ptr.vmem [resolvable:$false] %s6620_s14 }
  0x71   : > { %s6622_s23 = scalar_lea.vmem %s6621_s14, 32  ;;  %p6623_p12 = scmp.lt.s32.totalorder %s305_s0, %s6621_s14 }
  0x72   : > { %p6618_p3 = pnand %p6616_p2, %p6576_p7  ;;  %p6624_p4 = scmp.lt.s32.totalorder %s6622_s23, %s6615_s20 }
  0x74   : > { %p6619_p9 = pneg %p6618_p3  ;;  %p6625_p6 = por %p6624_p4, %p6623_p12 }
  0x76   : > { %p6626_p8 = pnand %p6625_p6, %p6619_p9 }
  0x78   : > { %6629 = shalt.err (!%p6626_p8)
}
  0x79   : > { %6061 = dma.hbm_to_vmem [thread:$0]  (!%p6878_p11), %s6919_s12, 16, %s305_s0, %s295_s4  }
  0x7a   : > { %p9365_p13 = scmp.ne.s32.totalorder %s9352_s9, 0 }
  0x7c   : > { %313 = sbr.rel (%p9365_p13) target bundleno = 2752 (0xac0), region = 48 }
  0x81   : > { %s6945_s5 = sand.u32 1, %s6698_s25   ;;  %p9366_p8 = scmp.ne.s32.totalorder %s9350_s30, 0 }
  0x82   : > { %s4781_s21 = sshll.u32 %s6945_s5, 7  ;;  %s316_s29 = scalar_lea.sflag [#allocation3], %s6945_s5 }
  0x83   : > { %s6951_s15 = scalar_lea.vmem [#allocation2], %s4781_s21 }
  0x84   : > { %6673 = dma.done.wait (%p9366_p8), %s316_s29, 2048  }
  0x85   : > { %6675 = vsyncadd (%p9366_p8), %s316_s29, 4294965248  ;;  %s324_s0 = sand.u32 1, %s6785_s28   ;;  %s327_s9 = scalar_lea.vmem [#allocation5], %s6945_s5 }
  0x86   : > { %s325_s4 = scalar_lea.sflag [#allocation6], %s324_s0 }
  0x87   : > { %6677 = dma.done.wait (%p9366_p8), %s325_s4, 16  }
  0x88   : > { %6679 = vsyncadd (%p9366_p8), %s325_s4, 4294967280  ;;  %p9367_p11 = scmp.eq.s32.totalorder %s6785_s28, 0 }
  0x8a   : > { %6681 = dma.done.wait (%p9367_p11), [#allocation6], 6144   ;;  %p9368_p7 = pmov %p9367_p11 }
  0x8c   : > { %6683 = vsyncadd (%p9368_p7), [#allocation6], 4294961152  ;;  %p9369_p0 = pmov %p9368_p7 }
  0x8e   : > { %6685 = dma.done.wait (%p9369_p0), [#allocation9], 4096   ;;  %p9370_p5 = pmov %p9369_p0 }
  0x8f   : > { %v6717_v0 = vmov 0.0   ;;  %v437_v1 = vld [vmem:[#allocation7 + $0x170] sm:$0xff]  ;;  %v436_v2 = vld [vmem:[#allocation7 + $0x168] sm:$0xff]  ;;  %v434_v3 = vld [vmem:[#allocation7 + $0x158] sm:$0xff]  ;;  %s6718_s12 = smov 96   ;;  %s6719_s16 = smov 64  }
  0x90   : > { %6687 = vsyncadd (%p9370_p5), [#allocation9], 4294963200  ;;  %553 = vmatprep.mubr.f32.mxu0 %v6717_v0  ;;  %489 = vmatprep.subr.mxu0 %v437_v1  ;;  %v433_v4 = vld [vmem:[#allocation7 + $0x150] sm:$0xff]  ;;  %v431_v5 = vld [vmem:[#allocation7 + $0x140] sm:$0xff]  ;;  %vm987_vm0 = vcmask 261120   ;;  %s6720_s22 = smov 32  }
  0x91   : > { %490 = vmatpush1.msra.mxu0 %v436_v2  ;;  %v430_v6 = vld [vmem:[#allocation7 + $0x138] sm:$0xff]  ;;  %v428_v7 = vld [vmem:[#allocation7 + $0x128] sm:$0xff]  ;;  %v427_v8 = vld [vmem:[#allocation7 + $0x120] sm:$0xff]  ;;  %vm4434_vm1 = vcmask 523264   ;;  %vm4451_vm2 = vcmask 785408   ;;  %s9180_s20 = scalar_lea.vmem [#allocation11], %s4781_s21 }
  0x92   : > { %491 = vmatprep.subr.mxu0 %v434_v3  ;;  %v425_v9 = vld [vmem:[#allocation7 + $0x110] sm:$0xff]  ;;  %v424_v10 = vld [vmem:[#allocation7 + $0x108] sm:$0xff]  ;;  %v422_v11 = vld [vmem:[#allocation7 + $0xf8] sm:$0xff]  ;;  %s4938_s2 = sshll.u32 %s6785_s28, 11  ;;  %s4649_s14 = sshll.u32 %s9180_s20, 4  ;;  %s9201_s14 = int_to_ptr.vmem [resolvable:$true] %s4649_s14 }
  0x93   : > { %492 = vmatpush1.msra.mxu0 %v433_v4  ;;  %v421_v12 = vld [vmem:[#allocation7 + $0xf0] sm:$0xff]  ;;  %v419_v13 = vld [vmem:[#allocation7 + $0xe0] sm:$0xff]  ;;  %v418_v15 = vld [vmem:[#allocation7 + $0xd8] sm:$0xff]  ;;  %s9199_s29 = scalar_lea.hbm %s9255_s7, %s4938_s2  ;;  %s4636_s28 = scalar_lea.sflag [#allocation4], %s6945_s5 }
  0x94   : > { %493 = vmatprep.subr.mxu0 %v431_v5  ;;  %v6973_v14 = vld [vmem:[%s6951_s15] sm:$0xff]  ;;  %v416_v16 = vld [vmem:[#allocation7 + $0xc8] sm:$0xff]  ;;  %v413_v18 = vld [vmem:[#allocation7 + $0xb0] sm:$0xff]  ;;  %p9548_p1 = scmp.ne.s32.totalorder %s9358_s19, 0  ;;  %s6721_s0 = smov [#allocation11]  }
  0x95   : > { %494 = vmatpush1.msra.mxu0 %v430_v6  ;;  %5355 = vmatprep.mubr.f32.mxu1 %v6973_v14  ;;  %v415_v17 = vld [vmem:[#allocation7 + $0xc0] sm:$0xff]  ;;  %v412_v19 = vld [vmem:[#allocation7 + $0xa8] sm:$0xff]  ;;  %v410_v20 = vld [vmem:[#allocation7 + $0x98] sm:$0xff]  ;;  %s6634_s4 = sshll.u32 %s6721_s0, 4  ;;  %s6635_s4 = int_to_ptr.vmem [resolvable:$false] %s6634_s4 }
  0x96   : > { %495 = vmatprep.subr.mxu0 %v428_v7  ;;  %v438_v21 = vld [vmem:[#allocation7 + $0x178] sm:$0xff]  ;;  %v435_v22 = vld [vmem:[#allocation7 + $0x160] sm:$0xff]  ;;  %v409_v23 = vld [vmem:[#allocation7 + $0x90] sm:$0xff]  ;;  %p6637_p9 = scmp.lt.s32.totalorder %s9201_s14, %s6635_s4 }
  0x97   : > { %496 = vmatpush1.msra.mxu0 %v427_v8  ;;  %5323 = vmatprep.subr.mxu1 %v438_v21  ;;  %v407_v24 = vld [vmem:[#allocation7 + $0x80] sm:$0xff]  ;;  %v432_v25 = vld [vmem:[#allocation7 + $0x148] sm:$0xff]  ;;  %v406_v26 = vld [vmem:[#allocation7 + $0x78] sm:$0xff] }
  0x98   : > { %497 = vmatprep.subr.mxu0 %v425_v9  ;;  %5324 = vmatpush3.msra.mxu1 %v438_v21  ;;  %v404_v27 = vld [vmem:[#allocation7 + $0x68] sm:$0xff]  ;;  %v429_v28 = vld [vmem:[#allocation7 + $0x130] sm:$0xff]  ;;  %v403_v29 = vld [vmem:[#allocation7 + $0x60] sm:$0xff] }
  0x99   : > { %498 = vmatpush1.msra.mxu0 %v424_v10  ;;  %5325 = vmatprep.subr.mxu1 %v435_v22  ;;  %v401_v30 = vld [vmem:[#allocation7 + $0x50] sm:$0xff]  ;;  %v426_v31 = vld [vmem:[#allocation7 + $0x118] sm:$0xff]  ;;  %v400_v32 = vld [vmem:[#allocation7 + $0x48] sm:$0xff] }
  0x9a   : > { %499 = vmatprep.subr.mxu0 %v422_v11  ;;  %5326 = vmatpush3.msra.mxu1 %v435_v22  ;;  %v398_v33 = vld [vmem:[#allocation7 + $0x38] sm:$0xff]  ;;  %v423_v34 = vld [vmem:[#allocation7 + $0x100] sm:$0xff]  ;;  %v397_v35 = vld [vmem:[#allocation7 + $0x30] sm:$0xff] }
  0x9b   : > { %500 = vmatpush1.msra.mxu0 %v421_v12  ;;  %5327 = vmatprep.subr.mxu1 %v432_v25  ;;  %v395_v36 = vld [vmem:[#allocation7 + $0x20] sm:$0xff]  ;;  %v420_v37 = vld [vmem:[#allocation7 + $0xe8] sm:$0xff]  ;;  %v394_v38 = vld [vmem:[#allocation7 + $0x18] sm:$0xff] }
  0x9c   : > { %501 = vmatprep.subr.mxu0 %v419_v13  ;;  %5328 = vmatpush3.msra.mxu1 %v432_v25  ;;  %v392_v39 = vld [vmem:[#allocation7 + $0x8] sm:$0xff]  ;;  %v417_v40 = vld [vmem:[#allocation7 + $0xd0] sm:$0xff]  ;;  %v391_v41 = vld [vmem:[#allocation7] sm:$0xff] }
  0x9d   : > { %502 = vmatpush1.msra.mxu0 %v418_v15  ;;  %5329 = vmatprep.subr.mxu1 %v429_v28  ;;  %v414_v42 = vld [vmem:[#allocation7 + $0xb8] sm:$0xff]  ;;  %v411_v43 = vld [vmem:[#allocation7 + $0xa0] sm:$0xff]  ;;  %v408_v45 = vld [vmem:[#allocation7 + $0x88] sm:$0xff] }
  0x9e   : > { %503 = vmatprep.subr.mxu0 %v416_v16  ;;  %5330 = vmatpush3.msra.mxu1 %v429_v28  ;;  %v375_v44 = vld [vmem:[%s6951_s15 + $0x8] sm:$0xff]  ;;  %v405_v46 = vld [vmem:[#allocation7 + $0x70] sm:$0xff]  ;;  %v402_v48 = vld [vmem:[#allocation7 + $0x58] sm:$0xff] }
  0x9f   : > { %504 = vmatpush1.msra.mxu0 %v415_v17  ;;  %5331 = vmatprep.subr.mxu1 %v426_v31  ;;  %v376_v47 = vld [vmem:[%s6951_s15 + $0x10] sm:$0xff]  ;;  %v399_v49 = vld [vmem:[#allocation7 + $0x40] sm:$0xff]  ;;  %v377_v50 = vld [vmem:[%s6951_s15 + $0x18] sm:$0xff] }
  0xa0   : > { %505 = vmatprep.subr.mxu0 %v413_v18  ;;  %5332 = vmatpush3.msra.mxu1 %v426_v31  ;;  %v396_v51 = vld [vmem:[#allocation7 + $0x28] sm:$0xff]  ;;  %v393_v52 = vld [vmem:[#allocation7 + $0x10] sm:$0xff]  ;;  %v378_v53 = vld [vmem:[%s6951_s15 + $0x20] sm:$0xff] }
  0xa1   : > { %506 = vmatpush1.msra.mxu0 %v412_v19  ;;  %5333 = vmatprep.subr.mxu1 %v423_v34  ;;  %v379_v54 = vld [vmem:[%s6951_s15 + $0x28] sm:$0xff]  ;;  %v380_v55 = vld [vmem:[%s6951_s15 + $0x30] sm:$0xff]  ;;  %v381_v56 = vld [vmem:[%s6951_s15 + $0x38] sm:$0xff] }
  0xa2   : > { %507 = vmatprep.subr.mxu0 %v410_v20  ;;  %5334 = vmatpush3.msra.mxu1 %v423_v34  ;;  %v382_v57 = vld [vmem:[%s6951_s15 + $0x40] sm:$0xff]  ;;  %v383_v58 = vld [vmem:[%s6951_s15 + $0x48] sm:$0xff]  ;;  %v384_v59 = vld [vmem:[%s6951_s15 + $0x50] sm:$0xff] }
  0xa3   : > { %508 = vmatpush1.msra.mxu0 %v409_v23  ;;  %5335 = vmatprep.subr.mxu1 %v420_v37  ;;  %v385_v60 = vld [vmem:[%s6951_s15 + $0x58] sm:$0xff]  ;;  %v386_v61 = vld [vmem:[%s6951_s15 + $0x60] sm:$0xff]  ;;  %v387_v62 = vld [vmem:[%s6951_s15 + $0x68] sm:$0xff] }
  0xa4   : > { %509 = vmatprep.subr.mxu0 %v407_v24  ;;  %5336 = vmatpush3.msra.mxu1 %v420_v37  ;;  %v388_v63 = vld [vmem:[%s6951_s15 + $0x70] sm:$0xff]  ;;  %v389_v1 = vld [vmem:[%s6951_s15 + $0x78] sm:$0xff]  ;;  %v7009_v2 = vld [vmem:[%s327_s9] ss:$0 sm:$0xff]  ;;  %s6630_s15 = scalar_lea.vmem %s9201_s14, 2048 }
  0xa5   : > { %510 = vmatpush1.msra.mxu0 %v406_v26  ;;  %5337 = vmatprep.subr.mxu1 %v417_v40  ;;  %v440_v3 = vld [vmem:[#allocation8] sm:$0xff]  ;;  %p6631_p10 = scmp.ne.s32.totalorder %s9201_s14, %s6630_s15 }
  0xa6   : > { %511 = vmatprep.subr.mxu0 %v404_v27  ;;  %5338 = vmatpush3.msra.mxu1 %v417_v40  ;;  %v801_v4 = vmul.f32 %v7009_v2, %v440_v3 }
  0xa7   : > { %512 = vmatpush1.msra.mxu0 %v403_v29  ;;  %5339 = vmatprep.subr.mxu1 %v414_v42  ;;  %p6632_p2 = pnand %p6631_p10, %p9548_p1 }
  0xa8   : > { %513 = vmatprep.subr.mxu0 %v401_v30  ;;  %5340 = vmatpush3.msra.mxu1 %v414_v42  ;;  %v474_v30 = vlaneseq }
  0xa9   : > { %514 = vmatpush1.msra.mxu0 %v400_v32  ;;  %5341 = vmatprep.subr.mxu1 %v411_v43  ;;  %p6633_p3 = pneg %p6632_p2 }
  0xaa   : > { %515 = vmatprep.subr.mxu0 %v398_v33  ;;  %5342 = vmatpush3.msra.mxu1 %v411_v43 }
  0xab   : > { %516 = vmatpush1.msra.mxu0 %v397_v35  ;;  %5343 = vmatprep.subr.mxu1 %v408_v45  ;;  %v7064_v35 = vshrl.u32 %v474_v30, 7 }
  0xac   : > { %517 = vmatprep.subr.mxu0 %v395_v36  ;;  %5344 = vmatpush3.msra.mxu1 %v408_v45 }
  0xad   : > { %518 = vmatpush1.msra.mxu0 %v394_v38  ;;  %5345 = vmatprep.subr.mxu1 %v405_v46  ;;  %v484_v38 = vsub.s32 2, %v7064_v35 }
  0xae   : > { %519 = vmatprep.subr.mxu0 %v392_v39  ;;  %5346 = vmatpush3.msra.mxu1 %v405_v46 }
  0xaf   : > { %520 = vmatpush1.msra.mxu0 %v391_v41  ;;  %5347 = vmatprep.subr.mxu1 %v402_v48  ;;  %v7074_v41 = vld [vmem:[%s9251_s3] sm:$0x7] }
  0xb0   : > { %554 = vmatmul.mubr.f32.vlgmr.msra.gmra.mxu0 %v6973_v14  ;;  %5348 = vmatpush3.msra.mxu1 %v402_v48 }
  0xb1   : > { %559 = vmatprep.mubr.f32.mxu0 %v6717_v0  ;;  %5349 = vmatprep.subr.mxu1 %v399_v49 }
  0xb2   : > { %5350 = vmatpush3.msra.mxu1 %v399_v49 }
  0xb3   : > { %5351 = vmatprep.subr.mxu1 %v396_v51 }
  0xb4   : > { %560 = vmatmul.mubr.f32.gmra.mxu0 %v375_v44  ;;  %5352 = vmatpush3.msra.mxu1 %v396_v51 }
  0xb5   : > { %565 = vmatprep.mubr.f32.mxu0 %v6717_v0  ;;  %5353 = vmatprep.subr.mxu1 %v393_v52 }
  0xb6   : > { %5354 = vmatpush3.msra.mxu1 %v393_v52 }
  0xb7   : > { %5356 = vmatmul.mubr.f32.vlgmr.msra.gmra.mxu1 %v375_v44  ;;  %v7077_v44 = vrot.slane %v7074_v41, %v484_v38 }
  0xb8   : > { %566 = vmatmul.mubr.f32.gmra.mxu0 %v376_v47  ;;  %5358 = vmatprep.mubr.f32.mxu1 %v376_v47 }
  0xb9   : > { %571 = vmatprep.mubr.f32.mxu0 %v6717_v0 }
  0xbb   : > { %5359 = vmatmul.mubr.f32.gmra.mxu1 %v377_v50 }
  0xbc   : > { %572 = vmatmul.mubr.f32.gmra.mxu0 %v377_v50  ;;  %5361 = vmatprep.mubr.f32.mxu1 %v378_v53 }
  0xbd   : > { %577 = vmatprep.mubr.f32.mxu0 %v6717_v0 }
  0xbf   : > { %5362 = vmatmul.mubr.f32.gmra.mxu1 %v379_v54 }
  0xc0   : > { %578 = vmatmul.mubr.f32.gmra.mxu0 %v378_v53  ;;  %5364 = vmatprep.mubr.f32.mxu1 %v380_v55  ;;  %v480_v53 = vsub.s32 1, %v7064_v35 }
  0xc1   : > { %583 = vmatprep.mubr.f32.mxu0 %v6717_v0 }
  0xc3   : > { %5365 = vmatmul.mubr.f32.gmra.mxu1 %v381_v56 }
  0xc4   : > { %584 = vmatmul.mubr.f32.gmra.mxu0 %v379_v54  ;;  %5367 = vmatprep.mubr.f32.mxu1 %v382_v57 }
  0xc5   : > { %589 = vmatprep.mubr.f32.mxu0 %v6717_v0 }
  0xc7   : > { %5368 = vmatmul.mubr.f32.gmra.mxu1 %v383_v58 }
  0xc8   : > { %590 = vmatmul.mubr.f32.gmra.mxu0 %v380_v55  ;;  %5370 = vmatprep.mubr.f32.mxu1 %v384_v59 }
  0xc9   : > { %595 = vmatprep.mubr.f32.mxu0 %v6717_v0 }
  0xcb   : > { %5371 = vmatmul.mubr.f32.gmra.mxu1 %v385_v60 }
  0xcc   : > { %596 = vmatmul.mubr.f32.gmra.mxu0 %v381_v56  ;;  %5373 = vmatprep.mubr.f32.mxu1 %v386_v61 }
  0xcd   : > { %601 = vmatprep.mubr.f32.mxu0 %v6717_v0 }
  0xcf   : > { %5374 = vmatmul.mubr.f32.gmra.mxu1 %v387_v62 }
  0xd0   : > { %602 = vmatmul.mubr.f32.gmra.mxu0 %v382_v57  ;;  %5376 = vmatprep.mubr.f32.mxu1 %v388_v63  ;;  %v7105_v57 = vrot.slane %v7074_v41, %v480_v53 }
  0xd1   : > { %607 = vmatprep.mubr.f32.mxu0 %v6717_v0 }
  0xd3   : > { %5377 = vmatmul.mubr.f32.gmra.mxu1 %v389_v1 }
  0xd4   : > { %608 = vmatmul.mubr.f32.gmra.mxu0 %v383_v58  ;;  %5411 = vmatprep.mubr.f32.mxu1 %v801_v4 }
  0xd5   : > { %613 = vmatprep.mubr.f32.mxu0 %v6717_v0 }
  0xd8   : > { %614 = vmatmul.mubr.f32.gmra.mxu0 %v384_v59 }
  0xd9   : > { %619 = vmatprep.mubr.f32.mxu0 %v6717_v0 }
  0xdc   : > { %620 = vmatmul.mubr.f32.gmra.mxu0 %v385_v60 }
  0xdd   : > { %625 = vmatprep.mubr.f32.mxu0 %v6717_v0 }
  0xe0   : > { %626 = vmatmul.mubr.f32.gmra.mxu0 %v386_v61 }
  0xe1   : > { %631 = vmatprep.mubr.f32.mxu0 %v6717_v0 }
  0xe4   : > { %632 = vmatmul.mubr.f32.gmra.mxu0 %v387_v62 }
  0xe5   : > { %637 = vmatprep.mubr.f32.mxu0 %v6717_v0 }
  0xe8   : > { %638 = vmatmul.mubr.f32.gmra.mxu0 %v388_v63 }
  0xe9   : > { %643 = vmatprep.mubr.f32.mxu0 %v6717_v0 }
  0xec   : > { %644 = vmatmul.mubr.f32.gmra.mxu0 %v389_v1 }
  0xed   : > { %5449 = vmatprep.mubr.f32.mxu0 %v801_v4 }
 0x170   : > { %v7012_v5 = vpop.f32.mrf.mxu0 }
 0x172   : > { %v7014_v6 = vpop.f32.mrf.mxu0 }
 0x174   : > { %v7016_v7 = vpop.f32.mrf.mxu0 }
 0x176   : > { %v7018_v8 = vpop.f32.mrf.mxu0 }
 0x177   : > { %v7030_v13 = vpop.f32.mrf.mxu1 }
 0x178   : > { %v7020_v9 = vpop.f32.mrf.mxu0 }
 0x179   : > { %v7034_v15 = vpop.f32.mrf.mxu1 }
 0x17a   : > { %v7022_v0 = vpop.f32.mrf.mxu0 }
 0x17b   : > { %v7038_v17 = vpop.f32.mrf.mxu1 }
 0x17c   : > { %v7024_v10 = vpop.f32.mrf.mxu0 }
 0x17d   : > { %v7042_v19 = vpop.f32.mrf.mxu1 }
 0x17e   : > { %v7026_v11 = vpop.f32.mrf.mxu0 }
 0x17f   : > { %v7046_v21 = vpop.f32.mrf.mxu1 }
 0x180   : > { %v7028_v12 = vpop.f32.mrf.mxu0 }
 0x181   : > { %v7050_v23 = vpop.f32.mrf.mxu1 }
 0x182   : > { %v7032_v14 = vpop.f32.mrf.mxu0 }
 0x183   : > { %v5366_v25 = vpop.f32.mrf.mxu1 }
 0x184   : > { %v7036_v16 = vpop.f32.mrf.mxu0 }
 0x185   : > { %v7056_v27 = vpop.f32.mrf.mxu1 }
 0x186   : > { %v7040_v18 = vpop.f32.mrf.mxu0 }
 0x187   : > { %v5369_v29 = vpop.f32.mrf.mxu1 }
 0x188   : > { %v7044_v20 = vpop.f32.mrf.mxu0  ;;  %v7125_v63 = vadd.f32 %v5369_v29, %v7077_v44  ;;  %v7142_v29 = vadd.f32 %v5366_v25, %v7077_v44 }
 0x189   : > { %v756_v32 = vpop.f32.mrf.mxu1 }
 0x18a   : > { %v7048_v22 = vpop.f32.mrf.mxu0  ;;  %9378 = vst [vmem:[#allocation24_spill] sm:$0xff] %v7125_v63  ;;  %v7128_v1 = vadd.f32 %v756_v32, %v7077_v44  ;;  %9380 = vst [vmem:[#allocation26_spill] sm:$0xff] %v7142_v29 }
 0x18b   : > { %v5372_v34 = vpop.f32.mrf.mxu1 }
 0x18c   : > { %v7052_v24 = vpop.f32.mrf.mxu0  ;;  %v7108_v58 = vadd.f32 %v5372_v34, %v7077_v44  ;;  %9379 = vst [vmem:[#allocation25_spill] sm:$0xff] %v7128_v1 }
 0x18d   : > { %v766_v37 = vpop.f32.mrf.mxu1 }
 0x18e   : > { %v7054_v26 = vpop.f32.mrf.mxu0  ;;  %9375 = vst [vmem:[#allocation21_spill] sm:$0xff] %v7108_v58  ;;  %v7111_v59 = vadd.f32 %v766_v37, %v7077_v44  ;;  %v7151_v37 = vadd.f32 %v7056_v27, %v7077_v44 }
 0x18f   : > { %v5375_v40 = vpop.f32.mrf.mxu1 }
 0x190   : > { %v7058_v28 = vpop.f32.mrf.mxu0  ;;  %v7085_v50 = vadd.f32 %v5375_v40, %v7077_v44  ;;  %9376 = vst [vmem:[#allocation22_spill] sm:$0xff] %v7111_v59  ;;  %9381 = vst [vmem:[#allocation27_spill] sm:$0xff] %v7151_v37  ;;  %v7180_v40 = vadd.f32 %v7046_v21, %v7077_v44  ;;  %v7196_v21 = vadd.f32 %v7048_v22, %v7105_v57 }
 0x191   : > { %v776_v43 = vpop.f32.mrf.mxu1  ;;  %v7214_v22 = vadd.f32 %v7032_v14, %v7105_v57  ;;  %v7230_v14 = vadd.f32 %v7054_v26, %v7105_v57  ;;  %v476_v26 = vsub.s32 0, %v7064_v35  ;;  %v7263_v35 = vadd.f32 %v7014_v6, %v7105_v57 }
 0x192   : > { %v7060_v31 = vpop.f32.mrf.mxu0  ;;  %9372 = vst [vmem:[#allocation18_spill] sm:$0xff] %v7085_v50  ;;  %v7096_v54 = vadd.f32 %v776_v43, %v7077_v44  ;;  %9383 = vst [vmem:[#allocation29_spill] sm:$0xff] %v7180_v40  ;;  %v7235_v43 = vadd.f32 %v7042_v19, %v7077_v44  ;;  %v7258_v19 = vadd.f32 %v7030_v13, %v7077_v44 }
 0x193   : > { %v5378_v46 = vpop.f32.mrf.mxu1  ;;  %v7171_v27 = vadd.f32 %v7060_v31, %v7105_v57  ;;  %9386 = vst [vmem:[#allocation32_spill] sm:$0xff] %v7196_v21  ;;  %9388 = vst [vmem:[#allocation34_spill] sm:$0xff] %v7214_v22  ;;  %v7278_v6 = vadd.f32 %v7026_v11, %v7105_v57  ;;  %v7283_v13 = vadd.f32 %v7034_v15, %v7077_v44  ;;  %v441_v11 = vld [vmem:[#allocation8 + $0x8] sm:$0xff] }
 0x194   : > { %v7062_v33 = vpop.f32.mrf.mxu0  ;;  %v7082_v47 = vadd.f32 %v5378_v46, %v7077_v44  ;;  %9374 = vst [vmem:[#allocation20_spill] sm:$0xff] %v7096_v54  ;;  %9390 = vst [vmem:[#allocation36_spill] sm:$0xff] %v7230_v14  ;;  %v7300_v15 = vadd.f32 %v7018_v8, %v7105_v57  ;;  %v443_v46 = vld [vmem:[#allocation8 + $0x18] sm:$0xff] }
 0x195   : > { %v786_v49 = vpop.f32.mrf.mxu1  ;;  %9382 = vst [vmem:[#allocation28_spill] sm:$0xff] %v7171_v27  ;;  %9391 = vst [vmem:[#allocation37_spill] sm:$0xff] %v7235_v43  ;;  %v804_v53 = vmul.f32 %v7009_v2, %v443_v46 }
 0x196   : > { %v7066_v36 = vpop.f32.mrf.mxu0  ;;  %9371 = vst [vmem:[#allocation17_spill] sm:$0xff] %v7082_v47  ;;  %v7088_v51 = vadd.f32 %v786_v49, %v7077_v44  ;;  %5417 = vmatprep.subr.mxu0 %v7082_v47  ;;  %9394 = vst [vmem:[#allocation40_spill] sm:$0xff] %v7258_v19 }
 0x197   : > { %5418 = vmatpush3.msra.mxu0 %v7082_v47  ;;  %9395 = vst [vmem:[#allocation41_spill] sm:$0xff] %v7263_v35  ;;  %9396 = vst [vmem:[#allocation42_spill] sm:$0xff] %v7278_v6 }
 0x198   : > { %v7069_v39 = vpop.f32.mrf.mxu0  ;;  %9373 = vst [vmem:[#allocation19_spill] sm:$0xff] %v7088_v51  ;;  %5419 = vmatprep.subr.mxu0 %v7088_v51  ;;  %9397 = vst [vmem:[#allocation43_spill] sm:$0xff] %v7283_v13 }
 0x199   : > { %5420 = vmatpush3.msra.mxu0 %v7088_v51  ;;  %9398 = vst [vmem:[#allocation44_spill] sm:$0xff] %v7300_v15 }
 0x19a   : > { %v617_v42 = vpop.f32.mrf.mxu0  ;;  %5421 = vmatprep.subr.mxu0 %v7085_v50 }
 0x19b   : > { %5422 = vmatpush3.msra.mxu0 %v7085_v50  ;;  %v7155_v38 = vadd.f32 %v617_v42, %v7105_v57  ;;  %v7191_v42 = vadd.f32 %v7050_v23, %v7077_v44  ;;  %v7208_v23 = vadd.f32 %v7066_v36, %v7105_v57  ;;  %v7223_v36 = vadd.f32 %v7038_v17, %v7077_v44 }
 0x19c   : > { %v7079_v45 = vpop.f32.mrf.mxu0  ;;  %5423 = vmatprep.subr.mxu0 %v7096_v54  ;;  %v7240_v17 = vadd.f32 %v7022_v0, %v7105_v57  ;;  %v7253_v0 = vadd.f32 %v7040_v18, %v7105_v57  ;;  %v7271_v18 = vrot.slane %v7074_v41, %v476_v26  ;;  %v802_v44 = vmul.f32 %v7009_v2, %v441_v11 }
 0x19d   : > { %5424 = vmatpush3.msra.mxu0 %v7096_v54  ;;  %9385 = vst [vmem:[#allocation31_spill] sm:$0xff] %v7191_v42  ;;  %9387 = vst [vmem:[#allocation33_spill] sm:$0xff] %v7208_v23 }
 0x19e   : > { %v623_v48 = vpop.f32.mrf.mxu0  ;;  %5425 = vmatprep.subr.mxu0 %v7108_v58  ;;  %9389 = vst [vmem:[#allocation35_spill] sm:$0xff] %v7223_v36  ;;  %9392 = vst [vmem:[#allocation38_spill] sm:$0xff] %v7240_v17  ;;  %v7288_v41 = vadd.f32 %v7016_v7, %v7271_v18  ;;  %v442_v7 = vld [vmem:[#allocation8 + $0x10] sm:$0xff]  ;;  %v7321_v49 = vadd.f32 %v7024_v10, %v7271_v18  ;;  %v7341_v10 = vadd.f32 %v7036_v16, %v7271_v18 }
 0x19f   : > { %5426 = vmatpush3.msra.mxu0 %v7108_v58  ;;  %v7186_v31 = vadd.f32 %v623_v48, %v7105_v57  ;;  %9393 = vst [vmem:[#allocation39_spill] sm:$0xff] %v7253_v0  ;;  %v803_v8 = vmul.f32 %v7009_v2, %v442_v7  ;;  %v7316_v48 = vadd.f32 %v7012_v5, %v7271_v18 }
 0x1a0   : > { %v7091_v52 = vpop.f32.mrf.mxu0  ;;  %5427 = vmatprep.subr.mxu0 %v7111_v59  ;;  %v7331_v5 = vadd.f32 %v7020_v9, %v7271_v18  ;;  %v7349_v9 = vadd.f32 %v7028_v12, %v7271_v18  ;;  %v7357_v16 = vadd.f32 %v7052_v24, %v7271_v18  ;;  %v7365_v12 = vadd.f32 %v7044_v20, %v7271_v18 }
 0x1a1   : > { %5428 = vmatpush3.msra.mxu0 %v7111_v59  ;;  %9384 = vst [vmem:[#allocation30_spill] sm:$0xff] %v7186_v31  ;;  %v7373_v24 = vadd.f32 %v7062_v33, %v7271_v18  ;;  %v7381_v20 = vadd.f32 %v7058_v28, %v7271_v18  ;;  %v7389_v33 = vadd.f32 %v7079_v45, %v7271_v18 }
 0x1a2   : > { %v629_v55 = vpop.f32.mrf.mxu0  ;;  %5429 = vmatprep.subr.mxu0 %v7125_v63  ;;  %9399 = vst [vmem:[#allocation45_spill] sm:$0xff] %v7349_v9  ;;  %9400 = vst [vmem:[#allocation46_spill] sm:$0xff] %v7365_v12  ;;  %v7397_v28 = vadd.f32 %v7069_v39, %v7271_v18  ;;  %v7413_v39 = vadd.f32 %v7091_v52, %v7271_v18 }
 0x1a3   : > { %v7133_v4 = vadd.f32 %v629_v55, %v7105_v57  ;;  %5430 = vmatpush3.msra.mxu0 %v7125_v63  ;;  %9401 = vst [vmem:[#allocation47_spill] sm:$0xff] %v7373_v24  ;;  %9402 = vst [vmem:[#allocation48_spill] sm:$0xff] %v7381_v20 }
 0x1a4   : > { %v7101_v56 = vpop.f32.mrf.mxu0  ;;  %5431 = vmatprep.subr.mxu0 %v7128_v1  ;;  %9403 = vst [vmem:[#allocation49_spill] sm:$0xff] %v7389_v33  ;;  %9404 = vst [vmem:[#allocation50_spill] sm:$0xff] %v7397_v28 }
 0x1a5   : > { %5432 = vmatpush3.msra.mxu0 %v7128_v1  ;;  %v7405_v45 = vadd.f32 %v7101_v56, %v7271_v18  ;;  %9406 = vst [vmem:[#allocation52_spill] sm:$0xff] %v7413_v39 }
 0x1a6   : > { %v635_v60 = vpop.f32.mrf.mxu0  ;;  %5433 = vmatprep.subr.mxu0 %v7142_v29 }
 0x1a7   : > { %v7116_v61 = vadd.f32 %v635_v60, %v7105_v57  ;;  %5434 = vmatpush3.msra.mxu0 %v7142_v29  ;;  %9405 = vst [vmem:[#allocation51_spill] sm:$0xff] %v7405_v45 }
 0x1a8   : > { %v7119_v62 = vpop.f32.mrf.mxu0  ;;  %5435 = vmatprep.subr.mxu0 %v7151_v37 }
 0x1a9   : > { %9377 = vst [vmem:[#allocation23_spill] sm:$0xff] %v7116_v61  ;;  %1620 = vrot.lane.b32.xlu1 %v7116_v61, %s6718_s12  ;;  %5436 = vmatpush3.msra.mxu0 %v7151_v37  ;;  %v7429_v52 = vadd.f32 %v7119_v62, %v7271_v18 }
 0x1aa   : > { %v641_v3 = vpop.f32.mrf.mxu0  ;;  %5437 = vmatprep.subr.mxu0 %v7180_v40 }
 0x1ab   : > { %v7159_v25 = vadd.f32 %v641_v3, %v7105_v57  ;;  %5438 = vmatpush3.msra.mxu0 %v7180_v40  ;;  %9408 = vst [vmem:[#allocation54_spill] sm:$0xff] %v7429_v52 }
 0x1ac   : > { %v7136_v30 = vpop.f32.mrf.mxu0  ;;  %5439 = vmatprep.subr.mxu0 %v7191_v42 }
 0x1ad   : > { %1618 = vrot.lane.b32.xlu1 %v7133_v4, %s6718_s12  ;;  %5440 = vmatpush3.msra.mxu0 %v7191_v42  ;;  %v7421_v55 = vadd.f32 %v7136_v30, %v7271_v18 }
 0x1ae   : > { %v647_v32 = vpop.f32.mrf.mxu0  ;;  %5441 = vmatprep.subr.mxu0 %v7223_v36 }
 0x1af   : > { %v7147_v34 = vadd.f32 %v647_v32, %v7105_v57  ;;  %5442 = vmatpush3.msra.mxu0 %v7223_v36  ;;  %9407 = vst [vmem:[#allocation53_spill] sm:$0xff] %v7421_v55 }
 0x1b0   : > { %5443 = vmatprep.subr.mxu0 %v7235_v43 }
 0x1b1   : > { %1624 = vrot.lane.b32.xlu0 %v7147_v34, %s6718_s12  ;;  %5379 = vmatprep.subr.mxu1 %v7147_v34 }
 0x1b2   : > { %1614 = vrot.lane.b32.xlu1 %v7155_v38, %s6718_s12  ;;  %5380 = vmatpush3.msra.mxu1 %v7147_v34 }
 0x1b3   : > { %5381 = vmatprep.subr.mxu1 %v7159_v25  ;;  %5444 = vmatpush3.msra.mxu0 %v7235_v43 }
 0x1b4   : > { %5382 = vmatpush3.msra.mxu1 %v7159_v25  ;;  %5445 = vmatprep.subr.mxu0 %v7258_v19 }
 0x1b5   : > { %1622 = vrot.lane.b32.xlu0 %v7159_v25, %s6718_s12  ;;  %5383 = vmatprep.subr.mxu1 %v7116_v61 }
 0x1b6   : > { %1610 = vrot.lane.b32.xlu1 %v7171_v27, %s6718_s12  ;;  %5384 = vmatpush3.msra.mxu1 %v7116_v61 }
 0x1b7   : > { %5385 = vmatprep.subr.mxu1 %v7133_v4  ;;  %5446 = vmatpush3.msra.mxu0 %v7258_v19 }
 0x1b8   : > { %5386 = vmatpush3.msra.mxu1 %v7133_v4  ;;  %5447 = vmatprep.subr.mxu0 %v7283_v13 }
 0x1b9   : > { %1616 = vrot.lane.b32.xlu0 %v7186_v31, %s6718_s12  ;;  %5387 = vmatprep.subr.mxu1 %v7186_v31 }
 0x1ba   : > { %1606 = vrot.lane.b32.xlu1 %v7196_v21, %s6718_s12  ;;  %5388 = vmatpush3.msra.mxu1 %v7186_v31 }
 0x1bb   : > { %5389 = vmatprep.subr.mxu1 %v7155_v38  ;;  %5448 = vmatpush3.msra.mxu0 %v7283_v13 }
 0x1bc   : > { %5390 = vmatpush3.msra.mxu1 %v7155_v38  ;;  %5450 = vmatmul.mubr.f32.vlgmr.msra.gmra.mxu0 %v802_v44 }
 0x1bd   : > { %1612 = vrot.lane.b32.xlu0 %v7208_v23, %s6718_s12  ;;  %5391 = vmatprep.subr.mxu1 %v7208_v23 }
 0x1be   : > { %1602 = vrot.lane.b32.xlu1 %v7214_v22, %s6718_s12  ;;  %5392 = vmatpush3.msra.mxu1 %v7208_v23 }
 0x1bf   : > { %5393 = vmatprep.subr.mxu1 %v7171_v27  ;;  %5452 = vmatprep.mubr.f32.mxu0 %v803_v8 }
 0x1c0   : > { %5394 = vmatpush3.msra.mxu1 %v7171_v27  ;;  %5453 = vmatmul.mubr.f32.gmra.mxu0 %v804_v53 }
 0x1c1   : > { %1608 = vrot.lane.b32.xlu0 %v7230_v14, %s6718_s12  ;;  %5395 = vmatprep.subr.mxu1 %v7230_v14 }
 0x1c2   : > { %1598 = vrot.lane.b32.xlu1 %v7240_v17, %s6718_s12  ;;  %5396 = vmatpush3.msra.mxu1 %v7230_v14 }
 0x1c3   : > { %5397 = vmatprep.subr.mxu1 %v7196_v21 }
 0x1c4   : > { %5398 = vmatpush3.msra.mxu1 %v7196_v21 }
 0x1c5   : > { %1604 = vrot.lane.b32.xlu0 %v7253_v0, %s6718_s12  ;;  %5399 = vmatprep.subr.mxu1 %v7253_v0 }
 0x1c6   : > { %1594 = vrot.lane.b32.xlu1 %v7263_v35, %s6718_s12  ;;  %5400 = vmatpush3.msra.mxu1 %v7253_v0 }
 0x1c7   : > { %5401 = vmatprep.subr.mxu1 %v7214_v22 }
 0x1c8   : > { %5402 = vmatpush3.msra.mxu1 %v7214_v22 }
 0x1c9   : > { %1600 = vrot.lane.b32.xlu0 %v7278_v6, %s6718_s12  ;;  %5403 = vmatprep.subr.mxu1 %v7278_v6 }
 0x1ca   : > { %1878 = vrot.lane.b32.xlu1 %v7288_v41, %s6718_s12  ;;  %5404 = vmatpush3.msra.mxu1 %v7278_v6 }
 0x1cb   : > { %5405 = vmatprep.subr.mxu1 %v7240_v17 }
 0x1cc   : > { %5406 = vmatpush3.msra.mxu1 %v7240_v17 }
 0x1cd   : > { %1596 = vrot.lane.b32.xlu0 %v7300_v15, %s6718_s12  ;;  %5407 = vmatprep.subr.mxu1 %v7300_v15 }
 0x1ce   : > { %2510 = vrot.lane.b32.xlu1 %v7159_v25, %s6719_s16  ;;  %5408 = vmatpush3.msra.mxu1 %v7300_v15 }
 0x1cf   : > { %5409 = vmatprep.subr.mxu1 %v7263_v35 }
 0x1d0   : > { %5410 = vmatpush3.msra.mxu1 %v7263_v35 }
 0x1d1   : > { %5412 = vmatmul.mubr.f32.vlgmr.msra.gmra.mxu1 %v802_v44  ;;  %1876 = vrot.lane.b32.xlu0 %v7316_v48, %s6718_s12 }
 0x1d2   : > { %1882 = vrot.lane.b32.xlu1 %v7321_v49, %s6718_s12  ;;  %5414 = vmatprep.mubr.f32.mxu1 %v803_v8 }
 0x1d5   : > { %5415 = vmatmul.mubr.f32.gmra.mxu1 %v804_v53  ;;  %1880 = vrot.lane.b32.xlu0 %v7331_v5, %s6718_s12 }
 0x1d6   : > { %2506 = vrot.lane.b32.xlu1 %v7133_v4, %s6719_s16  ;;  %5463 = vmatprep.mubr.msk.f32.mxu1 %vm987_vm0, %v7316_v48 }
 0x1d9   : > { %2508 = vrot.lane.b32.xlu0 %v7116_v61, %s6719_s16 }
 0x1da   : > { %1886 = vrot.lane.b32.xlu1 %v7341_v10, %s6718_s12 }
 0x1dd   : > { %1884 = vrot.lane.b32.xlu0 %v7349_v9, %s6718_s12 }
 0x1de   : > { %2502 = vrot.lane.b32.xlu1 %v7155_v38, %s6719_s16 }
 0x1e1   : > { %2504 = vrot.lane.b32.xlu0 %v7186_v31, %s6719_s16 }
 0x1e2   : > { %1890 = vrot.lane.b32.xlu1 %v7357_v16, %s6718_s12 }
 0x1e5   : > { %1888 = vrot.lane.b32.xlu0 %v7365_v12, %s6718_s12 }
 0x1e6   : > { %2498 = vrot.lane.b32.xlu1 %v7171_v27, %s6719_s16 }
 0x1e9   : > { %2500 = vrot.lane.b32.xlu0 %v7208_v23, %s6719_s16 }
 0x1ea   : > { %1894 = vrot.lane.b32.xlu1 %v7373_v24, %s6718_s12 }
 0x1ed   : > { %1892 = vrot.lane.b32.xlu0 %v7381_v20, %s6718_s12 }
 0x1ee   : > { %2494 = vrot.lane.b32.xlu1 %v7196_v21, %s6719_s16 }
 0x1f1   : > { %2496 = vrot.lane.b32.xlu0 %v7230_v14, %s6719_s16 }
 0x1f2   : > { %1898 = vrot.lane.b32.xlu1 %v7389_v33, %s6718_s12 }
 0x1f5   : > { %1896 = vrot.lane.b32.xlu0 %v7397_v28, %s6718_s12 }
 0x1f6   : > { %2490 = vrot.lane.b32.xlu1 %v7214_v22, %s6719_s16 }
 0x1f9   : > { %2492 = vrot.lane.b32.xlu0 %v7253_v0, %s6719_s16 }
 0x1fa   : > { %1902 = vrot.lane.b32.xlu1 %v7405_v45, %s6718_s12 }
 0x1fd   : > { %1900 = vrot.lane.b32.xlu0 %v7413_v39, %s6718_s12 }
 0x1fe   : > { %2486 = vrot.lane.b32.xlu1 %v7240_v17, %s6719_s16 }
 0x201   : > { %2488 = vrot.lane.b32.xlu0 %v7278_v6, %s6719_s16 }
 0x202   : > { %1906 = vrot.lane.b32.xlu1 %v7421_v55, %s6718_s12 }
 0x205   : > { %1904 = vrot.lane.b32.xlu0 %v7429_v52, %s6718_s12 }
 0x206   : > { %2482 = vrot.lane.b32.xlu1 %v7263_v35, %s6719_s16 }
 0x209   : > { %2484 = vrot.lane.b32.xlu0 %v7300_v15, %s6719_s16 }
 0x20a   : > { %1773 = vrot.lane.b32.xlu1 %v7082_v47, %s6718_s12 }
 0x20d   : > { %1771 = vrot.lane.b32.xlu0 %v7088_v51, %s6718_s12 }
 0x20e   : > { %1769 = vrot.lane.b32.xlu1 %v7085_v50, %s6718_s12 }
 0x211   : > { %1765 = vrot.lane.b32.xlu0 %v7108_v58, %s6718_s12 }
 0x212   : > { %1767 = vrot.lane.b32.xlu1 %v7096_v54, %s6718_s12 }
 0x215   : > { %1761 = vrot.lane.b32.xlu0 %v7125_v63, %s6718_s12 }
 0x216   : > { %1763 = vrot.lane.b32.xlu1 %v7111_v59, %s6718_s12 }
 0x219   : > { %1757 = vrot.lane.b32.xlu0 %v7142_v29, %s6718_s12 }
 0x21a   : > { %1759 = vrot.lane.b32.xlu1 %v7128_v1, %s6718_s12 }
 0x21b   : > { %v7455_v56 = vpop.permute.xlu1 %1620 }
 0x21d   : > { %1753 = vrot.lane.b32.xlu0 %v7180_v40, %s6718_s12 }
 0x21e   : > { %1755 = vrot.lane.b32.xlu1 %v7151_v37, %s6718_s12 }
 0x21f   : > { %v7461_v57 = vpop.permute.xlu1 %1618 }
 0x221   : > { %1749 = vrot.lane.b32.xlu0 %v7223_v36, %s6718_s12 }
 0x222   : > { %1751 = vrot.lane.b32.xlu1 %v7191_v42, %s6718_s12 }
 0x223   : > { %v1625_v47 = vpop.permute.xlu0 %1624 }
 0x224   : > { %v7467_v60 = vpop.permute.xlu1 %1614 }
 0x225   : > { %2512 = vrot.lane.b32.xlu0 %v7147_v34, %s6719_s16 }
 0x226   : > { %1747 = vrot.lane.b32.xlu1 %v7235_v43, %s6718_s12 }
 0x228   : > { %v7473_v62 = vpop.permute.xlu1 %1610 }
 0x22c   : > { %v7475_v3 = vpop.permute.xlu1 %1606 }
 0x230   : > { %v7477_v30 = vpop.permute.xlu1 %1602 }
 0x234   : > { %v7479_v32 = vpop.permute.xlu1 %1598 }
 0x238   : > { %v7481_v26 = vpop.permute.xlu1 %1594 }
 0x23c   : > { %v7483_v18 = vpop.permute.xlu1 %1878 }
 0x240   : > { %v7485_v11 = vpop.permute.xlu1 %2510 }
 0x244   : > { %v7487_v7 = vpop.permute.xlu1 %1882 }
 0x248   : > { %v7489_v44 = vpop.permute.xlu1 %2506 }
 0x24c   : > { %v7491_v8 = vpop.permute.xlu1 %1886 }
 0x250   : > { %v7493_v46 = vpop.permute.xlu1 %2502 }
 0x254   : > { %v7495_v53 = vpop.permute.xlu1 %1890 }
 0x258   : > { %v7497_v43 = vpop.permute.xlu1 %2498 }
 0x25c   : > { %v7499_v42 = vpop.permute.xlu1 %1894 }
 0x260   : > { %v7501_v37 = vpop.permute.xlu1 %2494 }
 0x264   : > { %v7503_v36 = vpop.permute.xlu1 %1898 }
 0x268   : > { %v7505_v40 = vpop.permute.xlu1 %2490 }
 0x26c   : > { %v7507_v29 = vpop.permute.xlu1 %1902 }
 0x270   : > { %v7509_v1 = vpop.permute.xlu1 %2486 }
 0x274   : > { %v7511_v35 = vpop.permute.xlu1 %1906 }
 0x278   : > { %v7515_v15 = vpop.permute.xlu1 %2482 }
 0x27c   : > { %v5451_v63 = vpop.f32.mrf.mxu0  ;;  %v7520_v14 = vpop.permute.xlu1 %1773 }
 0x27d   : > { %9409 = vst [vmem:[#allocation55_spill] sm:$0xff] %v7520_v14 }
 0x27e   : > { %v968_v51 = vpop.f32.mrf.mxu0 }
 0x280   : > { %v5454_v54 = vpop.f32.mrf.mxu0 }
 0x281   : > { %5487 = vmatprep.subr.mxu0 %v5454_v54 }
 0x282   : > { %v978_v50 = vpop.f32.mrf.mxu0  ;;  %5488 = vmatpush3.msra.mxu0 %v5454_v54  ;;  %v1623_v54 = vpop.permute.xlu0 %1622 }
 0x283   : > { %5489 = vmatprep.subr.mxu0 %v978_v50 }
 0x284   : > { %5490 = vmatpush3.msra.mxu0 %v978_v50 }
 0x285   : > { %5491 = vmatprep.subr.mxu0 %v5451_v63 }
 0x286   : > { %5492 = vmatpush3.msra.mxu0 %v5451_v63 }
 0x287   : > { %5493 = vmatprep.subr.mxu0 %v968_v51 }
 0x288   : > { %5494 = vmatpush3.msra.mxu0 %v968_v51 }
 0x289   : > { %5557 = vmatprep.subr.mxu0 %v7520_v14 }
 0x291   : > { %v5413_v58 = vpop.f32.mrf.mxu1 }
 0x293   : > { %v883_v59 = vpop.f32.mrf.mxu1 }
 0x295   : > { %v5416_v6 = vpop.f32.mrf.mxu1 }
 0x296   : > { %5455 = vmatprep.subr.msk.mxu1 %vm987_vm0, %v5416_v6 }
 0x297   : > { %v893_v0 = vpop.f32.mrf.mxu1  ;;  %5456 = vmatpush3.xpose.msk.msra.mxu1 %vm987_vm0, %v5416_v6  ;;  %v1617_v6 = vpop.permute.xlu0 %1616 }
 0x298   : > { %5457 = vmatprep.subr.msk.mxu1 %vm987_vm0, %v893_v0 }
 0x29b   : > { %5458 = vmatpush3.xpose.msk.msra.mxu1 %vm987_vm0, %v893_v0  ;;  %v1613_v50 = vpop.permute.xlu0 %1612  ;;  %v445_v0 = vld [vmem:[#allocation8 + $0x28] sm:$0xff] }
 0x29c   : > { %5459 = vmatprep.subr.msk.mxu1 %vm987_vm0, %v5413_v58 }
 0x29f   : > { %5460 = vmatpush3.xpose.msk.msra.mxu1 %vm987_vm0, %v5413_v58 }
 0x2a0   : > { %5461 = vmatprep.subr.msk.mxu1 %vm987_vm0, %v883_v59 }
 0x2a3   : > { %5462 = vmatpush3.xpose.msk.msra.mxu1 %vm987_vm0, %v883_v59  ;;  %v444_v59 = vld [vmem:[#allocation8 + $0x20] sm:$0xff] }
 0x2a4   : > { %5519 = vmatprep.subr.mxu1 %v1625_v47  ;;  %v7567_v63 = vmul.f32 %v7009_v2, %v444_v59 }
 0x2a6   : > { %5464 = vmatmul.mubr.msk.f32.vlgmr.msra.gmra.mxu1 %vm987_vm0, %v7288_v41  ;;  %9410 = vst [vmem:[#allocation56_spill] sm:$0xff] %v7567_v63 }
 0x2a7   : > { %5466 = vmatprep.mubr.msk.f32.mxu1 %vm987_vm0, %v7331_v5  ;;  %5520 = vmatpush3.msra.mxu1 %v1625_v47  ;;  %v1609_v47 = vpop.permute.xlu0 %1608 }
 0x2a8   : > { %5521 = vmatprep.subr.mxu1 %v1623_v54 }
 0x2a9   : > { %5522 = vmatpush3.msra.mxu1 %v1623_v54 }
 0x2aa   : > { %5467 = vmatmul.mubr.msk.f32.gmra.mxu1 %vm987_vm0, %v7321_v49  ;;  %5523 = vmatprep.subr.mxu1 %v7455_v56 }
 0x2ab   : > { %5469 = vmatprep.mubr.msk.f32.mxu1 %vm987_vm0, %v7349_v9  ;;  %5524 = vmatpush3.msra.mxu1 %v7455_v56  ;;  %v1605_v51 = vpop.permute.xlu0 %1604  ;;  %v446_v56 = vld [vmem:[#allocation8 + $0x30] sm:$0xff] }
 0x2ac   : > { %5525 = vmatprep.subr.mxu1 %v7461_v57 }
 0x2ad   : > { %5526 = vmatpush3.msra.mxu1 %v7461_v57 }
 0x2ae   : > { %5470 = vmatmul.mubr.msk.f32.gmra.mxu1 %vm987_vm0, %v7341_v10  ;;  %5527 = vmatprep.subr.mxu1 %v1617_v6 }
 0x2af   : > { %5472 = vmatprep.mubr.msk.f32.mxu1 %vm987_vm0, %v7365_v12  ;;  %5528 = vmatpush3.msra.mxu1 %v1617_v6  ;;  %v1601_v58 = vpop.permute.xlu0 %1600 }
 0x2b0   : > { %5529 = vmatprep.subr.mxu1 %v7467_v60 }
 0x2b1   : > { %5530 = vmatpush3.msra.mxu1 %v7467_v60  ;;  %v7574_v60 = vmul.f32 %v7009_v2, %v445_v0 }
 0x2b2   : > { %5473 = vmatmul.mubr.msk.f32.gmra.mxu1 %vm987_vm0, %v7357_v16  ;;  %5531 = vmatprep.subr.mxu1 %v1613_v50 }
 0x2b3   : > { %5475 = vmatprep.mubr.msk.f32.mxu1 %vm987_vm0, %v7381_v20  ;;  %5532 = vmatpush3.msra.mxu1 %v1613_v50  ;;  %v1597_v57 = vpop.permute.xlu0 %1596  ;;  %9411 = vst [vmem:[#allocation57_spill] sm:$0xff] %v7574_v60 }
 0x2b4   : > { %5533 = vmatprep.subr.mxu1 %v7473_v62 }
 0x2b5   : > { %5534 = vmatpush3.msra.mxu1 %v7473_v62  ;;  %v7578_v62 = vmul.f32 %v7009_v2, %v446_v56 }
 0x2b6   : > { %5476 = vmatmul.mubr.msk.f32.gmra.mxu1 %vm987_vm0, %v7373_v24  ;;  %5535 = vmatprep.subr.mxu1 %v1609_v47 }
 0x2b7   : > { %5478 = vmatprep.mubr.msk.f32.mxu1 %vm987_vm0, %v7397_v28  ;;  %5536 = vmatpush3.msra.mxu1 %v1609_v47  ;;  %9412 = vst [vmem:[#allocation58_spill] sm:$0xff] %v7578_v62 }
 0x2b8   : > { %5537 = vmatprep.subr.mxu1 %v7475_v3 }
 0x2b9   : > { %5538 = vmatpush3.msra.mxu1 %v7475_v3  ;;  %v447_v3 = vld [vmem:[#allocation8 + $0x38] sm:$0xff] }
 0x2ba   : > { %5479 = vmatmul.mubr.msk.f32.gmra.mxu1 %vm987_vm0, %v7389_v33  ;;  %5539 = vmatprep.subr.mxu1 %v1605_v51 }
 0x2bb   : > { %5481 = vmatprep.mubr.msk.f32.mxu1 %vm987_vm0, %v7413_v39  ;;  %5540 = vmatpush3.msra.mxu1 %v1605_v51 }
 0x2bc   : > { %5541 = vmatprep.subr.mxu1 %v7477_v30 }
 0x2bd   : > { %5542 = vmatpush3.msra.mxu1 %v7477_v30  ;;  %v7584_v30 = vmul.f32 %v7009_v2, %v447_v3 }
 0x2be   : > { %5482 = vmatmul.mubr.msk.f32.gmra.mxu1 %vm987_vm0, %v7405_v45  ;;  %5543 = vmatprep.subr.mxu1 %v1601_v58 }
 0x2bf   : > { %5484 = vmatprep.mubr.msk.f32.mxu1 %vm987_vm0, %v7429_v52  ;;  %5544 = vmatpush3.msra.mxu1 %v1601_v58  ;;  %9413 = vst [vmem:[#allocation59_spill] sm:$0xff] %v7584_v30 }
 0x2c0   : > { %5545 = vmatprep.subr.mxu1 %v7479_v32 }
 0x2c1   : > { %5546 = vmatpush3.msra.mxu1 %v7479_v32  ;;  %v1877_v32 = vpop.permute.xlu0 %1876 }
 0x2c2   : > { %5485 = vmatmul.mubr.msk.f32.gmra.mxu1 %vm987_vm0, %v7421_v55  ;;  %5547 = vmatprep.subr.mxu1 %v1597_v57 }
 0x2c3   : > { %5548 = vmatpush3.msra.mxu1 %v1597_v57  ;;  %5551 = vmatprep.mubr.f32.mxu1 %v7567_v63 }
 0x2c4   : > { %5549 = vmatprep.subr.mxu1 %v7481_v26 }
 0x2c5   : > { %5550 = vmatpush3.msra.mxu1 %v7481_v26  ;;  %v7589_v54 = vpop.permute.xlu0 %1880 }
 0x2c6   : > { %5552 = vmatmul.mubr.f32.vlgmr.msra.gmra.mxu1 %v7574_v60 }
 0x2c7   : > { %5554 = vmatprep.mubr.f32.mxu1 %v7578_v62 }
 0x2c9   : > { %v7591_v6 = vpop.permute.xlu0 %2508 }
 0x2ca   : > { %5555 = vmatmul.mubr.f32.gmra.mxu1 %v7584_v30 }
 0x2cb   : > { %5603 = vmatprep.mubr.msk.f32.mxu1 %vm987_vm0, %v1877_v32 }
 0x2cd   : > { %v7593_v50 = vpop.permute.xlu0 %1884 }
 0x2d1   : > { %v7595_v47 = vpop.permute.xlu0 %2504 }
 0x2d5   : > { %v7597_v26 = vpop.permute.xlu0 %1888 }
 0x2d9   : > { %v7599_v51 = vpop.permute.xlu0 %2500 }
 0x2dd   : > { %v7601_v58 = vpop.permute.xlu0 %1892 }
 0x2e1   : > { %v7603_v59 = vpop.permute.xlu0 %2496 }
 0x2e5   : > { %v7605_v0 = vpop.permute.xlu0 %1896 }
 0x2e9   : > { %v7607_v56 = vpop.permute.xlu0 %2492 }
 0x2ed   : > { %v7609_v57 = vpop.permute.xlu0 %1900 }
 0x2f1   : > { %v7611_v3 = vpop.permute.xlu0 %2488 }
 0x2f5   : > { %v7615_v62 = vpop.permute.xlu0 %1904 }
 0x2f9   : > { %v7625_v17 = vpop.permute.xlu0 %2484 }
 0x366   : > { %v5465_v32 = vpop.f32.mrf.mxu1 }
 0x367   : > { %v7613_v30 = vmul.f32 0.17677669, %v5465_v32 }
 0x368   : > { %v1114_v60 = vpop.f32.mrf.mxu1 }
 0x369   : > { %v7617_v63 = vmul.f32 0.17677669, %v1114_v60  ;;  %v1212_v14 = vsel %vm987_vm0, %v7613_v30, -inf }
 0x36a   : > { %1213 = vmax.xlane.f32.xlu1 %v1212_v14  ;;  %v5468_v55 = vpop.f32.mrf.mxu1 }
 0x36b   : > { %v7621_v39 = vmul.f32 0.17677669, %v5468_v55  ;;  %v1209_v28 = vsel %vm987_vm0, %v7617_v63, -inf  ;;  %v7635_v55 = vpop.permute.xlu0 %1771 }
 0x36c   : > { %1210 = vmax.xlane.f32.xlu0 %v1209_v28  ;;  %v1124_v52 = vpop.f32.mrf.mxu1  ;;  %9414 = vst [vmem:[#allocation60_spill] sm:$0xff] %v7635_v55 }
 0x36d   : > { %v7627_v20 = vmul.f32 0.17677669, %v1124_v52  ;;  %v1218_v60 = vsel %vm987_vm0, %v7621_v39, -inf }
 0x36e   : > { %v5471_v32 = vpop.f32.mrf.mxu1 }
 0x36f   : > { %v1215_v14 = vsel %vm987_vm0, %v7627_v20, -inf  ;;  %v7639_v33 = vpop.permute.xlu0 %1765 }
 0x370   : > { %1219 = vmax.xlane.f32.xlu0 %v1218_v60  ;;  %v1134_v45 = vpop.f32.mrf.mxu1  ;;  %9415 = vst [vmem:[#allocation61_spill] sm:$0xff] %v7639_v33 }
 0x372   : > { %v7631_v23 = vpop.f32.mrf.mxu1 }
 0x373   : > { %v7647_v21 = vpop.permute.xlu0 %1761 }
 0x374   : > { %1216 = vmax.xlane.f32.xlu0 %v1215_v14  ;;  %v1144_v28 = vpop.f32.mrf.mxu1  ;;  %9416 = vst [vmem:[#allocation62_spill] sm:$0xff] %v7647_v21 }
 0x376   : > { %v7637_v22 = vpop.f32.mrf.mxu1 }
 0x377   : > { %v7653_v55 = vpop.permute.xlu0 %1757 }
 0x378   : > { %v1154_v12 = vpop.f32.mrf.mxu1  ;;  %9417 = vst [vmem:[#allocation63_spill] sm:$0xff] %v7653_v55 }
 0x37a   : > { %v7641_v52 = vpop.f32.mrf.mxu1 }
 0x37b   : > { %1743 = vrot.lane.b32.xlu1 %v7283_v13, %s6718_s12  ;;  %v7658_v13 = vpop.permute.xlu0 %1753 }
 0x37c   : > { %v1164_v60 = vpop.f32.mrf.mxu1  ;;  %9418 = vst [vmem:[#allocation64_spill] sm:$0xff] %v7658_v13  ;;  %v7669_v13 = vmul.f32 0.17677669, %v1134_v45 }
 0x37e   : > { %v7645_v31 = vpop.f32.mrf.mxu1 }
 0x37f   : > { %v7664_v55 = vpop.permute.xlu0 %1749 }
 0x380   : > { %v1174_v9 = vpop.f32.mrf.mxu1 }
 0x382   : > { %v7649_v24 = vpop.f32.mrf.mxu1 }
 0x384   : > { %v7651_v14 = vpop.f32.mrf.mxu1 }
 0x386   : > { %v5553_v61 = vpop.f32.mrf.mxu1 }
 0x388   : > { %v1708_v27 = vpop.f32.mrf.mxu1 }
 0x38a   : > { %1745 = vrot.lane.b32.xlu0 %v7258_v19, %s6718_s12  ;;  %v5556_v33 = vpop.f32.mrf.mxu1  ;;  %v2513_v19 = vpop.permute.xlu0 %2512 }
 0x38b   : > { %5595 = vmatprep.subr.msk.mxu1 %vm987_vm0, %v5556_v33 }
 0x38c   : > { %5596 = vmatpush3.xpose.msk.msra.mxu1 %vm987_vm0, %v5556_v33  ;;  %v1718_v21 = vpop.f32.mrf.mxu1  ;;  %v7696_v33 = vmul.f32 0.17677669, %v5471_v32 }
 0x38d   : > { %5597 = vmatprep.subr.msk.mxu1 %vm987_vm0, %v1718_v21 }
 0x390   : > { %5598 = vmatpush3.xpose.msk.msra.mxu1 %vm987_vm0, %v1718_v21  ;;  %v7676_v21 = vmul.f32 0.17677669, %v1144_v28 }
 0x391   : > { %5599 = vmatprep.subr.msk.mxu1 %vm987_vm0, %v5553_v61 }
 0x394   : > { %5600 = vmatpush3.xpose.msk.msra.mxu1 %vm987_vm0, %v5553_v61  ;;  %v1221_v61 = vsel %vm987_vm0, %v7669_v13, -inf }
 0x395   : > { %5601 = vmatprep.subr.msk.mxu1 %vm987_vm0, %v1708_v27 }
 0x398   : > { %5602 = vmatpush3.xpose.msk.msra.mxu1 %vm987_vm0, %v1708_v27  ;;  %v7687_v27 = vmul.f32 0.17677669, %v1154_v12  ;;  %v7701_v12 = vmul.f32 0.17677669, %v1164_v60 }
 0x399   : > { %5659 = vmatprep.subr.mxu1 %v2513_v19 }
 0x39a   : > { %v1233_v45 = vsel %vm987_vm0, %v7687_v27, -inf }
 0x39b   : > { %5604 = vmatmul.mubr.msk.f32.vlgmr.msra.gmra.mxu1 %vm987_vm0, %v7483_v18  ;;  %v7711_v18 = vmul.f32 0.17677669, %v7631_v23  ;;  %v7728_v23 = vmul.f32 0.17677669, %v7637_v22 }
 0x39c   : > { %5606 = vmatprep.mubr.msk.f32.mxu1 %vm987_vm0, %v7589_v54  ;;  %5660 = vmatpush3.msra.mxu1 %v2513_v19  ;;  %v1227_v19 = vsel %vm987_vm0, %v7676_v21, -inf  ;;  %v451_v54 = vld [vmem:[#allocation8 + $0x58] sm:$0xff] }
 0x39d   : > { %5661 = vmatprep.subr.mxu1 %v7485_v11  ;;  %v1236_v22 = vsel %vm987_vm0, %v7728_v23, -inf }
 0x39e   : > { %5662 = vmatpush3.msra.mxu1 %v7485_v11  ;;  %v1224_v11 = vsel %vm987_vm0, %v7696_v33, -inf }
 0x39f   : > { %1222 = vmax.xlane.f32.xlu1 %v1221_v61  ;;  %5607 = vmatmul.mubr.msk.f32.gmra.mxu1 %vm987_vm0, %v7487_v7  ;;  %v7718_v7 = vmul.f32 0.17677669, %v1174_v9  ;;  %v1230_v9 = vsel %vm987_vm0, %v7711_v18, -inf }
 0x3a0   : > { %5663 = vmatprep.subr.mxu1 %v7591_v6  ;;  %5609 = vmatprep.mubr.msk.f32.mxu1 %vm987_vm0, %v7593_v50 }
 0x3a1   : > { %5664 = vmatpush3.msra.mxu1 %v7591_v6 }
 0x3a2   : > { %5665 = vmatprep.subr.mxu1 %v7489_v44 }
 0x3a3   : > { %5666 = vmatpush3.msra.mxu1 %v7489_v44  ;;  %1228 = vmax.xlane.f32.xlu1 %v1227_v19  ;;  %v1239_v44 = vsel %vm987_vm0, %v7701_v12, -inf }
 0x3a4   : > { %5610 = vmatmul.mubr.msk.f32.gmra.mxu1 %vm987_vm0, %v7491_v8  ;;  %5667 = vmatprep.subr.mxu1 %v7595_v47 }
 0x3a5   : > { %5612 = vmatprep.mubr.msk.f32.mxu1 %vm987_vm0, %v7597_v26  ;;  %5668 = vmatpush3.msra.mxu1 %v7595_v47  ;;  %v7821_v47 = vmul.f32 0.17677669, %v7651_v14 }
 0x3a6   : > { %5669 = vmatprep.subr.mxu1 %v7493_v46 }
 0x3a7   : > { %5670 = vmatpush3.msra.mxu1 %v7493_v46  ;;  %1234 = vmax.xlane.f32.xlu1 %v1233_v45 }
 0x3a8   : > { %5613 = vmatmul.mubr.msk.f32.gmra.mxu1 %vm987_vm0, %v7495_v53  ;;  %5671 = vmatprep.subr.mxu1 %v7599_v51  ;;  %v7775_v53 = vmul.f32 0.17677669, %v7649_v24 }
 0x3a9   : > { %5615 = vmatprep.mubr.msk.f32.mxu1 %vm987_vm0, %v7601_v58  ;;  %5672 = vmatpush3.msra.mxu1 %v7599_v51  ;;  %v1251_v51 = vsel %vm987_vm0, %v7821_v47, -inf }
 0x3aa   : > { %1225 = vmax.xlane.f32.xlu0 %v1224_v11  ;;  %5673 = vmatprep.subr.mxu1 %v7497_v43 }
 0x3ab   : > { %5674 = vmatpush3.msra.mxu1 %v7497_v43  ;;  %1240 = vmax.xlane.f32.xlu1 %v1239_v44  ;;  %v1245_v43 = vsel %vm987_vm0, %v7718_v7, -inf }
 0x3ac   : > { %5616 = vmatmul.mubr.msk.f32.gmra.mxu1 %vm987_vm0, %v7499_v42  ;;  %5675 = vmatprep.subr.mxu1 %v7603_v59  ;;  %v7743_v42 = vmul.f32 0.17677669, %v7641_v52 }
 0x3ad   : > { %5618 = vmatprep.mubr.msk.f32.mxu1 %vm987_vm0, %v7605_v0  ;;  %5676 = vmatpush3.msra.mxu1 %v7603_v59 }
 0x3ae   : > { %1231 = vmax.xlane.f32.xlu0 %v1230_v9  ;;  %5677 = vmatprep.subr.mxu1 %v7501_v37  ;;  %v1242_v8 = vsel %vm987_vm0, %v7743_v42, -inf }
 0x3af   : > { %5678 = vmatpush3.msra.mxu1 %v7501_v37  ;;  %1246 = vmax.xlane.f32.xlu1 %v1245_v43  ;;  %v448_v37 = vld [vmem:[#allocation8 + $0x40] sm:$0xff] }
 0x3b0   : > { %5619 = vmatmul.mubr.msk.f32.gmra.mxu1 %vm987_vm0, %v7503_v36  ;;  %5679 = vmatprep.subr.mxu1 %v7607_v56  ;;  %v7756_v36 = vmul.f32 0.17677669, %v7645_v31  ;;  %v7764_v46 = vmul.f32 %v7009_v2, %v448_v37 }
 0x3b1   : > { %5621 = vmatprep.mubr.msk.f32.mxu1 %vm987_vm0, %v7609_v57  ;;  %5680 = vmatpush3.msra.mxu1 %v7607_v56 }
 0x3b2   : > { %1237 = vmax.xlane.f32.xlu0 %v1236_v22  ;;  %5681 = vmatprep.subr.mxu1 %v7505_v40  ;;  %9419 = vst [vmem:[#allocation65_spill] sm:$0xff] %v7764_v46 }
 0x3b3   : > { %5682 = vmatpush3.msra.mxu1 %v7505_v40  ;;  %v449_v40 = vld [vmem:[#allocation8 + $0x48] sm:$0xff] }
 0x3b4   : > { %5622 = vmatmul.mubr.msk.f32.gmra.mxu1 %vm987_vm0, %v7507_v29  ;;  %5683 = vmatprep.subr.mxu1 %v7611_v3  ;;  %v450_v29 = vld [vmem:[#allocation8 + $0x50] sm:$0xff]  ;;  %v7772_v31 = vmul.f32 %v7009_v2, %v449_v40 }
 0x3b5   : > { %5624 = vmatprep.mubr.msk.f32.mxu1 %vm987_vm0, %v7615_v62  ;;  %5684 = vmatpush3.msra.mxu1 %v7611_v3  ;;  %v1248_v62 = vsel %vm987_vm0, %v7756_v36, -inf }
 0x3b6   : > { %1243 = vmax.xlane.f32.xlu0 %v1242_v8  ;;  %5685 = vmatprep.subr.mxu1 %v7509_v1  ;;  %9420 = vst [vmem:[#allocation66_spill] sm:$0xff] %v7772_v31 }
 0x3b7   : > { %5686 = vmatpush3.msra.mxu1 %v7509_v1  ;;  %v7783_v1 = vld [vmem:[%s327_s9] ss:$0 sm:$0xff]  ;;  %s6636_s9 = scalar_lea.vmem %s6635_s4, 4096 }
 0x3b8   : > { %5625 = vmatmul.mubr.msk.f32.gmra.mxu1 %vm987_vm0, %v7511_v35  ;;  %5687 = vmatprep.subr.mxu1 %v7625_v17  ;;  %v7786_v35 = vmul.f32 %v7783_v1, %v450_v29  ;;  %v7792_v2 = vmul.f32 %v7783_v1, %v451_v54  ;;  %p6638_p12 = scmp.lt.s32.totalorder %s6636_s9, %s6630_s15 }
 0x3b9   : > { %5688 = vmatpush3.msra.mxu1 %v7625_v17  ;;  %5691 = vmatprep.mubr.f32.mxu1 %v7764_v46  ;;  %v1254_v17 = vsel %vm987_vm0, %v7775_v53, -inf  ;;  %v9435_v46 = vld [vmem:[#allocation38_spill] sm:$0xff] }
 0x3ba   : > { %9421 = vst [vmem:[#allocation67_spill] sm:$0xff] %v7786_v35  ;;  %1249 = vmax.xlane.f32.xlu0 %v1248_v62  ;;  %5689 = vmatprep.subr.mxu1 %v7515_v15  ;;  %9422 = vst [vmem:[#allocation68_spill] sm:$0xff] %v7792_v2  ;;  %p6639_p4 = por %p6638_p12, %p6637_p9 }
 0x3bb   : > { %5690 = vmatpush3.msra.mxu1 %v7515_v15  ;;  %v7804_v15 = vpop.permute.xlu1 %1769 }
 0x3bc   : > { %5692 = vmatmul.mubr.f32.vlgmr.msra.gmra.mxu1 %v7772_v31  ;;  %v9434_v31 = vld [vmem:[#allocation48_spill] sm:$0xff]  ;;  %p6640_p6 = pnand %p6639_p4, %p6633_p3 }
 0x3bd   : > { %5694 = vmatprep.mubr.f32.mxu1 %v7786_v35 }
 0x3be   : > { %1255 = vmax.xlane.f32.xlu0 %v1254_v17 }
 0x3bf   : > { %v7806_v24 = vpop.permute.xlu1 %1767 }
 0x3c0   : > { %5695 = vmatmul.mubr.f32.gmra.mxu1 %v7792_v2  ;;  %2750 = vrot.lane.b32.xlu1 %v7288_v41, %s6719_s16 }
 0x3c3   : > { %v7810_v6 = vpop.permute.xlu1 %1763 }
 0x3c4   : > { %3382 = vrot.lane.b32.xlu1 %v7159_v25, %s6720_s22 }
 0x3c7   : > { %v7816_v50 = vpop.permute.xlu1 %1759 }
 0x3c8   : > { %2754 = vrot.lane.b32.xlu1 %v7321_v49, %s6719_s16 }
 0x3cb   : > { %v7818_v25 = vpop.permute.xlu1 %1755 }
 0x3cf   : > { %v7823_v26 = vpop.permute.xlu1 %1751 }
 0x3d3   : > { %v7827_v58 = vpop.permute.xlu1 %1747 }
 0x3d4   : > { %2748 = vrot.lane.b32.xlu0 %v7316_v48, %s6719_s16 }
 0x3d8   : > { %3384 = vrot.lane.b32.xlu0 %v7147_v34, %s6720_s22 }
 0x3dc   : > { %2752 = vrot.lane.b32.xlu0 %v7331_v5, %s6719_s16 }
 0x3ec   : > { %1252 = vmax.xlane.f32.xlu1 %v1251_v51 }
 0x3f3   : > { %v1214_v59 = vpop.xlane.xlu1 %1213 }
 0x3f4   : > { %v1258_v34 = vsub.f32 %v7613_v30, %v1214_v59 }
 0x3f5   : > { %v1211_v0 = vpop.xlane.xlu0 %1210 }
 0x3f6   : > { %v1275_v56 = vmul.f32 1.442695, %v1258_v34  ;;  %v1257_v57 = vsub.f32 %v7617_v63, %v1211_v0 }
 0x3f7   : > { %v7849_v9 = vpop.permute.xlu1 %1743 }
 0x3f8   : > { %6239 = vpow2.f32 %v1275_v56  ;;  %v1273_v3 = vmul.f32 1.442695, %v1257_v57 }
 0x3f9   : > { %v1220_v32 = vpop.xlane.xlu0 %1219 }
 0x3fa   : > { %6241 = vpow2.f32 %v1273_v3  ;;  %v1260_v28 = vsub.f32 %v7621_v39, %v1220_v32 }
 0x3fc   : > { %v1279_v52 = vmul.f32 1.442695, %v1260_v28 }
 0x3fd   : > { %v1217_v60 = vpop.xlane.xlu0 %1216 }
 0x3fe   : > { %6243 = vpow2.f32 %v1279_v52  ;;  %v1259_v14 = vsub.f32 %v7627_v20, %v1217_v60 }
 0x400   : > { %v1277_v61 = vmul.f32 1.442695, %v1259_v14 }
 0x401   : > { %v7853_v29 = vpop.permute.xlu0 %1745 }
 0x402   : > { %6245 = vpow2.f32 %v1277_v61 }
 0x405   : > { %v7833_v19 = vpop.eup %6239 }
 0x406   : > { %v1308_v30 = vsel %vm987_vm0, %v7833_v19, 0.0 }
 0x407   : > { %v7837_v45 = vpop.eup %6241  ;;  %1309 = vadd.xlane.f32.xlu0 %v1308_v30 }
 0x408   : > { %v1305_v63 = vsel %vm987_vm0, %v7837_v45, 0.0 }
 0x409   : > { %1306 = vadd.xlane.f32.xlu1 %v1305_v63 }
 0x40b   : > { %v7841_v39 = vpop.eup %6243 }
 0x40c   : > { %v1314_v11 = vsel %vm987_vm0, %v7841_v39, 0.0 }
 0x40d   : > { %1315 = vadd.xlane.f32.xlu0 %v1314_v11 }
 0x40f   : > { %v7845_v20 = vpop.eup %6245 }
 0x410   : > { %v1311_v44 = vsel %vm987_vm0, %v7845_v20, 0.0 }
 0x411   : > { %1312 = vadd.xlane.f32.xlu1 %v1311_v44 }
 0x428   : > { %v1223_v43 = vpop.xlane.xlu1 %1222 }
 0x429   : > { %v1261_v22 = vsub.f32 %v7669_v13, %v1223_v43 }
 0x42b   : > { %v1281_v37 = vmul.f32 1.442695, %v1261_v22 }
 0x42c   : > { %v1229_v8 = vpop.xlane.xlu1 %1228 }
 0x42d   : > { %6247 = vpow2.f32 %v1281_v37  ;;  %v1263_v40 = vsub.f32 %v7676_v21, %v1229_v8 }
 0x42f   : > { %v1285_v62 = vmul.f32 1.442695, %v1263_v40 }
 0x430   : > { %v1235_v54 = vpop.xlane.xlu1 %1234 }
 0x431   : > { %6249 = vpow2.f32 %v1285_v62  ;;  %v1265_v17 = vsub.f32 %v7687_v27, %v1235_v54 }
 0x433   : > { %v1289_v51 = vmul.f32 1.442695, %v1265_v17  ;;  %v1226_v59 = vpop.xlane.xlu0 %1225 }
 0x434   : > { %v1262_v34 = vsub.f32 %v7696_v33, %v1226_v59  ;;  %v1241_v0 = vpop.xlane.xlu1 %1240 }
 0x435   : > { %6251 = vpow2.f32 %v1289_v51  ;;  %v1267_v13 = vsub.f32 %v7701_v12, %v1241_v0 }
 0x436   : > { %v1283_v56 = vmul.f32 1.442695, %v1262_v34 }
 0x437   : > { %v1293_v57 = vmul.f32 1.442695, %v1267_v13  ;;  %v1232_v3 = vpop.xlane.xlu0 %1231 }
 0x438   : > { %6253 = vpow2.f32 %v1283_v56  ;;  %v1264_v21 = vsub.f32 %v7711_v18, %v1232_v3  ;;  %v1247_v32 = vpop.xlane.xlu1 %1246 }
 0x439   : > { %6255 = vpow2.f32 %v1293_v57  ;;  %v1269_v28 = vsub.f32 %v7718_v7, %v1247_v32 }
 0x43a   : > { %v7860_v52 = vpop.eup %6247  ;;  %v1287_v27 = vmul.f32 1.442695, %v1264_v21 }
 0x43b   : > { %v1297_v60 = vmul.f32 1.442695, %v1269_v28  ;;  %v1238_v14 = vpop.xlane.xlu0 %1237  ;;  %v1317_v33 = vsel %vm987_vm0, %v7860_v52, 0.0 }
 0x43c   : > { %6257 = vpow2.f32 %v1287_v27  ;;  %v1266_v12 = vsub.f32 %v7728_v23, %v1238_v14  ;;  %1318 = vadd.xlane.f32.xlu1 %v1317_v33 }
 0x43d   : > { %6259 = vpow2.f32 %v1297_v60 }
 0x43e   : > { %v7865_v61 = vpop.eup %6249  ;;  %v1291_v18 = vmul.f32 1.442695, %v1266_v12 }
 0x43f   : > { %v1244_v30 = vpop.xlane.xlu0 %1243  ;;  %v1323_v7 = vsel %vm987_vm0, %v7865_v61, 0.0 }
 0x440   : > { %6261 = vpow2.f32 %v1291_v18  ;;  %v1268_v63 = vsub.f32 %v7743_v42, %v1244_v30  ;;  %1324 = vadd.xlane.f32.xlu1 %v1323_v7 }
 0x442   : > { %v7870_v11 = vpop.eup %6251  ;;  %v1295_v44 = vmul.f32 1.442695, %v1268_v63 }
 0x443   : > { %v1250_v43 = vpop.xlane.xlu0 %1249  ;;  %v1329_v23 = vsel %vm987_vm0, %v7870_v11, 0.0 }
 0x444   : > { %6263 = vpow2.f32 %v1295_v44  ;;  %v1270_v22 = vsub.f32 %v7756_v36, %v1250_v43  ;;  %1330 = vadd.xlane.f32.xlu1 %v1329_v23  ;;  %v9423_v44 = vld [vmem:[#allocation28_spill] sm:$0xff] }
 0x445   : > { %v7875_v37 = vpop.eup %6253 }
 0x446   : > { %v7877_v8 = vpop.eup %6255  ;;  %v1299_v40 = vmul.f32 1.442695, %v1270_v22  ;;  %v1320_v42 = vsel %vm987_vm0, %v7875_v37, 0.0  ;;  %v9425_v22 = vld [vmem:[#allocation47_spill] sm:$0xff] }
 0x447   : > { %1321 = vadd.xlane.f32.xlu0 %v1320_v42  ;;  %v1256_v62 = vpop.xlane.xlu0 %1255  ;;  %v1335_v54 = vsel %vm987_vm0, %v7877_v8, 0.0 }
 0x448   : > { %6265 = vpow2.f32 %v1299_v40  ;;  %v1272_v17 = vsub.f32 %v7775_v53, %v1256_v62  ;;  %1336 = vadd.xlane.f32.xlu1 %v1335_v54  ;;  %v9426_v62 = vld [vmem:[#allocation45_spill] sm:$0xff]  ;;  %v9427_v54 = vld [vmem:[#allocation32_spill] sm:$0xff] }
 0x449   : > { %v7884_v51 = vpop.eup %6257 }
 0x44a   : > { %v7886_v36 = vpop.eup %6259  ;;  %v1303_v59 = vmul.f32 1.442695, %v1272_v17  ;;  %v1326_v34 = vsel %vm987_vm0, %v7884_v51, 0.0 }
 0x44b   : > { %1327 = vadd.xlane.f32.xlu0 %v1326_v34  ;;  %v2749_v0 = vpop.permute.xlu0 %2748  ;;  %v1341_v13 = vsel %vm987_vm0, %v7886_v36, 0.0  ;;  %v9428_v34 = vld [vmem:[#allocation30_spill] sm:$0xff] }
 0x44c   : > { %6267 = vpow2.f32 %v1303_v59  ;;  %5743 = vmatprep.mubr.msk.f32.mxu1 %vm987_vm0, %v2749_v0  ;;  %1342 = vadd.xlane.f32.xlu1 %v1341_v13  ;;  %v9429_v0 = vld [vmem:[#allocation49_spill] sm:$0xff] }
 0x44d   : > { %v7893_v56 = vpop.eup %6261 }
 0x44e   : > { %v1332_v53 = vsel %vm987_vm0, %v7893_v56, 0.0 }
 0x44f   : > { %1333 = vadd.xlane.f32.xlu0 %v1332_v53 }
 0x451   : > { %v7897_v57 = vpop.eup %6263 }
 0x452   : > { %v1338_v3 = vsel %vm987_vm0, %v7897_v57, 0.0 }
 0x453   : > { %1339 = vadd.xlane.f32.xlu0 %v1338_v3  ;;  %v9430_v3 = vld [vmem:[#allocation46_spill] sm:$0xff] }
 0x455   : > { %v7901_v21 = vpop.eup %6265 }
 0x456   : > { %v1344_v32 = vsel %vm987_vm0, %v7901_v21, 0.0 }
 0x457   : > { %1345 = vadd.xlane.f32.xlu0 %v1344_v32  ;;  %v9431_v32 = vld [vmem:[#allocation34_spill] sm:$0xff] }
 0x459   : > { %v7905_v28 = vpop.eup %6267 }
 0x45a   : > { %v1350_v27 = vsel %vm987_vm0, %v7905_v28, 0.0 }
 0x45b   : > { %1351 = vadd.xlane.f32.xlu0 %v1350_v27  ;;  %v7909_v60 = vpop.f32.mrf.mxu1  ;;  %v2751_v27 = vpop.permute.xlu1 %2750 }
 0x45d   : > { %v7911_v14 = vpop.f32.mrf.mxu1  ;;  %3378 = vrot.lane.b32.xlu1 %v7133_v4, %s6720_s22 }
 0x45f   : > { %v7915_v33 = vpop.f32.mrf.mxu1  ;;  %v3383_v35 = vpop.permute.xlu1 %3382 }
 0x461   : > { %v7917_v12 = vpop.f32.mrf.mxu1  ;;  %2758 = vrot.lane.b32.xlu1 %v7341_v10, %s6719_s16 }
 0x464   : > { %v7921_v18 = vpop.f32.mrf.mxu1 }
 0x465   : > { %3374 = vrot.lane.b32.xlu1 %v7155_v38, %s6720_s22  ;;  %v9424_v38 = vld [vmem:[#allocation23_spill] sm:$0xff] }
 0x466   : > { %v7925_v30 = vpop.f32.mrf.mxu1 }
 0x468   : > { %v7927_v7 = vpop.f32.mrf.mxu1 }
 0x469   : > { %2762 = vrot.lane.b32.xlu1 %v7357_v16, %s6719_s16 }
 0x46a   : > { %v7931_v4 = vpop.f32.mrf.mxu1 }
 0x46c   : > { %v7933_v63 = vpop.f32.mrf.mxu1 }
 0x46d   : > { %3370 = vrot.lane.b32.xlu1 %v9423_v44, %s6720_s22 }
 0x46e   : > { %v7937_v43 = vpop.f32.mrf.mxu1 }
 0x470   : > { %v7939_v23 = vpop.f32.mrf.mxu1 }
 0x471   : > { %3380 = vrot.lane.b32.xlu0 %v9424_v38, %s6720_s22  ;;  %2766 = vrot.lane.b32.xlu1 %v9425_v22, %s6719_s16 }
 0x472   : > { %v7945_v40 = vpop.f32.mrf.mxu1 }
 0x474   : > { %v7947_v42 = vpop.f32.mrf.mxu1 }
 0x475   : > { %2756 = vrot.lane.b32.xlu0 %v9426_v62, %s6719_s16  ;;  %3366 = vrot.lane.b32.xlu1 %v9427_v54, %s6720_s22  ;;  %v9432_v54 = vld [vmem:[#allocation33_spill] sm:$0xff] }
 0x476   : > { %v7953_v17 = vpop.f32.mrf.mxu1 }
 0x478   : > { %v7955_v59 = vpop.f32.mrf.mxu1 }
 0x479   : > { %3376 = vrot.lane.b32.xlu0 %v9428_v34, %s6720_s22  ;;  %2770 = vrot.lane.b32.xlu1 %v9429_v0, %s6719_s16  ;;  %v9433_v34 = vld [vmem:[#allocation51_spill] sm:$0xff] }
 0x47a   : > { %v7961_v13 = vpop.f32.mrf.mxu1 }
 0x47c   : > { %v5693_v53 = vpop.f32.mrf.mxu1 }
 0x47d   : > { %2760 = vrot.lane.b32.xlu0 %v9430_v3, %s6719_s16  ;;  %3362 = vrot.lane.b32.xlu1 %v9431_v32, %s6720_s22  ;;  %v3385_v32 = vpop.permute.xlu0 %3384  ;;  %v9440_v3 = vld [vmem:[#allocation39_spill] sm:$0xff] }
 0x47e   : > { %v2596_v44 = vpop.f32.mrf.mxu1 }
 0x480   : > { %v5696_v38 = vpop.f32.mrf.mxu1 }
 0x481   : > { %3372 = vrot.lane.b32.xlu0 %v9432_v54, %s6720_s22  ;;  %5735 = vmatprep.subr.msk.mxu1 %vm987_vm0, %v5696_v38  ;;  %v2755_v54 = vpop.permute.xlu1 %2754  ;;  %v2753_v0 = vpop.permute.xlu0 %2752 }
 0x482   : > { %5736 = vmatpush3.xpose.msk.msra.mxu1 %vm987_vm0, %v5696_v38  ;;  %2774 = vrot.lane.b32.xlu1 %v9433_v34, %s6719_s16  ;;  %v2606_v2 = vpop.f32.mrf.mxu1  ;;  %v9436_v38 = vld [vmem:[#allocation36_spill] sm:$0xff]  ;;  %v9437_v34 = vld [vmem:[#allocation54_spill] sm:$0xff] }
 0x483   : > { %5737 = vmatprep.subr.msk.mxu1 %vm987_vm0, %v2606_v2 }
 0x485   : > { %2764 = vrot.lane.b32.xlu0 %v9434_v31, %s6719_s16  ;;  %v9438_v31 = vld [vmem:[#allocation50_spill] sm:$0xff] }
 0x486   : > { %5738 = vmatpush3.xpose.msk.msra.mxu1 %vm987_vm0, %v2606_v2  ;;  %3358 = vrot.lane.b32.xlu1 %v9435_v46, %s6720_s22  ;;  %v1253_v2 = vpop.xlane.xlu1 %1252  ;;  %v9439_v46 = vld [vmem:[#allocation44_spill] sm:$0xff] }
 0x487   : > { %5739 = vmatprep.subr.msk.mxu1 %vm987_vm0, %v5693_v53 }
 0x489   : > { %3368 = vrot.lane.b32.xlu0 %v9436_v38, %s6720_s22 }
 0x48a   : > { %5740 = vmatpush3.xpose.msk.msra.mxu1 %vm987_vm0, %v5693_v53  ;;  %2776 = vrot.lane.b32.xlu1 %v9437_v34, %s6719_s16  ;;  %v9441_v34 = vld [vmem:[#allocation17_spill] sm:$0xff] }
 0x48b   : > { %5741 = vmatprep.subr.msk.mxu1 %vm987_vm0, %v2596_v44 }
 0x48d   : > { %2768 = vrot.lane.b32.xlu0 %v9438_v31, %s6719_s16 }
 0x48e   : > { %5742 = vmatpush3.xpose.msk.msra.mxu1 %vm987_vm0, %v2596_v44  ;;  %3356 = vrot.lane.b32.xlu1 %v9439_v46, %s6720_s22  ;;  %v9442_v44 = vld [vmem:[#allocation52_spill] sm:$0xff]  ;;  %v9444_v46 = vld [vmem:[#allocation42_spill] sm:$0xff] }
 0x48f   : > { %5799 = vmatprep.subr.mxu1 %v3385_v32 }
 0x490   : > { %v1310_v38 = vpop.xlane.xlu0 %1309 }
 0x491   : > { %3364 = vrot.lane.b32.xlu0 %v9440_v3, %s6720_s22  ;;  %5744 = vmatmul.mubr.msk.f32.vlgmr.msra.gmra.mxu1 %vm987_vm0, %v2751_v27  ;;  %6269 = vrcp.f32 %v1310_v38  ;;  %v9443_v3 = vld [vmem:[#allocation18_spill] sm:$0xff] }
 0x492   : > { %5746 = vmatprep.mubr.msk.f32.mxu1 %vm987_vm0, %v2753_v0  ;;  %5800 = vmatpush3.msra.mxu1 %v3385_v32  ;;  %v1307_v53 = vpop.xlane.xlu1 %1306  ;;  %v9445_v32 = vld [vmem:[#allocation20_spill] sm:$0xff] }
 0x493   : > { %2645 = vrot.lane.b32.xlu1 %v9441_v34, %s6719_s16  ;;  %5801 = vmatprep.subr.mxu1 %v3383_v35  ;;  %6271 = vrcp.f32 %v1307_v53  ;;  %v9447_v53 = vld [vmem:[#allocation22_spill] sm:$0xff] }
 0x494   : > { %5802 = vmatpush3.msra.mxu1 %v3383_v35  ;;  %v9446_v35 = vld [vmem:[#allocation53_spill] sm:$0xff] }
 0x495   : > { %2772 = vrot.lane.b32.xlu0 %v9442_v44, %s6719_s16  ;;  %5747 = vmatmul.mubr.msk.f32.gmra.mxu1 %vm987_vm0, %v2755_v54 }
 0x496   : > { %v1316_v27 = vpop.xlane.xlu0 %1315 }
 0x497   : > { %2641 = vrot.lane.b32.xlu1 %v9443_v3, %s6719_s16  ;;  %6273 = vrcp.f32 %v1316_v27  ;;  %v9448_v3 = vld [vmem:[#allocation41_spill] sm:$0xff] }
 0x499   : > { %3360 = vrot.lane.b32.xlu0 %v9444_v46, %s6720_s22  ;;  %v9449_v46 = vld [vmem:[#allocation19_spill] sm:$0xff] }
 0x49a   : > { %v1313_v0 = vpop.xlane.xlu1 %1312 }
 0x49b   : > { %2639 = vrot.lane.b32.xlu1 %v9445_v32, %s6719_s16  ;;  %6275 = vrcp.f32 %v1313_v0  ;;  %v9450_v0 = vld [vmem:[#allocation55_spill] sm:$0xff]  ;;  %v9451_v32 = vld [vmem:[#allocation60_spill] sm:$0xff] }
 0x49d   : > { %2778 = vrot.lane.b32.xlu0 %v9446_v35, %s6719_s16 }
 0x49e   : > { %v6270_v38 = vpop.eup %6269 }
 0x49f   : > { %2635 = vrot.lane.b32.xlu1 %v9447_v53, %s6719_s16  ;;  %v1370_v27 = vmul.f32 %v6270_v38, %v7833_v19  ;;  %v9454_v38 = vld [vmem:[#allocation24_spill] sm:$0xff] }
 0x4a0   : > { %v6272_v54 = vpop.eup %6271 }
 0x4a1   : > { %3354 = vrot.lane.b32.xlu0 %v9448_v3, %s6720_s22  ;;  %v1369_v34 = vmul.f32 %v6272_v54, %v7837_v45  ;;  %v9452_v45 = vld [vmem:[#allocation21_spill] sm:$0xff] }
 0x4a3   : > { %5495 = vmatprep.mubr.msk.f32.mxu0 %vm987_vm0, %v1369_v34  ;;  %v1271_v34 = vsub.f32 %v7821_v47, %v1253_v2  ;;  %v9455_v47 = vld [vmem:[#allocation62_spill] sm:$0xff]  ;;  %v8071_v2 = vmul.f32 0.17677669, %v7921_v18 }
 0x4a4   : > { %5496 = vmatmul.mubr.msk.f32.vlgmr.msra.gmra.mxu0 %vm987_vm0, %v1370_v27  ;;  %v6274_v53 = vpop.eup %6273  ;;  %v9458_v27 = vld [vmem:[#allocation25_spill] sm:$0xff] }
 0x4a5   : > { %2643 = vrot.lane.b32.xlu0 %v9449_v46, %s6719_s16  ;;  %5558 = vmatpush3.msra.mxu0 %v9450_v0  ;;  %v1372_v3 = vmul.f32 %v6274_v53, %v7841_v39  ;;  %v9457_v39 = vld [vmem:[#allocation64_spill] sm:$0xff]  ;;  %v2128_v54 = vsel %vm987_vm0, %v8071_v2, -inf }
 0x4a6   : > { %5559 = vmatprep.subr.mxu0 %v9451_v32 }
 0x4a7   : > { %5560 = vmatpush3.msra.mxu0 %v9451_v32  ;;  %v9453_v32 = vld [vmem:[#allocation61_spill] sm:$0xff] }
 0x4a8   : > { %v6276_v35 = vpop.eup %6275  ;;  %5561 = vmatprep.subr.mxu0 %v7804_v15 }
 0x4a9   : > { %2637 = vrot.lane.b32.xlu0 %v9452_v45, %s6719_s16  ;;  %5562 = vmatpush3.msra.mxu0 %v7804_v15  ;;  %v1371_v19 = vmul.f32 %v6276_v35, %v7845_v20  ;;  %v1301_v15 = vmul.f32 1.442695, %v1271_v34  ;;  %v8085_v34 = vmul.f32 0.17677669, %v7927_v7 }
 0x4aa   : > { %5563 = vmatprep.subr.mxu0 %v7806_v24 }
 0x4ab   : > { %5564 = vmatpush3.msra.mxu0 %v7806_v24  ;;  %5498 = vmatprep.mubr.msk.f32.mxu0 %vm987_vm0, %v1371_v19  ;;  %6277 = vpow2.f32 %v1301_v15  ;;  %v9456_v24 = vld [vmem:[#allocation63_spill] sm:$0xff]  ;;  %v8090_v15 = vmul.f32 0.17677669, %v7933_v63 }
 0x4ac   : > { %5565 = vmatprep.subr.mxu0 %v9453_v32  ;;  %5499 = vmatmul.mubr.msk.f32.gmra.mxu0 %vm987_vm0, %v1372_v3 }
 0x4ad   : > { %2633 = vrot.lane.b32.xlu0 %v9454_v38, %s6719_s16  ;;  %5566 = vmatpush3.msra.mxu0 %v9453_v32 }
 0x4ae   : > { %5567 = vmatprep.subr.mxu0 %v7810_v6 }
 0x4af   : > { %5568 = vmatpush3.msra.mxu0 %v7810_v6 }
 0x4b0   : > { %5569 = vmatprep.subr.mxu0 %v9455_v47 }
 0x4b1   : > { %5570 = vmatpush3.msra.mxu0 %v9455_v47 }
 0x4b2   : > { %5571 = vmatprep.subr.mxu0 %v7816_v50 }
 0x4b3   : > { %5572 = vmatpush3.msra.mxu0 %v7816_v50 }
 0x4b4   : > { %5573 = vmatprep.subr.mxu0 %v9456_v24 }
 0x4b5   : > { %5574 = vmatpush3.msra.mxu0 %v9456_v24 }
 0x4b6   : > { %5575 = vmatprep.subr.mxu0 %v7818_v25 }
 0x4b7   : > { %5576 = vmatpush3.msra.mxu0 %v7818_v25 }
 0x4b8   : > { %5577 = vmatprep.subr.mxu0 %v9457_v39  ;;  %v8053_v6 = vpop.eup %6277 }
 0x4b9   : > { %5578 = vmatpush3.msra.mxu0 %v9457_v39  ;;  %v1347_v50 = vsel %vm987_vm0, %v8053_v6, 0.0 }
 0x4ba   : > { %5579 = vmatprep.subr.mxu0 %v7823_v26 }
 0x4bb   : > { %5580 = vmatpush3.msra.mxu0 %v7823_v26 }
 0x4bc   : > { %5581 = vmatprep.subr.mxu0 %v7664_v55 }
 0x4bd   : > { %5582 = vmatpush3.msra.mxu0 %v7664_v55  ;;  %v8063_v55 = vmul.f32 0.17677669, %v7911_v14 }
 0x4be   : > { %5583 = vmatprep.subr.mxu0 %v7827_v58 }
 0x4bf   : > { %5584 = vmatpush3.msra.mxu0 %v7827_v58  ;;  %v8066_v58 = vmul.f32 0.17677669, %v7917_v12  ;;  %v2113_v20 = vsel %vm987_vm0, %v8063_v55, -inf  ;;  %v8076_v12 = vmul.f32 0.17677669, %v7925_v30 }
 0x4c0   : > { %5585 = vmatprep.subr.mxu0 %v7853_v29 }
 0x4c1   : > { %5586 = vmatpush3.msra.mxu0 %v7853_v29  ;;  %v2125_v30 = vsel %vm987_vm0, %v8076_v12, -inf }
 0x4c2   : > { %5587 = vmatprep.subr.mxu0 %v7849_v9 }
 0x4c3   : > { %1348 = vadd.xlane.f32.xlu1 %v1347_v50  ;;  %5588 = vmatpush3.msra.mxu0 %v7849_v9  ;;  %v2119_v9 = vsel %vm987_vm0, %v8066_v58, -inf  ;;  %v8095_v50 = vmul.f32 0.17677669, %v7939_v23  ;;  %v8104_v23 = vmul.f32 0.17677669, %v7947_v42 }
 0x4c4   : > { %v8115_v42 = vmul.f32 0.17677669, %v7955_v59 }
 0x4c5   : > { %v1319_v25 = vpop.xlane.xlu1 %1318 }
 0x4c6   : > { %6279 = vrcp.f32 %v1319_v25  ;;  %v2140_v25 = vsel %vm987_vm0, %v8090_v15, -inf  ;;  %v2158_v59 = vsel %vm987_vm0, %v8115_v42, -inf }
 0x4c9   : > { %v1325_v26 = vpop.xlane.xlu1 %1324 }
 0x4ca   : > { %6281 = vrcp.f32 %v1325_v26 }
 0x4cc   : > { %2114 = vmax.xlane.f32.xlu0 %v2113_v20 }
 0x4cd   : > { %v1331_v29 = vpop.xlane.xlu1 %1330 }
 0x4d0   : > { %v1322_v35 = vpop.xlane.xlu0 %1321  ;;  %2120 = vmax.xlane.f32.xlu0 %v2119_v9 }
 0x4d1   : > { %6283 = vrcp.f32 %v1322_v35  ;;  %v1337_v14 = vpop.xlane.xlu1 %1336 }
 0x4d2   : > { %6285 = vrcp.f32 %v1331_v29 }
 0x4d3   : > { %v6280_v53 = vpop.eup %6279 }
 0x4d4   : > { %2631 = vrot.lane.b32.xlu1 %v9458_v27, %s6719_s16  ;;  %v1328_v18 = vpop.xlane.xlu0 %1327  ;;  %2129 = vmax.xlane.f32.xlu0 %v2128_v54  ;;  %v1373_v0 = vmul.f32 %v6280_v53, %v7860_v52  ;;  %v2134_v52 = vsel %vm987_vm0, %v8085_v34, -inf }
 0x4d5   : > { %6287 = vrcp.f32 %v1328_v18  ;;  %v1343_v19 = vpop.xlane.xlu1 %1342 }
 0x4d6   : > { %5501 = vmatprep.mubr.msk.f32.mxu0 %vm987_vm0, %v1373_v0  ;;  %6289 = vrcp.f32 %v1337_v14  ;;  %v2146_v14 = vsel %vm987_vm0, %v8095_v50, -inf }
 0x4d7   : > { %v6282_v24 = vpop.eup %6281 }
 0x4d8   : > { %v1334_v3 = vpop.xlane.xlu0 %1333  ;;  %2126 = vmax.xlane.f32.xlu0 %v2125_v30  ;;  %v1375_v20 = vmul.f32 %v6282_v24, %v7865_v61 }
 0x4d9   : > { %6291 = vrcp.f32 %v1334_v3  ;;  %v3379_v32 = vpop.permute.xlu1 %3378 }
 0x4da   : > { %6293 = vrcp.f32 %v1343_v19  ;;  %v2152_v19 = vsel %vm987_vm0, %v8104_v23, -inf }
 0x4dc   : > { %v1340_v47 = vpop.xlane.xlu0 %1339  ;;  %2135 = vmax.xlane.f32.xlu0 %v2134_v52 }
 0x4dd   : > { %6295 = vrcp.f32 %v1340_v47  ;;  %v2759_v7 = vpop.permute.xlu1 %2758 }
 0x4de   : > { %v6284_v39 = vpop.eup %6283 }
 0x4df   : > { %v1374_v26 = vmul.f32 %v6284_v39, %v7875_v37  ;;  %v6286_v29 = vpop.eup %6285 }
 0x4e0   : > { %v1346_v63 = vpop.xlane.xlu0 %1345  ;;  %2141 = vmax.xlane.f32.xlu0 %v2140_v25  ;;  %v1377_v61 = vmul.f32 %v6286_v29, %v7870_v11 }
 0x4e1   : > { %6297 = vrcp.f32 %v1346_v63  ;;  %5502 = vmatmul.mubr.msk.f32.gmra.mxu0 %vm987_vm0, %v1374_v26  ;;  %v3375_v9 = vpop.permute.xlu1 %3374 }
 0x4e2   : > { %v6288_v35 = vpop.eup %6287  ;;  %5504 = vmatprep.mubr.msk.f32.mxu0 %vm987_vm0, %v1375_v20 }
 0x4e3   : > { %v1376_v37 = vmul.f32 %v6288_v35, %v7884_v51  ;;  %v6290_v54 = vpop.eup %6289 }
 0x4e4   : > { %v8109_v53 = vpop.xlane.xlu0 %1351  ;;  %2147 = vmax.xlane.f32.xlu0 %v2146_v14  ;;  %v1379_v3 = vmul.f32 %v6290_v54, %v7877_v8  ;;  %v9459_v54 = vld [vmem:[#allocation26_spill] sm:$0xff] }
 0x4e5   : > { %5505 = vmatmul.mubr.msk.f32.gmra.mxu0 %vm987_vm0, %v1376_v37  ;;  %v2763_v18 = vpop.permute.xlu1 %2762  ;;  %6299 = vrcp.f32 %v8109_v53 }
 0x4e6   : > { %v6292_v0 = vpop.eup %6291  ;;  %5507 = vmatprep.mubr.msk.f32.mxu0 %vm987_vm0, %v1377_v61 }
 0x4e7   : > { %v1378_v51 = vmul.f32 %v6292_v0, %v7893_v56  ;;  %v6294_v11 = vpop.eup %6293 }
 0x4e8   : > { %v3381_v30 = vpop.permute.xlu0 %3380  ;;  %2153 = vmax.xlane.f32.xlu0 %v2152_v19  ;;  %v1381_v8 = vmul.f32 %v6294_v11, %v7886_v36  ;;  %v8134_v36 = vmul.f32 0.17677669, %v7909_v60  ;;  %v8144_v60 = vmul.f32 0.17677669, %v7931_v4  ;;  %v9460_v19 = vld [vmem:[#allocation29_spill] sm:$0xff]  ;;  %v9461_v11 = vld [vmem:[#allocation35_spill] sm:$0xff] }
 0x4e9   : > { %5508 = vmatmul.mubr.msk.f32.gmra.mxu0 %vm987_vm0, %v1378_v51  ;;  %5803 = vmatprep.subr.mxu1 %v3381_v30  ;;  %v3371_v52 = vpop.permute.xlu1 %3370  ;;  %v8167_v51 = vmul.f32 0.17677669, %v7953_v17 }
 0x4ea   : > { %v6296_v47 = vpop.eup %6295  ;;  %5510 = vmatprep.mubr.msk.f32.mxu0 %vm987_vm0, %v1379_v3  ;;  %5804 = vmatpush3.msra.mxu1 %v3381_v30  ;;  %v2131_v37 = vsel %vm987_vm0, %v8144_v60, -inf }
 0x4eb   : > { %5805 = vmatprep.subr.mxu1 %v3379_v32  ;;  %v1380_v24 = vmul.f32 %v6296_v47, %v7897_v57 }
 0x4ec   : > { %v2757_v56 = vpop.permute.xlu0 %2756  ;;  %2159 = vmax.xlane.f32.xlu0 %v2158_v59  ;;  %5806 = vmatpush3.msra.mxu1 %v3379_v32  ;;  %v452_v59 = vld [vmem:[#allocation8 + $0x60] sm:$0xff] }
 0x4ed   : > { %5511 = vmatmul.mubr.msk.f32.gmra.mxu0 %vm987_vm0, %v1380_v24  ;;  %5749 = vmatprep.mubr.msk.f32.mxu1 %vm987_vm0, %v2757_v56  ;;  %v2767_v39 = vpop.permute.xlu1 %2766  ;;  %v8179_v56 = vmul.f32 %v7783_v1, %v452_v59 }
 0x4ee   : > { %v6298_v25 = vpop.eup %6297  ;;  %5513 = vmatprep.mubr.msk.f32.mxu0 %vm987_vm0, %v1381_v8  ;;  %5750 = vmatmul.mubr.msk.f32.gmra.mxu1 %vm987_vm0, %v2759_v7  ;;  %v8139_v7 = vmul.f32 0.17677669, %v7915_v33  ;;  %v8151_v33 = vmul.f32 0.17677669, %v7937_v43 }
 0x4ef   : > { %v1382_v26 = vmul.f32 %v6298_v25, %v7901_v21  ;;  %v2116_v21 = vsel %vm987_vm0, %v8134_v36, -inf  ;;  %9462 = vst [vmem:[#allocation28_spill] sm:$0xff] %v8179_v56  ;;  %v453_v25 = vld [vmem:[#allocation8 + $0x68] sm:$0xff] }
 0x4f0   : > { %v3377_v63 = vpop.permute.xlu0 %3376  ;;  %v2137_v0 = vsel %vm987_vm0, %v8151_v33, -inf }
 0x4f1   : > { %5514 = vmatmul.mubr.msk.f32.gmra.mxu0 %vm987_vm0, %v1382_v26  ;;  %5807 = vmatprep.subr.mxu1 %v3377_v63  ;;  %v3367_v57 = vpop.permute.xlu1 %3366  ;;  %v454_v26 = vld [vmem:[#allocation8 + $0x70] sm:$0xff] }
 0x4f2   : > { %5808 = vmatpush3.msra.mxu1 %v3377_v63  ;;  %v8184_v63 = vmul.f32 %v7783_v1, %v453_v25 }
 0x4f3   : > { %5809 = vmatprep.subr.mxu1 %v3375_v9 }
 0x4f4   : > { %v2761_v32 = vpop.permute.xlu0 %2760  ;;  %5810 = vmatpush3.msra.mxu1 %v3375_v9  ;;  %v2122_v9 = vsel %vm987_vm0, %v8139_v7, -inf  ;;  %9463 = vst [vmem:[#allocation23_spill] sm:$0xff] %v8184_v63 }
 0x4f5   : > { %5752 = vmatprep.mubr.msk.f32.mxu1 %vm987_vm0, %v2761_v32  ;;  %v2771_v20 = vpop.permute.xlu1 %2770  ;;  %v8187_v32 = vmul.f32 %v7783_v1, %v454_v26 }
 0x4f6   : > { %5753 = vmatmul.mubr.msk.f32.gmra.mxu1 %vm987_vm0, %v2763_v18  ;;  %v8158_v18 = vmul.f32 0.17677669, %v7945_v40 }
 0x4f7   : > { %9464 = vst [vmem:[#allocation47_spill] sm:$0xff] %v8187_v32 }
 0x4f8   : > { %2117 = vmax.xlane.f32.xlu1 %v2116_v21  ;;  %v3373_v29 = vpop.permute.xlu0 %3372  ;;  %v2143_v40 = vsel %vm987_vm0, %v8158_v18, -inf }
 0x4f9   : > { %5811 = vmatprep.subr.mxu1 %v3373_v29  ;;  %v3363_v35 = vpop.permute.xlu1 %3362 }
 0x4fa   : > { %5812 = vmatpush3.msra.mxu1 %v3373_v29  ;;  %v9466_v29 = vld [vmem:[#allocation27_spill] sm:$0xff] }
 0x4fb   : > { %5813 = vmatprep.subr.mxu1 %v3371_v52 }
 0x4fc   : > { %2123 = vmax.xlane.f32.xlu1 %v2122_v9  ;;  %v2765_v14 = vpop.permute.xlu0 %2764  ;;  %5814 = vmatpush3.msra.mxu1 %v3371_v52  ;;  %v2149_v52 = vsel %vm987_vm0, %v8167_v51, -inf  ;;  %v9467_v9 = vld [vmem:[#allocation31_spill] sm:$0xff] }
 0x4fd   : > { %5755 = vmatprep.mubr.msk.f32.mxu1 %vm987_vm0, %v2765_v14  ;;  %v2775_v61 = vpop.permute.xlu1 %2774 }
 0x4fe   : > { %5756 = vmatmul.mubr.msk.f32.gmra.mxu1 %vm987_vm0, %v2767_v39 }
 0x500   : > { %2132 = vmax.xlane.f32.xlu1 %v2131_v37  ;;  %v3369_v4 = vpop.permute.xlu0 %3368 }
 0x501   : > { %5815 = vmatprep.subr.mxu1 %v3369_v4  ;;  %v3359_v30 = vpop.permute.xlu1 %3358 }
 0x502   : > { %2629 = vrot.lane.b32.xlu0 %v9459_v54, %s6719_s16  ;;  %5816 = vmatpush3.msra.mxu1 %v3369_v4 }
 0x503   : > { %5817 = vmatprep.subr.mxu1 %v3367_v57 }
 0x504   : > { %2138 = vmax.xlane.f32.xlu1 %v2137_v0  ;;  %v2769_v43 = vpop.permute.xlu0 %2768  ;;  %5818 = vmatpush3.msra.mxu1 %v3367_v57 }
 0x505   : > { %5758 = vmatprep.mubr.msk.f32.mxu1 %vm987_vm0, %v2769_v43  ;;  %v2777_v17 = vpop.permute.xlu1 %2776 }
 0x506   : > { %2625 = vrot.lane.b32.xlu0 %v9460_v19, %s6719_s16  ;;  %5759 = vmatmul.mubr.msk.f32.gmra.mxu1 %vm987_vm0, %v2771_v20  ;;  %v455_v20 = vld [vmem:[#allocation8 + $0x78] sm:$0xff] }
 0x507   : > { %v8191_v21 = vmul.f32 %v7783_v1, %v455_v20  ;;  %v8208_v1 = vmul.f32 0.17677669, %v7961_v13 }
 0x508   : > { %2144 = vmax.xlane.f32.xlu1 %v2143_v40  ;;  %v3365_v3 = vpop.permute.xlu0 %3364 }
 0x509   : > { %5819 = vmatprep.subr.mxu1 %v3365_v3  ;;  %v3357_v8 = vpop.permute.xlu1 %3356  ;;  %9465 = vst [vmem:[#allocation45_spill] sm:$0xff] %v8191_v21  ;;  %v2155_v43 = vsel %vm987_vm0, %v8208_v1, -inf }
 0x50a   : > { %2621 = vrot.lane.b32.xlu0 %v9461_v11, %s6719_s16  ;;  %5820 = vmatpush3.msra.mxu1 %v3365_v3 }
 0x50b   : > { %5821 = vmatprep.subr.mxu1 %v3363_v35 }
 0x50c   : > { %2150 = vmax.xlane.f32.xlu1 %v2149_v52  ;;  %v2773_v47 = vpop.permute.xlu0 %2772  ;;  %5822 = vmatpush3.msra.mxu1 %v3363_v35  ;;  %v9468_v35 = vld [vmem:[#allocation37_spill] sm:$0xff] }
 0x50d   : > { %5761 = vmatprep.mubr.msk.f32.mxu1 %vm987_vm0, %v2773_v47  ;;  %v8201_v14 = vpop.permute.xlu1 %2645 }
 0x50e   : > { %5762 = vmatmul.mubr.msk.f32.gmra.mxu1 %vm987_vm0, %v2775_v61 }
 0x50f   : > { %5764 = vmatprep.mubr.msk.f32.mxu1 %vm987_vm0, %v2777_v17  ;;  %v6300_v17 = vpop.eup %6299 }
 0x510   : > { %v3361_v24 = vpop.permute.xlu0 %3360  ;;  %v1384_v26 = vmul.f32 %v6300_v17, %v7905_v28 }
 0x511   : > { %5823 = vmatprep.subr.mxu1 %v3361_v24  ;;  %v8203_v37 = vpop.permute.xlu1 %2641 }
 0x512   : > { %5824 = vmatpush3.msra.mxu1 %v3361_v24 }
 0x513   : > { %5825 = vmatprep.subr.mxu1 %v3359_v30 }
 0x514   : > { %v2779_v39 = vpop.permute.xlu0 %2778  ;;  %5826 = vmatpush3.msra.mxu1 %v3359_v30 }
 0x515   : > { %5765 = vmatmul.mubr.msk.f32.gmra.mxu1 %vm987_vm0, %v2779_v39  ;;  %5827 = vmatprep.subr.mxu1 %v3357_v8  ;;  %v8205_v4 = vpop.permute.xlu1 %2639 }
 0x516   : > { %5828 = vmatpush3.msra.mxu1 %v3357_v8  ;;  %5831 = vmatprep.mubr.f32.mxu1 %v8179_v56  ;;  %v9477_v56 = vld [vmem:[#allocation49_spill] sm:$0xff] }
 0x518   : > { %v3355_v57 = vpop.permute.xlu0 %3354 }
 0x519   : > { %5829 = vmatprep.subr.mxu1 %v3355_v57  ;;  %v8212_v0 = vpop.permute.xlu1 %2635 }
 0x51a   : > { %5830 = vmatpush3.msra.mxu1 %v3355_v57  ;;  %v9469_v57 = vld [vmem:[#allocation56_spill] sm:$0xff] }
 0x51b   : > { %5832 = vmatmul.mubr.f32.vlgmr.msra.gmra.mxu1 %v8184_v63 }
 0x51c   : > { %5834 = vmatprep.mubr.f32.mxu1 %v8187_v32  ;;  %v8210_v61 = vpop.permute.xlu0 %2643 }
 0x51d   : > { %2627 = vrot.lane.b32.xlu1 %v9466_v29, %s6719_s16 }
 0x51f   : > { %5835 = vmatmul.mubr.f32.gmra.mxu1 %v8191_v21  ;;  %v9476_v21 = vld [vmem:[#allocation48_spill] sm:$0xff] }
 0x520   : > { %v8216_v40 = vpop.permute.xlu0 %2637 }
 0x521   : > { %2623 = vrot.lane.b32.xlu1 %v9467_v9, %s6719_s16 }
 0x524   : > { %v8219_v3 = vpop.permute.xlu0 %2633 }
 0x525   : > { %2619 = vrot.lane.b32.xlu1 %v9468_v35, %s6719_s16 }
 0x549   : > { %2156 = vmax.xlane.f32.xlu1 %v2155_v43  ;;  %v9470_v43 = vld [vmem:[#allocation57_spill] sm:$0xff] }
 0x54c   : > { %v1349_v30 = vpop.xlane.xlu1 %1348 }
 0x54d   : > { %6301 = vrcp.f32 %v1349_v30  ;;  %v9471_v30 = vld [vmem:[#allocation58_spill] sm:$0xff] }
 0x555   : > { %v2115_v52 = vpop.xlane.xlu0 %2114 }
 0x556   : > { %v2161_v13 = vsub.f32 %v8063_v55, %v2115_v52 }
 0x558   : > { %v2177_v47 = vmul.f32 1.442695, %v2161_v13 }
 0x559   : > { %v2121_v59 = vpop.xlane.xlu0 %2120 }
 0x55a   : > { %v6302_v24 = vpop.eup %6301  ;;  %6303 = vpow2.f32 %v2177_v47  ;;  %v2163_v8 = vsub.f32 %v8066_v58, %v2121_v59  ;;  %v8244_v59 = vpop.permute.xlu1 %2631 }
 0x55b   : > { %v1383_v39 = vmul.f32 %v6302_v24, %v8053_v6  ;;  %v9472_v6 = vld [vmem:[#allocation59_spill] sm:$0xff] }
 0x55c   : > { %v2181_v25 = vmul.f32 1.442695, %v2163_v8 }
 0x55d   : > { %5516 = vmatprep.mubr.msk.f32.mxu0 %vm987_vm0, %v1383_v39  ;;  %v2130_v53 = vpop.xlane.xlu0 %2129 }
 0x55e   : > { %6305 = vpow2.f32 %v2181_v25  ;;  %5517 = vmatmul.mubr.msk.f32.gmra.mxu0 %vm987_vm0, %v1384_v26  ;;  %v2166_v26 = vsub.f32 %v8071_v2, %v2130_v53 }
 0x55f   : > { %5589 = vmatprep.mubr.f32.mxu0 %v9469_v57 }
 0x561   : > { %v2127_v55 = vpop.xlane.xlu0 %2126 }
 0x562   : > { %v2165_v20 = vsub.f32 %v8076_v12, %v2127_v55  ;;  %5590 = vmatmul.mubr.f32.vlgmr.msra.gmra.mxu0 %v9470_v43  ;;  %v2187_v43 = vmul.f32 1.442695, %v2166_v26 }
 0x563   : > { %5592 = vmatprep.mubr.f32.mxu0 %v9471_v30 }
 0x564   : > { %v2185_v58 = vmul.f32 1.442695, %v2165_v20 }
 0x565   : > { %v2136_v24 = vpop.xlane.xlu0 %2135 }
 0x566   : > { %6307 = vpow2.f32 %v2185_v58  ;;  %5593 = vmatmul.mubr.f32.gmra.mxu0 %v9472_v6  ;;  %v2168_v30 = vsub.f32 %v8085_v34, %v2136_v24 }
 0x567   : > { %v8232_v28 = vpop.eup %6303 }
 0x568   : > { %v2209_v52 = vsel %vm987_vm0, %v8232_v28, 0.0 }
 0x569   : > { %2210 = vadd.xlane.f32.xlu1 %v2209_v52  ;;  %v2142_v25 = vpop.xlane.xlu0 %2141 }
 0x56b   : > { %v8236_v13 = vpop.eup %6305 }
 0x56c   : > { %v2215_v47 = vsel %vm987_vm0, %v8236_v13, 0.0 }
 0x56d   : > { %2216 = vadd.xlane.f32.xlu1 %v2215_v47  ;;  %v2148_v6 = vpop.xlane.xlu0 %2147 }
 0x573   : > { %v8240_v12 = vpop.eup %6307 }
 0x574   : > { %v2221_v17 = vsel %vm987_vm0, %v8240_v12, 0.0 }
 0x575   : > { %2222 = vadd.xlane.f32.xlu1 %v2221_v17  ;;  %v2191_v17 = vmul.f32 1.442695, %v2168_v30 }
 0x581   : > { %v2118_v8 = vpop.xlane.xlu1 %2117 }
 0x582   : > { %v2162_v39 = vsub.f32 %v8134_v36, %v2118_v8  ;;  %v2170_v36 = vsub.f32 %v8090_v15, %v2142_v25 }
 0x584   : > { %v2179_v57 = vmul.f32 1.442695, %v2162_v39  ;;  %v2154_v39 = vpop.xlane.xlu0 %2153  ;;  %v2195_v34 = vmul.f32 1.442695, %v2170_v36 }
 0x585   : > { %v2124_v55 = vpop.xlane.xlu1 %2123  ;;  %v2174_v15 = vsub.f32 %v8104_v23, %v2154_v39 }
 0x586   : > { %6309 = vpow2.f32 %v2179_v57  ;;  %v2164_v20 = vsub.f32 %v8139_v7, %v2124_v55  ;;  %v2172_v7 = vsub.f32 %v8095_v50, %v2148_v6 }
 0x588   : > { %v2183_v58 = vmul.f32 1.442695, %v2164_v20  ;;  %v2199_v55 = vmul.f32 1.442695, %v2172_v7  ;;  %v2160_v20 = vpop.xlane.xlu0 %2159 }
 0x589   : > { %v2133_v52 = vpop.xlane.xlu1 %2132 }
 0x58a   : > { %6311 = vpow2.f32 %v2183_v58  ;;  %v2167_v47 = vsub.f32 %v8144_v60, %v2133_v52  ;;  %v2176_v58 = vsub.f32 %v8115_v42, %v2160_v20 }
 0x58b   : > { %6313 = vpow2.f32 %v2187_v43 }
 0x58c   : > { %v2189_v8 = vmul.f32 1.442695, %v2167_v47 }
 0x58d   : > { %v2139_v2 = vpop.xlane.xlu1 %2138 }
 0x58e   : > { %6315 = vpow2.f32 %v2189_v8  ;;  %v2169_v53 = vsub.f32 %v8151_v33, %v2139_v2 }
 0x58f   : > { %6317 = vpow2.f32 %v2191_v17  ;;  %v2207_v17 = vmul.f32 1.442695, %v2176_v58 }
 0x590   : > { %v2193_v24 = vmul.f32 1.442695, %v2169_v53 }
 0x591   : > { %v2145_v26 = vpop.xlane.xlu1 %2144 }
 0x592   : > { %6319 = vpow2.f32 %v2193_v24  ;;  %v2171_v57 = vsub.f32 %v8158_v18, %v2145_v26  ;;  %v2203_v18 = vmul.f32 1.442695, %v2174_v15 }
 0x593   : > { %v8255_v60 = vpop.eup %6309  ;;  %6321 = vpow2.f32 %v2195_v34 }
 0x594   : > { %v2197_v25 = vmul.f32 1.442695, %v2171_v57  ;;  %v2212_v33 = vsel %vm987_vm0, %v8255_v60, 0.0 }
 0x595   : > { %2213 = vadd.xlane.f32.xlu0 %v2212_v33  ;;  %v2151_v50 = vpop.xlane.xlu1 %2150  ;;  %v8300_v33 = vpop.f32.mrf.mxu1 }
 0x596   : > { %6323 = vpow2.f32 %v2197_v25  ;;  %v2173_v43 = vsub.f32 %v8167_v51, %v2151_v50 }
 0x597   : > { %v8261_v30 = vpop.eup %6311  ;;  %6325 = vpow2.f32 %v2199_v55 }
 0x598   : > { %v2201_v6 = vmul.f32 1.442695, %v2173_v43  ;;  %v2218_v23 = vsel %vm987_vm0, %v8261_v30, 0.0  ;;  %v8266_v52 = vpop.eup %6313  ;;  %v8306_v43 = vpop.f32.mrf.mxu1 }
 0x599   : > { %2219 = vadd.xlane.f32.xlu0 %v2218_v23  ;;  %v2224_v51 = vsel %vm987_vm0, %v8266_v52, 0.0 }
 0x59a   : > { %6327 = vpow2.f32 %v2201_v6  ;;  %v8310_v58 = vpop.f32.mrf.mxu1 }
 0x59b   : > { %v8268_v47 = vpop.eup %6315  ;;  %6329 = vpow2.f32 %v2203_v18 }
 0x59c   : > { %v2227_v36 = vsel %vm987_vm0, %v8268_v47, 0.0  ;;  %v8274_v8 = vpop.eup %6317  ;;  %6331 = vpow2.f32 %v2207_v17  ;;  %v8312_v6 = vpop.f32.mrf.mxu1  ;;  %v9473_v17 = vld [vmem:[#allocation43_spill] sm:$0xff] }
 0x59d   : > { %2225 = vadd.xlane.f32.xlu0 %v2224_v51  ;;  %2228 = vadd.xlane.f32.xlu1 %v2227_v36  ;;  %v2230_v2 = vsel %vm987_vm0, %v8274_v8, 0.0 }
 0x59f   : > { %v8276_v42 = vpop.eup %6319 }
 0x5a0   : > { %v2233_v53 = vsel %vm987_vm0, %v8276_v42, 0.0  ;;  %v8282_v7 = vpop.eup %6321 }
 0x5a1   : > { %2231 = vadd.xlane.f32.xlu0 %v2230_v2  ;;  %2234 = vadd.xlane.f32.xlu1 %v2233_v53  ;;  %v2236_v24 = vsel %vm987_vm0, %v8282_v7, 0.0 }
 0x5a3   : > { %v8284_v39 = vpop.eup %6323 }
 0x5a4   : > { %v8286_v34 = vpop.eup %6325  ;;  %v2239_v26 = vsel %vm987_vm0, %v8284_v39, 0.0 }
 0x5a5   : > { %2237 = vadd.xlane.f32.xlu0 %v2236_v24  ;;  %2240 = vadd.xlane.f32.xlu1 %v2239_v26  ;;  %v2242_v55 = vsel %vm987_vm0, %v8286_v34, 0.0  ;;  %v9474_v26 = vld [vmem:[#allocation40_spill] sm:$0xff] }
 0x5a7   : > { %v8292_v57 = vpop.eup %6327 }
 0x5a8   : > { %v2245_v15 = vsel %vm987_vm0, %v8292_v57, 0.0  ;;  %v8298_v25 = vpop.eup %6329 }
 0x5a9   : > { %2243 = vadd.xlane.f32.xlu0 %v2242_v55  ;;  %2246 = vadd.xlane.f32.xlu1 %v2245_v15  ;;  %v2248_v20 = vsel %vm987_vm0, %v8298_v25, 0.0  ;;  %v8304_v50 = vpop.eup %6331  ;;  %v8338_v15 = vpop.permute.xlu1 %2627 }
 0x5aa   : > { %v2254_v18 = vsel %vm987_vm0, %v8304_v50, 0.0 }
 0x5ad   : > { %2249 = vadd.xlane.f32.xlu0 %v2248_v20 }
 0x5ae   : > { %v8314_v23 = vpop.f32.mrf.mxu1 }
 0x5b0   : > { %v8318_v51 = vpop.f32.mrf.mxu1 }
 0x5b1   : > { %2255 = vadd.xlane.f32.xlu0 %v2254_v18 }
 0x5b6   : > { %v8320_v36 = vpop.f32.mrf.mxu1 }
 0x5b8   : > { %v8324_v2 = vpop.f32.mrf.mxu1 }
 0x5ba   : > { %2615 = vrot.lane.b32.xlu1 %v9473_v17, %s6719_s16 }
 0x5be   : > { %3622 = vrot.lane.b32.xlu1 %v7288_v41, %s6720_s22  ;;  %v8328_v53 = vpop.f32.mrf.mxu1 }
 0x5c0   : > { %v8332_v24 = vpop.f32.mrf.mxu1 }
 0x5c2   : > { %3626 = vrot.lane.b32.xlu1 %v7321_v49, %s6720_s22 }
 0x5c6   : > { %3630 = vrot.lane.b32.xlu1 %v7341_v10, %s6720_s22  ;;  %v8336_v55 = vpop.f32.mrf.mxu1  ;;  %v8352_v10 = vpop.permute.xlu1 %2623 }
 0x5c7   : > { %2617 = vrot.lane.b32.xlu0 %v9474_v26, %s6719_s16  ;;  %v9478_v26 = vld [vmem:[#allocation54_spill] sm:$0xff] }
 0x5c8   : > { %v8344_v41 = vpop.f32.mrf.mxu1 }
 0x5ca   : > { %3634 = vrot.lane.b32.xlu1 %v7357_v16, %s6720_s22  ;;  %v8362_v16 = vpop.permute.xlu1 %2619 }
 0x5cb   : > { %3620 = vrot.lane.b32.xlu0 %v7316_v48, %s6720_s22 }
 0x5ce   : > { %3638 = vrot.lane.b32.xlu1 %v9425_v22, %s6720_s22  ;;  %v8348_v49 = vpop.f32.mrf.mxu1  ;;  %v9475_v22 = vld [vmem:[#allocation46_spill] sm:$0xff] }
 0x5cf   : > { %3624 = vrot.lane.b32.xlu0 %v7331_v5, %s6720_s22 }
 0x5d0   : > { %v8356_v20 = vpop.f32.mrf.mxu1 }
 0x5d2   : > { %3640 = vrot.lane.b32.xlu1 %v9438_v31, %s6720_s22  ;;  %v2157_v5 = vpop.xlane.xlu1 %2156 }
 0x5d3   : > { %3628 = vrot.lane.b32.xlu0 %v9426_v62, %s6720_s22  ;;  %v2175_v31 = vsub.f32 %v8208_v1, %v2157_v5 }
 0x5d5   : > { %v8360_v48 = vpop.f32.mrf.mxu1  ;;  %v2205_v17 = vmul.f32 1.442695, %v2175_v31 }
 0x5d7   : > { %3632 = vrot.lane.b32.xlu0 %v9475_v22, %s6720_s22  ;;  %v8366_v18 = vpop.f32.mrf.mxu1  ;;  %6333 = vpow2.f32 %v2205_v17 }
 0x5db   : > { %3636 = vrot.lane.b32.xlu0 %v9476_v21, %s6720_s22  ;;  %v5833_v32 = vpop.f32.mrf.mxu1 }
 0x5dd   : > { %v3468_v63 = vpop.f32.mrf.mxu1 }
 0x5df   : > { %3642 = vrot.lane.b32.xlu0 %v9477_v56, %s6720_s22  ;;  %v5836_v62 = vpop.f32.mrf.mxu1  ;;  %v8386_v56 = vpop.f32.mrf.mxu0 }
 0x5e0   : > { %5875 = vmatprep.subr.msk.mxu1 %vm987_vm0, %v5836_v62  ;;  %9479 = vst [vmem:[#allocation32_spill] sm:$0xff] %v8386_v56 }
 0x5e1   : > { %5876 = vmatpush3.xpose.msk.msra.mxu1 %vm987_vm0, %v5836_v62  ;;  %v3478_v22 = vpop.f32.mrf.mxu1  ;;  %v8391_v21 = vpop.f32.mrf.mxu0 }
 0x5e2   : > { %5877 = vmatprep.subr.msk.mxu1 %vm987_vm0, %v3478_v22  ;;  %9480 = vst [vmem:[#allocation30_spill] sm:$0xff] %v8391_v21 }
 0x5e3   : > { %3648 = vrot.lane.b32.xlu0 %v9478_v26, %s6720_s22  ;;  %v8395_v17 = vpop.f32.mrf.mxu0 }
 0x5e4   : > { %v8393_v1 = vpop.eup %6333  ;;  %9481 = vst [vmem:[#allocation34_spill] sm:$0xff] %v8395_v17 }
 0x5e5   : > { %5878 = vmatpush3.xpose.msk.msra.mxu1 %vm987_vm0, %v3478_v22  ;;  %v8399_v26 = vpop.f32.mrf.mxu0 }
 0x5e6   : > { %5879 = vmatprep.subr.msk.mxu1 %vm987_vm0, %v5833_v32  ;;  %9482 = vst [vmem:[#allocation33_spill] sm:$0xff] %v8399_v26 }
 0x5e7   : > { %3515 = vrot.lane.b32.xlu0 %v9449_v46, %s6720_s22 }
 0x5e9   : > { %5880 = vmatpush3.xpose.msk.msra.mxu1 %vm987_vm0, %v5833_v32  ;;  %v2251_v32 = vsel %vm987_vm0, %v8393_v1, 0.0 }
 0x5ea   : > { %5881 = vmatprep.subr.msk.mxu1 %vm987_vm0, %v3468_v63 }
 0x5eb   : > { %3509 = vrot.lane.b32.xlu0 %v9452_v45, %s6720_s22  ;;  %v8401_v45 = vpop.f32.mrf.mxu0 }
 0x5ec   : > { %9483 = vst [vmem:[#allocation38_spill] sm:$0xff] %v8401_v45 }
 0x5ed   : > { %5882 = vmatpush3.xpose.msk.msra.mxu1 %vm987_vm0, %v3468_v63  ;;  %v8403_v63 = vpop.f32.mrf.mxu0 }
 0x5ee   : > { %9484 = vst [vmem:[#allocation36_spill] sm:$0xff] %v8403_v63 }
 0x5ef   : > { %3505 = vrot.lane.b32.xlu0 %v9454_v38, %s6720_s22  ;;  %v8405_v38 = vpop.f32.mrf.mxu0 }
 0x5f0   : > { %9485 = vst [vmem:[#allocation50_spill] sm:$0xff] %v8405_v38  ;;  %v8423_v38 = vmul.f32 0.17677669, %v8310_v58  ;;  %v9492_v58 = vld [vmem:[#allocation17_spill] sm:$0xff] }
 0x5f1   : > { %v8409_v62 = vpop.f32.mrf.mxu0 }
 0x5f2   : > { %v2211_v46 = vpop.xlane.xlu1 %2210  ;;  %9486 = vst [vmem:[#allocation44_spill] sm:$0xff] %v8409_v62 }
 0x5f3   : > { %6335 = vrcp.f32 %v2211_v46  ;;  %v8413_v22 = vpop.f32.mrf.mxu0  ;;  %v8416_v46 = vmul.f32 0.17677669, %v8306_v43  ;;  %v8434_v43 = vmul.f32 0.17677669, %v8324_v2  ;;  %v9494_v2 = vld [vmem:[#allocation18_spill] sm:$0xff] }
 0x5f4   : > { %9487 = vst [vmem:[#allocation39_spill] sm:$0xff] %v8413_v22 }
 0x5f5   : > { %v8420_v63 = vpop.f32.mrf.mxu0 }
 0x5f6   : > { %2252 = vadd.xlane.f32.xlu1 %v2251_v32  ;;  %v9488_v32 = vld [vmem:[#allocation51_spill] sm:$0xff]  ;;  %9489 = vst [vmem:[#allocation52_spill] sm:$0xff] %v8420_v63 }
 0x600   : > { %v6336_v5 = vpop.eup %6335 }
 0x601   : > { %v2273_v31 = vmul.f32 %v6336_v5, %v8232_v28  ;;  %v2985_v28 = vsel %vm987_vm0, %v8416_v46, -inf  ;;  %v8427_v5 = vpop.permute.xlu0 %2629 }
 0x603   : > { %5635 = vmatprep.mubr.msk.f32.mxu0 %vm987_vm0, %v2273_v31  ;;  %v8431_v31 = vpop.f32.mrf.mxu0 }
 0x604   : > { %9491 = vst [vmem:[#allocation42_spill] sm:$0xff] %v8431_v31 }
 0x605   : > { %v8440_v62 = vpop.permute.xlu0 %2625  ;;  %v8442_v26 = vpop.f32.mrf.mxu0 }
 0x606   : > { %9493 = vst [vmem:[#allocation41_spill] sm:$0xff] %v8442_v26  ;;  %v9496_v26 = vld [vmem:[#allocation20_spill] sm:$0xff] }
 0x607   : > { %3644 = vrot.lane.b32.xlu1 %v9442_v44, %s6720_s22  ;;  %v9490_v44 = vld [vmem:[#allocation53_spill] sm:$0xff]  ;;  %v8451_v45 = vpop.f32.mrf.mxu0 }
 0x608   : > { %9495 = vst [vmem:[#allocation19_spill] sm:$0xff] %v8451_v45 }
 0x609   : > { %v8458_v31 = vpop.permute.xlu0 %2621  ;;  %v8462_v17 = vpop.f32.mrf.mxu0 }
 0x60a   : > { %9497 = vst [vmem:[#allocation55_spill] sm:$0xff] %v8462_v17 }
 0x60b   : > { %3646 = vrot.lane.b32.xlu1 %v9488_v32, %s6720_s22  ;;  %v2994_v32 = vsel %vm987_vm0, %v8423_v38, -inf }
 0x60e   : > { %2986 = vmax.xlane.f32.xlu0 %v2985_v28  ;;  %v8445_v28 = vmul.f32 0.17677669, %v8328_v53  ;;  %v2217_v53 = vpop.xlane.xlu1 %2216 }
 0x60f   : > { %3650 = vrot.lane.b32.xlu1 %v9490_v44, %s6720_s22  ;;  %v3003_v44 = vsel %vm987_vm0, %v8434_v43, -inf  ;;  %6337 = vrcp.f32 %v2217_v53 }
 0x612   : > { %2995 = vmax.xlane.f32.xlu0 %v2994_v32  ;;  %v8454_v32 = vmul.f32 0.17677669, %v8332_v24  ;;  %v2223_v56 = vpop.xlane.xlu1 %2222 }
 0x613   : > { %3517 = vrot.lane.b32.xlu1 %v9492_v58, %s6720_s22  ;;  %v3012_v58 = vsel %vm987_vm0, %v8445_v28, -inf }
 0x616   : > { %3004 = vmax.xlane.f32.xlu0 %v3003_v44  ;;  %v8465_v44 = vmul.f32 0.17677669, %v8336_v55 }
 0x617   : > { %3513 = vrot.lane.b32.xlu1 %v9494_v2, %s6720_s22  ;;  %v3009_v2 = vsel %vm987_vm0, %v8454_v32, -inf }
 0x618   : > { %v3018_v55 = vsel %vm987_vm0, %v8465_v44, -inf }
 0x61a   : > { %3013 = vmax.xlane.f32.xlu0 %v3012_v58  ;;  %v9499_v58 = vld [vmem:[#allocation22_spill] sm:$0xff] }
 0x61b   : > { %3511 = vrot.lane.b32.xlu1 %v9496_v26, %s6720_s22  ;;  %v8476_v26 = vmul.f32 0.17677669, %v8344_v41 }
 0x61e   : > { %v8469_v24 = vpop.f32.mrf.mxu0  ;;  %v2214_v45 = vpop.xlane.xlu0 %2213  ;;  %3010 = vmax.xlane.f32.xlu0 %v3009_v2  ;;  %v8483_v2 = vmul.f32 0.17677669, %v8348_v49 }
 0x61f   : > { %9498 = vst [vmem:[#allocation60_spill] sm:$0xff] %v8469_v24  ;;  %6339 = vrcp.f32 %v2214_v45  ;;  %3507 = vrot.lane.b32.xlu1 %v9499_v58, %s6720_s22  ;;  %v3015_v58 = vsel %vm987_vm0, %v8476_v26, -inf }
 0x620   : > { %v8473_v63 = vpop.f32.mrf.mxu0  ;;  %6341 = vrcp.f32 %v2223_v56 }
 0x621   : > { %9500 = vst [vmem:[#allocation21_spill] sm:$0xff] %v8473_v63 }
 0x622   : > { %v5591_v17 = vpop.f32.mrf.mxu0  ;;  %3019 = vmax.xlane.f32.xlu0 %v3018_v55  ;;  %v2220_v53 = vpop.xlane.xlu0 %2219  ;;  %v8488_v55 = vmul.f32 0.17677669, %v8356_v20 }
 0x623   : > { %6343 = vrcp.f32 %v2220_v53  ;;  %3503 = vrot.lane.b32.xlu1 %v9458_v27, %s6720_s22  ;;  %v3024_v27 = vsel %vm987_vm0, %v8483_v2, -inf  ;;  %v6338_v53 = vpop.eup %6337 }
 0x624   : > { %v1857_v45 = vpop.f32.mrf.mxu0 }
 0x626   : > { %v5594_v41 = vpop.f32.mrf.mxu0  ;;  %3016 = vmax.xlane.f32.xlu0 %v3015_v58  ;;  %v2226_v24 = vpop.xlane.xlu0 %2225 }
 0x627   : > { %6345 = vrcp.f32 %v2226_v24  ;;  %v2229_v63 = vpop.xlane.xlu1 %2228  ;;  %5627 = vmatprep.subr.mxu0 %v5594_v41 }
 0x628   : > { %6347 = vrcp.f32 %v2229_v63  ;;  %v1867_v56 = vpop.f32.mrf.mxu0  ;;  %5628 = vmatpush3.msra.mxu0 %v5594_v41  ;;  %v8493_v63 = vmul.f32 0.17677669, %v8360_v48  ;;  %v3021_v41 = vsel %vm987_vm0, %v8488_v55, -inf }
 0x629   : > { %5629 = vmatprep.subr.mxu0 %v1867_v56 }
 0x62a   : > { %5630 = vmatpush3.msra.mxu0 %v1867_v56  ;;  %3025 = vmax.xlane.f32.xlu0 %v3024_v27  ;;  %v2232_v49 = vpop.xlane.xlu0 %2231  ;;  %v2275_v27 = vmul.f32 %v6338_v53, %v8236_v13 }
 0x62b   : > { %6349 = vrcp.f32 %v2232_v49  ;;  %v2235_v58 = vpop.xlane.xlu1 %2234  ;;  %5631 = vmatprep.subr.mxu0 %v5591_v17 }
 0x62c   : > { %v6340_v24 = vpop.eup %6339  ;;  %6351 = vrcp.f32 %v2235_v58  ;;  %5632 = vmatpush3.msra.mxu0 %v5591_v17 }
 0x62d   : > { %v2274_v20 = vmul.f32 %v6340_v24, %v8255_v60  ;;  %5633 = vmatprep.subr.mxu0 %v1857_v45  ;;  %v6342_v49 = vpop.eup %6341  ;;  %v3030_v60 = vsel %vm987_vm0, %v8493_v63, -inf }
 0x62e   : > { %5634 = vmatpush3.msra.mxu0 %v1857_v45  ;;  %3022 = vmax.xlane.f32.xlu0 %v3021_v41  ;;  %v2238_v56 = vpop.xlane.xlu0 %2237  ;;  %v2277_v45 = vmul.f32 %v6342_v49, %v8240_v12  ;;  %v8544_v49 = vmul.f32 0.17677669, %v8300_v33  ;;  %v8556_v33 = vmul.f32 0.17677669, %v8312_v6 }
 0x62f   : > { %6353 = vrcp.f32 %v2238_v56  ;;  %v2241_v22 = vpop.xlane.xlu1 %2240  ;;  %5636 = vmatmul.mubr.msk.f32.vlgmr.msra.gmra.mxu0 %vm987_vm0, %v2274_v20  ;;  %5697 = vmatprep.subr.mxu0 %v8201_v14 }
 0x630   : > { %v6344_v48 = vpop.eup %6343  ;;  %6355 = vrcp.f32 %v2241_v22  ;;  %5638 = vmatprep.mubr.msk.f32.mxu0 %vm987_vm0, %v2275_v27  ;;  %5698 = vmatpush3.msra.mxu0 %v8201_v14 }
 0x631   : > { %5699 = vmatprep.subr.mxu0 %v8210_v61  ;;  %v2276_v13 = vmul.f32 %v6344_v48, %v8261_v30 }
 0x632   : > { %3031 = vmax.xlane.f32.xlu0 %v3030_v60  ;;  %v2244_v17 = vpop.xlane.xlu0 %2243  ;;  %5700 = vmatpush3.msra.mxu0 %v8210_v61 }
 0x633   : > { %6357 = vrcp.f32 %v2244_v17  ;;  %v2247_v53 = vpop.xlane.xlu1 %2246  ;;  %5639 = vmatmul.mubr.msk.f32.gmra.mxu0 %vm987_vm0, %v2276_v13  ;;  %5701 = vmatprep.subr.mxu0 %v8203_v37 }
 0x634   : > { %v6346_v14 = vpop.eup %6345  ;;  %6359 = vrcp.f32 %v2247_v53  ;;  %5641 = vmatprep.mubr.msk.f32.mxu0 %vm987_vm0, %v2277_v45  ;;  %5702 = vmatpush3.msra.mxu0 %v8203_v37  ;;  %v8607_v53 = vmul.f32 0.17677669, %v8366_v18 }
 0x635   : > { %v6348_v22 = vpop.eup %6347  ;;  %5703 = vmatprep.subr.mxu0 %v8205_v4  ;;  %v2278_v30 = vmul.f32 %v6346_v14, %v8266_v52 }
 0x636   : > { %v2250_v61 = vpop.xlane.xlu0 %2249  ;;  %5704 = vmatpush3.msra.mxu0 %v8205_v4  ;;  %v2279_v12 = vmul.f32 %v6348_v22, %v8268_v47 }
 0x637   : > { %6361 = vrcp.f32 %v2250_v61  ;;  %v8517_v58 = vpop.permute.xlu1 %2615  ;;  %5642 = vmatmul.mubr.msk.f32.gmra.mxu0 %vm987_vm0, %v2278_v30  ;;  %5705 = vmatprep.subr.mxu0 %v8216_v40 }
 0x638   : > { %v6350_v24 = vpop.eup %6349  ;;  %5644 = vmatprep.mubr.msk.f32.mxu0 %vm987_vm0, %v2279_v12  ;;  %5706 = vmatpush3.msra.mxu0 %v8216_v40 }
 0x639   : > { %v6352_v37 = vpop.eup %6351  ;;  %5707 = vmatprep.subr.mxu0 %v8212_v0  ;;  %v2280_v52 = vmul.f32 %v6350_v24, %v8274_v8  ;;  %v9501_v24 = vld [vmem:[#allocation65_spill] sm:$0xff] }
 0x63a   : > { %v8525_v4 = vpop.xlane.xlu0 %2255  ;;  %5708 = vmatpush3.msra.mxu0 %v8212_v0  ;;  %v2281_v47 = vmul.f32 %v6352_v37, %v8276_v42  ;;  %v9502_v37 = vld [vmem:[#allocation66_spill] sm:$0xff] }
 0x63b   : > { %v3623_v20 = vpop.permute.xlu1 %3622  ;;  %5645 = vmatmul.mubr.msk.f32.gmra.mxu0 %vm987_vm0, %v2280_v52  ;;  %5709 = vmatprep.subr.mxu0 %v8219_v3  ;;  %6363 = vrcp.f32 %v8525_v4  ;;  %v9503_v52 = vld [vmem:[#allocation67_spill] sm:$0xff] }
 0x63c   : > { %v6354_v41 = vpop.eup %6353  ;;  %5647 = vmatprep.mubr.msk.f32.mxu0 %vm987_vm0, %v2281_v47  ;;  %5710 = vmatpush3.msra.mxu0 %v8219_v3  ;;  %v9504_v47 = vld [vmem:[#allocation68_spill] sm:$0xff] }
 0x63d   : > { %v6356_v40 = vpop.eup %6355  ;;  %5711 = vmatprep.subr.mxu0 %v8244_v59  ;;  %v2282_v8 = vmul.f32 %v6354_v41, %v8282_v7 }
 0x63e   : > { %v2618_v56 = vpop.permute.xlu0 %2617  ;;  %5712 = vmatpush3.msra.mxu0 %v8244_v59  ;;  %v2283_v0 = vmul.f32 %v6356_v40, %v8284_v39 }
 0x63f   : > { %v3627_v42 = vpop.permute.xlu1 %3626  ;;  %5648 = vmatmul.mubr.msk.f32.gmra.mxu0 %vm987_vm0, %v2282_v8  ;;  %5713 = vmatprep.subr.mxu0 %v8427_v5 }
 0x640   : > { %v6358_v27 = vpop.eup %6357  ;;  %5650 = vmatprep.mubr.msk.f32.mxu0 %vm987_vm0, %v2283_v0  ;;  %5714 = vmatpush3.msra.mxu0 %v8427_v5 }
 0x641   : > { %v6360_v3 = vpop.eup %6359  ;;  %5715 = vmatprep.subr.mxu0 %v8338_v15  ;;  %v2284_v7 = vmul.f32 %v6358_v27, %v8286_v34 }
 0x642   : > { %v3621_v59 = vpop.permute.xlu0 %3620  ;;  %5716 = vmatpush3.msra.mxu0 %v8338_v15  ;;  %v2285_v39 = vmul.f32 %v6360_v3, %v8292_v57  ;;  %v2988_v15 = vsel %vm987_vm0, %v8544_v49, -inf }
 0x643   : > { %5651 = vmatmul.mubr.msk.f32.gmra.mxu0 %vm987_vm0, %v2284_v7  ;;  %5717 = vmatprep.subr.mxu0 %v8440_v62  ;;  %v3631_v60 = vpop.permute.xlu1 %3630 }
 0x644   : > { %v6362_v48 = vpop.eup %6361  ;;  %5883 = vmatprep.mubr.msk.f32.mxu1 %vm987_vm0, %v3621_v59  ;;  %5653 = vmatprep.mubr.msk.f32.mxu0 %vm987_vm0, %v2285_v39 }
 0x645   : > { %5718 = vmatpush3.msra.mxu0 %v8440_v62  ;;  %5884 = vmatmul.mubr.msk.f32.vlgmr.msra.gmra.mxu1 %vm987_vm0, %v3623_v20  ;;  %v2286_v34 = vmul.f32 %v6362_v48, %v8298_v25  ;;  %v8568_v25 = vmul.f32 0.17677669, %v8314_v23 }
 0x646   : > { %5719 = vmatprep.subr.mxu0 %v8352_v10  ;;  %v3625_v57 = vpop.permute.xlu0 %3624 }
 0x647   : > { %5720 = vmatpush3.msra.mxu0 %v8352_v10  ;;  %2989 = vmax.xlane.f32.xlu1 %v2988_v15  ;;  %v3635_v6 = vpop.permute.xlu1 %3634  ;;  %v2991_v10 = vsel %vm987_vm0, %v8556_v33, -inf  ;;  %v3000_v5 = vsel %vm987_vm0, %v8568_v25, -inf }
 0x648   : > { %5654 = vmatmul.mubr.msk.f32.gmra.mxu0 %vm987_vm0, %v2286_v34  ;;  %5721 = vmatprep.subr.mxu0 %v8458_v31  ;;  %v6364_v61 = vpop.eup %6363 }
 0x649   : > { %5886 = vmatprep.mubr.msk.f32.mxu1 %vm987_vm0, %v3625_v57  ;;  %3501 = vrot.lane.b32.xlu0 %v9459_v54, %s6720_s22  ;;  %v8580_v54 = vmul.f32 0.17677669, %v8318_v51  ;;  %v2288_v18 = vmul.f32 %v6364_v61, %v8304_v50 }
 0x64a   : > { %5722 = vmatpush3.msra.mxu0 %v8458_v31  ;;  %5887 = vmatmul.mubr.msk.f32.gmra.mxu1 %vm987_vm0, %v3627_v42  ;;  %v3629_v62 = vpop.permute.xlu0 %3628 }
 0x64b   : > { %5723 = vmatprep.subr.mxu0 %v8362_v16  ;;  %2992 = vmax.xlane.f32.xlu1 %v2991_v10  ;;  %v2997_v31 = vsel %vm987_vm0, %v8580_v54, -inf }
 0x64c   : > { %5724 = vmatpush3.msra.mxu0 %v8362_v16  ;;  %5889 = vmatprep.mubr.msk.f32.mxu1 %vm987_vm0, %v3629_v62  ;;  %v3639_v16 = vpop.permute.xlu1 %3638 }
 0x64d   : > { %5725 = vmatprep.subr.mxu0 %v2618_v56  ;;  %3497 = vrot.lane.b32.xlu0 %v9460_v19, %s6720_s22  ;;  %v8591_v19 = vmul.f32 0.17677669, %v8320_v36 }
 0x64e   : > { %5726 = vmatpush3.msra.mxu0 %v2618_v56  ;;  %5890 = vmatmul.mubr.msk.f32.gmra.mxu1 %vm987_vm0, %v3631_v60  ;;  %v3633_v23 = vpop.permute.xlu0 %3632 }
 0x64f   : > { %5727 = vmatprep.subr.mxu0 %v8517_v58  ;;  %3001 = vmax.xlane.f32.xlu1 %v3000_v5  ;;  %v3006_v17 = vsel %vm987_vm0, %v8591_v19, -inf }
 0x650   : > { %5728 = vmatpush3.msra.mxu0 %v8517_v58  ;;  %5892 = vmatprep.mubr.msk.f32.mxu1 %vm987_vm0, %v3633_v23  ;;  %v3641_v13 = vpop.permute.xlu1 %3640 }
 0x651   : > { %3493 = vrot.lane.b32.xlu0 %v9461_v11, %s6720_s22 }
 0x652   : > { %5893 = vmatmul.mubr.msk.f32.gmra.mxu1 %vm987_vm0, %v3635_v6  ;;  %v3637_v51 = vpop.permute.xlu0 %3636 }
 0x653   : > { %2998 = vmax.xlane.f32.xlu1 %v2997_v31  ;;  %5895 = vmatprep.mubr.msk.f32.mxu1 %vm987_vm0, %v3637_v51 }
 0x656   : > { %5896 = vmatmul.mubr.msk.f32.gmra.mxu1 %vm987_vm0, %v3639_v16  ;;  %v3643_v11 = vpop.permute.xlu0 %3642 }
 0x657   : > { %5898 = vmatprep.mubr.msk.f32.mxu1 %vm987_vm0, %v3641_v13  ;;  %3007 = vmax.xlane.f32.xlu1 %v3006_v17 }
 0x65a   : > { %5899 = vmatmul.mubr.msk.f32.gmra.mxu1 %vm987_vm0, %v3643_v11  ;;  %v3649_v22 = vpop.permute.xlu0 %3648 }
 0x65e   : > { %v8621_v4 = vpop.permute.xlu0 %3515 }
 0x668   : > { %3499 = vrot.lane.b32.xlu1 %v9466_v29, %s6720_s22  ;;  %v3027_v29 = vsel %vm987_vm0, %v8607_v53, -inf }
 0x67f   : > { %v2253_v36 = vpop.xlane.xlu1 %2252 }
 0x680   : > { %6365 = vrcp.f32 %v2253_v36 }
 0x683   : > { %v3645_v45 = vpop.permute.xlu1 %3644 }
 0x684   : > { %5901 = vmatprep.mubr.msk.f32.mxu1 %vm987_vm0, %v3645_v45 }
 0x687   : > { %v3647_v14 = vpop.permute.xlu1 %3646 }
 0x688   : > { %5902 = vmatmul.mubr.msk.f32.gmra.mxu1 %vm987_vm0, %v3647_v14 }
 0x689   : > { %5904 = vmatprep.mubr.msk.f32.mxu1 %vm987_vm0, %v3649_v22 }
 0x68b   : > { %v3651_v30 = vpop.permute.xlu1 %3650 }
 0x68c   : > { %3028 = vmax.xlane.f32.xlu1 %v3027_v29  ;;  %5905 = vmatmul.mubr.msk.f32.gmra.mxu1 %vm987_vm0, %v3651_v30 }
 0x68d   : > { %v6366_v12 = vpop.eup %6365 }
 0x68e   : > { %v2287_v58 = vmul.f32 %v6366_v12, %v8393_v1  ;;  %v8626_v1 = vpop.permute.xlu0 %3509 }
 0x68f   : > { %v8633_v8 = vpop.permute.xlu1 %3517 }
 0x690   : > { %5656 = vmatprep.mubr.msk.f32.mxu0 %vm987_vm0, %v2287_v58 }
 0x691   : > { %5657 = vmatmul.mubr.msk.f32.gmra.mxu0 %vm987_vm0, %v2288_v18 }
 0x692   : > { %5729 = vmatprep.mubr.f32.mxu0 %v9501_v24  ;;  %v8630_v50 = vpop.permute.xlu0 %3505 }
 0x693   : > { %v8635_v0 = vpop.permute.xlu1 %3513 }
 0x695   : > { %5730 = vmatmul.mubr.f32.vlgmr.msra.gmra.mxu0 %v9502_v37 }
 0x696   : > { %5732 = vmatprep.mubr.f32.mxu0 %v9503_v52 }
 0x697   : > { %v2987_v20 = vpop.xlane.xlu0 %2986  ;;  %v8637_v27 = vpop.permute.xlu1 %3511 }
 0x698   : > { %v3033_v41 = vsub.f32 %v8416_v46, %v2987_v20 }
 0x699   : > { %5733 = vmatmul.mubr.f32.gmra.mxu0 %v9504_v47 }
 0x69a   : > { %v3049_v40 = vmul.f32 1.442695, %v3033_v41 }
 0x69b   : > { %v2996_v56 = vpop.xlane.xlu0 %2995  ;;  %v8643_v7 = vpop.permute.xlu1 %3507 }
 0x69c   : > { %6367 = vpow2.f32 %v3049_v40  ;;  %v3036_v39 = vsub.f32 %v8423_v38, %v2996_v56 }
 0x69d   : > { %3495 = vrot.lane.b32.xlu1 %v9467_v9, %s6720_s22 }
 0x69e   : > { %v3055_v57 = vmul.f32 1.442695, %v3036_v39 }
 0x69f   : > { %v3005_v42 = vpop.xlane.xlu0 %3004  ;;  %v8645_v59 = vpop.permute.xlu1 %3503 }
 0x6a0   : > { %v3039_v51 = vsub.f32 %v8434_v43, %v3005_v42 }
 0x6a1   : > { %3491 = vrot.lane.b32.xlu1 %v9468_v35, %s6720_s22 }
 0x6a3   : > { %v3014_v3 = vpop.xlane.xlu0 %3013 }
 0x6a4   : > { %v3042_v31 = vsub.f32 %v8445_v28, %v3014_v3 }
 0x6a6   : > { %v3067_v45 = vmul.f32 1.442695, %v3042_v31 }
 0x6a7   : > { %v3011_v46 = vpop.xlane.xlu0 %3010 }
 0x6a8   : > { %v3041_v11 = vsub.f32 %v8454_v32, %v3011_v46 }
 0x6a9   : > { %v8639_v9 = vpop.eup %6367 }
 0x6aa   : > { %v3081_v35 = vsel %vm987_vm0, %v8639_v9, 0.0  ;;  %v3065_v43 = vmul.f32 1.442695, %v3041_v11 }
 0x6ab   : > { %v3020_v48 = vpop.xlane.xlu0 %3019 }
 0x6ac   : > { %v3044_v30 = vsub.f32 %v8465_v44, %v3020_v48 }
 0x6af   : > { %v3017_v10 = vpop.xlane.xlu0 %3016 }
 0x6b0   : > { %v3043_v29 = vsub.f32 %v8476_v26, %v3017_v10 }
 0x6b2   : > { %v3069_v44 = vmul.f32 1.442695, %v3043_v29 }
 0x6b3   : > { %v3026_v13 = vpop.xlane.xlu0 %3025 }
 0x6b4   : > { %v3046_v58 = vsub.f32 %v8483_v2, %v3026_v13 }
 0x6b6   : > { %v3075_v47 = vmul.f32 1.442695, %v3046_v58 }
 0x6b7   : > { %v3023_v28 = vpop.xlane.xlu0 %3022 }
 0x6b8   : > { %v3045_v18 = vsub.f32 %v8488_v55, %v3023_v28 }
 0x6ba   : > { %v3073_v20 = vmul.f32 1.442695, %v3045_v18 }
 0x6bb   : > { %v3032_v37 = vpop.xlane.xlu0 %3031 }
 0x6bc   : > { %v3048_v2 = vsub.f32 %v8493_v63, %v3032_v37 }
 0x6be   : > { %v3079_v40 = vmul.f32 1.442695, %v3048_v2 }
 0x6c5   : > { %3082 = vadd.xlane.f32.xlu1 %v3081_v35 }
 0x6d0   : > { %v2990_v60 = vpop.xlane.xlu1 %2989 }
 0x6d1   : > { %v3034_v34 = vsub.f32 %v8544_v49, %v2990_v60 }
 0x6d3   : > { %v3051_v15 = vmul.f32 1.442695, %v3034_v34 }
 0x6d4   : > { %v2993_v6 = vpop.xlane.xlu1 %2992 }
 0x6d5   : > { %6369 = vpow2.f32 %v3051_v15  ;;  %v3035_v62 = vsub.f32 %v8556_v33, %v2993_v6  ;;  %v3061_v33 = vmul.f32 1.442695, %v3039_v51 }
 0x6d6   : > { %6371 = vpow2.f32 %v3055_v57 }
 0x6d7   : > { %v3053_v23 = vmul.f32 1.442695, %v3035_v62 }
 0x6d8   : > { %v3002_v5 = vpop.xlane.xlu1 %3001 }
 0x6d9   : > { %6373 = vpow2.f32 %v3053_v23  ;;  %v3038_v16 = vsub.f32 %v8568_v25, %v3002_v5 }
 0x6db   : > { %v3059_v38 = vmul.f32 1.442695, %v3038_v16 }
 0x6dc   : > { %v2999_v49 = vpop.xlane.xlu1 %2998 }
 0x6dd   : > { %6375 = vpow2.f32 %v3059_v38  ;;  %v3037_v17 = vsub.f32 %v8580_v54, %v2999_v49 }
 0x6df   : > { %v3057_v36 = vmul.f32 1.442695, %v3037_v17 }
 0x6e0   : > { %v3008_v14 = vpop.xlane.xlu1 %3007 }
 0x6e1   : > { %6377 = vpow2.f32 %v3057_v36  ;;  %v3040_v22 = vsub.f32 %v8591_v19, %v3008_v14  ;;  %v3071_v19 = vmul.f32 1.442695, %v3044_v30 }
 0x6e2   : > { %v8656_v25 = vpop.eup %6369  ;;  %6379 = vpow2.f32 %v3061_v33 }
 0x6e3   : > { %v3063_v61 = vmul.f32 1.442695, %v3040_v22  ;;  %v3084_v32 = vsel %vm987_vm0, %v8656_v25, 0.0  ;;  %v8662_v54 = vpop.eup %6371  ;;  %6381 = vpow2.f32 %v3067_v45 }
 0x6e4   : > { %3085 = vadd.xlane.f32.xlu0 %v3084_v32  ;;  %v3090_v26 = vsel %vm987_vm0, %v8662_v54, 0.0  ;;  %v8753_v58 = vpop.permute.xlu1 %3499 }
 0x6e5   : > { %6383 = vpow2.f32 %v3063_v61 }
 0x6e6   : > { %v8664_v12 = vpop.eup %6373  ;;  %6385 = vpow2.f32 %v3065_v43 }
 0x6e7   : > { %v3087_v24 = vsel %vm987_vm0, %v8664_v12, 0.0  ;;  %6387 = vpow2.f32 %v3071_v19 }
 0x6e8   : > { %3091 = vadd.xlane.f32.xlu0 %v3090_v26  ;;  %3088 = vadd.xlane.f32.xlu1 %v3087_v24  ;;  %6389 = vpow2.f32 %v3069_v44  ;;  %v9510_v24 = vld [vmem:[#allocation40_spill] sm:$0xff] }
 0x6e9   : > { %6391 = vpow2.f32 %v3075_v47 }
 0x6ea   : > { %v8672_v52 = vpop.eup %6375  ;;  %6393 = vpow2.f32 %v3073_v20 }
 0x6eb   : > { %v3096_v55 = vsel %vm987_vm0, %v8672_v52, 0.0  ;;  %6395 = vpow2.f32 %v3079_v40 }
 0x6ec   : > { %3097 = vadd.xlane.f32.xlu0 %v3096_v55 }
 0x6ee   : > { %v8677_v41 = vpop.eup %6377 }
 0x6ef   : > { %v8679_v56 = vpop.f32.mrf.mxu0  ;;  %v3093_v42 = vsel %vm987_vm0, %v8677_v41, 0.0  ;;  %v8683_v3 = vpop.eup %6379 }
 0x6f0   : > { %3094 = vadd.xlane.f32.xlu1 %v3093_v42  ;;  %v8685_v35 = vpop.eup %6381  ;;  %v3099_v60 = vsel %vm987_vm0, %v8683_v3, 0.0 }
 0x6f1   : > { %v8687_v63 = vpop.f32.mrf.mxu0  ;;  %v3108_v10 = vsel %vm987_vm0, %v8685_v35, 0.0 }
 0x6f2   : > { %v8689_v46 = vpop.eup %6383 }
 0x6f3   : > { %v8691_v39 = vpop.eup %6385  ;;  %v8693_v48 = vpop.f32.mrf.mxu0  ;;  %v3102_v34 = vsel %vm987_vm0, %v8689_v46, 0.0 }
 0x6f4   : > { %3100 = vadd.xlane.f32.xlu1 %v3099_v60  ;;  %3103 = vadd.xlane.f32.xlu0 %v3102_v34  ;;  %v8701_v15 = vpop.eup %6387  ;;  %v3105_v62 = vsel %vm987_vm0, %v8691_v39, 0.0 }
 0x6f5   : > { %v8699_v57 = vpop.f32.mrf.mxu0  ;;  %v8709_v23 = vpop.eup %6389  ;;  %v3114_v31 = vsel %vm987_vm0, %v8701_v15, 0.0 }
 0x6f6   : > { %9505 = vst [vmem:[#allocation61_spill] sm:$0xff] %v8699_v57  ;;  %v8713_v16 = vpop.eup %6391  ;;  %v3111_v38 = vsel %vm987_vm0, %v8709_v23, 0.0 }
 0x6f7   : > { %v8703_v6 = vpop.f32.mrf.mxu0  ;;  %v8721_v13 = vpop.eup %6393  ;;  %v3120_v33 = vsel %vm987_vm0, %v8713_v16, 0.0 }
 0x6f8   : > { %3106 = vadd.xlane.f32.xlu1 %v3105_v62  ;;  %3109 = vadd.xlane.f32.xlu0 %v3108_v10  ;;  %v3117_v11 = vsel %vm987_vm0, %v8721_v13, 0.0  ;;  %v8731_v36 = vpop.eup %6395 }
 0x6f9   : > { %v8711_v5 = vpop.f32.mrf.mxu0  ;;  %v3126_v30 = vsel %vm987_vm0, %v8731_v36, 0.0 }
 0x6fa   : > { %9506 = vst [vmem:[#allocation24_spill] sm:$0xff] %v8711_v5 }
 0x6fb   : > { %v8715_v51 = vpop.f32.mrf.mxu0 }
 0x6fc   : > { %9507 = vst [vmem:[#allocation62_spill] sm:$0xff] %v8715_v51  ;;  %3112 = vadd.xlane.f32.xlu1 %v3111_v38  ;;  %3115 = vadd.xlane.f32.xlu0 %v3114_v31  ;;  %v9511_v31 = vld [vmem:[#allocation43_spill] sm:$0xff] }
 0x6fd   : > { %v8723_v49 = vpop.f32.mrf.mxu0 }
 0x6fe   : > { %9508 = vst [vmem:[#allocation63_spill] sm:$0xff] %v8723_v49 }
 0x6ff   : > { %v8725_v17 = vpop.f32.mrf.mxu0 }
 0x700   : > { %3118 = vadd.xlane.f32.xlu1 %v3117_v11  ;;  %3121 = vadd.xlane.f32.xlu0 %v3120_v33 }
 0x701   : > { %v8735_v14 = vpop.f32.mrf.mxu0 }
 0x703   : > { %v8739_v43 = vpop.f32.mrf.mxu0 }
 0x704   : > { %3127 = vadd.xlane.f32.xlu0 %v3126_v30 }
 0x705   : > { %v8745_v29 = vpop.f32.mrf.mxu0  ;;  %v5885_v37 = vpop.f32.mrf.mxu1 }
 0x706   : > { %9509 = vst [vmem:[#allocation64_spill] sm:$0xff] %v8745_v29 }
 0x707   : > { %v3762_v47 = vpop.f32.mrf.mxu1 }
 0x708   : > { %v8749_v32 = vpop.f32.mrf.mxu0  ;;  %v8762_v62 = vmul.f32 0.17677669, %v3762_v47 }
 0x70a   : > { %v5888_v20 = vpop.f32.mrf.mxu1  ;;  %v3857_v38 = vsel %vm987_vm0, %v8762_v62, -inf  ;;  %v8794_v19 = vpop.f32.mrf.mxu0 }
 0x70b   : > { %v8770_v33 = vmul.f32 0.17677669, %v5888_v20  ;;  %9512 = vst [vmem:[#allocation25_spill] sm:$0xff] %v8794_v19 }
 0x70c   : > { %v3772_v55 = vpop.f32.mrf.mxu1 }
 0x70d   : > { %v8764_v10 = vmul.f32 0.17677669, %v3772_v55 }
 0x70e   : > { %v5891_v42 = vpop.f32.mrf.mxu1 }
 0x70f   : > { %v3863_v30 = vsel %vm987_vm0, %v8764_v10, -inf }
 0x710   : > { %v3782_v60 = vpop.f32.mrf.mxu1 }
 0x712   : > { %v5894_v34 = vpop.f32.mrf.mxu1 }
 0x713   : > { %v8778_v47 = vmul.f32 0.17677669, %v5894_v34 }
 0x715   : > { %v3029_v44 = vpop.xlane.xlu1 %3028 }
 0x716   : > { %v3047_v18 = vsub.f32 %v8607_v53, %v3029_v44  ;;  %v3792_v53 = vpop.f32.mrf.mxu1 }
 0x718   : > { %v3077_v26 = vmul.f32 1.442695, %v3047_v18  ;;  %v5897_v11 = vpop.f32.mrf.mxu1  ;;  %v8774_v18 = vmul.f32 0.17677669, %v5891_v42  ;;  %v3878_v42 = vsel %vm987_vm0, %v8778_v47, -inf }
 0x719   : > { %v8780_v55 = vpop.permute.xlu1 %3495 }
 0x71a   : > { %6397 = vpow2.f32 %v3077_v26  ;;  %3489 = vrot.lane.b32.xlu0 %v9510_v24, %s6720_s22  ;;  %v3802_v44 = vpop.f32.mrf.mxu1  ;;  %v3866_v26 = vsel %vm987_vm0, %v8770_v33, -inf  ;;  %v3872_v20 = vsel %vm987_vm0, %v8774_v18, -inf }
 0x71c   : > { %v5900_v24 = vpop.f32.mrf.mxu1 }
 0x727   : > { %v8758_v2 = vpop.eup %6397 }
 0x728   : > { %v3123_v40 = vsel %vm987_vm0, %v8758_v2, 0.0 }
 0x729   : > { %3124 = vadd.xlane.f32.xlu1 %v3123_v40  ;;  %v3812_v40 = vpop.f32.mrf.mxu1 }
 0x739   : > { %3858 = vmax.xlane.f32.xlu0 %v3857_v38  ;;  %v8784_v38 = vmul.f32 0.17677669, %v5897_v11 }
 0x73a   : > { %3487 = vrot.lane.b32.xlu1 %v9511_v31, %s6720_s22 }
 0x73b   : > { %v3884_v34 = vsel %vm987_vm0, %v8784_v38, -inf }
 0x73d   : > { %3864 = vmax.xlane.f32.xlu0 %v3863_v30  ;;  %v8788_v30 = vpop.permute.xlu1 %3491 }
 0x741   : > { %3867 = vmax.xlane.f32.xlu0 %v3866_v26  ;;  %v8790_v26 = vmul.f32 0.17677669, %v5900_v24 }
 0x745   : > { %3873 = vmax.xlane.f32.xlu0 %v3872_v20  ;;  %v3890_v20 = vsel %vm987_vm0, %v8790_v26, -inf }
 0x748   : > { %v5903_v31 = vpop.f32.mrf.mxu1 }
 0x749   : > { %3879 = vmax.xlane.f32.xlu0 %v3878_v42  ;;  %v8796_v11 = vmul.f32 0.17677669, %v5903_v31  ;;  %v8810_v31 = vmul.f32 0.17677669, %v5885_v37  ;;  %v8820_v37 = vmul.f32 0.17677669, %v3792_v53 }
 0x74a   : > { %v3822_v61 = vpop.f32.mrf.mxu1 }
 0x74b   : > { %v8837_v53 = vmul.f32 0.17677669, %v3822_v61 }
 0x74c   : > { %v5906_v28 = vpop.f32.mrf.mxu1 }
 0x74d   : > { %3885 = vmax.xlane.f32.xlu0 %v3884_v34  ;;  %v8804_v22 = vmul.f32 0.17677669, %v5906_v28  ;;  %v3896_v34 = vsel %vm987_vm0, %v8796_v11, -inf  ;;  %v8812_v28 = vpop.permute.xlu0 %3501 }
 0x74e   : > { %v3083_v45 = vpop.xlane.xlu1 %3082 }
 0x74f   : > { %6399 = vrcp.f32 %v3083_v45  ;;  %v3902_v45 = vsel %vm987_vm0, %v8804_v22, -inf }
 0x751   : > { %v8800_v42 = vpop.f32.mrf.mxu0  ;;  %3891 = vmax.xlane.f32.xlu0 %v3890_v20 }
 0x752   : > { %9513 = vst [vmem:[#allocation26_spill] sm:$0xff] %v8800_v42 }
 0x753   : > { %v8802_v24 = vpop.f32.mrf.mxu0 }
 0x754   : > { %9514 = vst [vmem:[#allocation29_spill] sm:$0xff] %v8802_v24  ;;  %v8814_v24 = vmul.f32 0.17677669, %v3782_v60  ;;  %v8827_v60 = vmul.f32 0.17677669, %v3802_v44  ;;  %v3832_v44 = vpop.f32.mrf.mxu1 }
 0x755   : > { %v5731_v21 = vpop.f32.mrf.mxu0  ;;  %3897 = vmax.xlane.f32.xlu0 %v3896_v34  ;;  %v3860_v34 = vsel %vm987_vm0, %v8810_v31, -inf }
 0x757   : > { %v2729_v49 = vpop.f32.mrf.mxu0 }
 0x759   : > { %v5734_v19 = vpop.f32.mrf.mxu0  ;;  %3903 = vmax.xlane.f32.xlu0 %v3902_v45 }
 0x75a   : > { %5767 = vmatprep.subr.mxu0 %v5734_v19 }
 0x75b   : > { %v2739_v5 = vpop.f32.mrf.mxu0  ;;  %5768 = vmatpush3.msra.mxu0 %v5734_v19  ;;  %v3869_v19 = vsel %vm987_vm0, %v8814_v24, -inf }
 0x75c   : > { %v6400_v20 = vpop.eup %6399  ;;  %5769 = vmatprep.subr.mxu0 %v2739_v5 }
 0x75d   : > { %5770 = vmatpush3.msra.mxu0 %v2739_v5  ;;  %v3145_v57 = vmul.f32 %v6400_v20, %v8639_v9  ;;  %v8825_v5 = vpop.permute.xlu0 %3497  ;;  %v3875_v9 = vsel %vm987_vm0, %v8820_v37, -inf }
 0x75e   : > { %5771 = vmatprep.subr.mxu0 %v5731_v21  ;;  %3861 = vmax.xlane.f32.xlu1 %v3860_v34  ;;  %v8841_v34 = vmul.f32 0.17677669, %v3832_v44 }
 0x75f   : > { %5772 = vmatpush3.msra.mxu0 %v5731_v21  ;;  %5775 = vmatprep.mubr.msk.f32.mxu0 %vm987_vm0, %v3145_v57  ;;  %v8833_v57 = vmul.f32 0.17677669, %v3812_v40  ;;  %v3893_v40 = vsel %vm987_vm0, %v8837_v53, -inf }
 0x760   : > { %5773 = vmatprep.subr.mxu0 %v2729_v49  ;;  %v3899_v61 = vsel %vm987_vm0, %v8841_v34, -inf }
 0x761   : > { %5774 = vmatpush3.msra.mxu0 %v2729_v49  ;;  %v8831_v21 = vpop.permute.xlu0 %3493  ;;  %v3881_v49 = vsel %vm987_vm0, %v8827_v60, -inf  ;;  %v3887_v20 = vsel %vm987_vm0, %v8833_v57, -inf }
 0x762   : > { %5837 = vmatprep.subr.mxu0 %v8633_v8  ;;  %3870 = vmax.xlane.f32.xlu1 %v3869_v19 }
 0x766   : > { %3876 = vmax.xlane.f32.xlu1 %v3875_v9 }
 0x76a   : > { %3882 = vmax.xlane.f32.xlu1 %v3881_v49 }
 0x76d   : > { %v3086_v45 = vpop.xlane.xlu0 %3085 }
 0x76e   : > { %6401 = vrcp.f32 %v3086_v45  ;;  %3888 = vmax.xlane.f32.xlu1 %v3887_v20 }
 0x771   : > { %v3092_v19 = vpop.xlane.xlu0 %3091  ;;  %v3089_v9 = vpop.xlane.xlu1 %3088 }
 0x772   : > { %6403 = vrcp.f32 %v3092_v19  ;;  %3894 = vmax.xlane.f32.xlu1 %v3893_v40 }
 0x773   : > { %6405 = vrcp.f32 %v3089_v9 }
 0x775   : > { %v3098_v49 = vpop.xlane.xlu0 %3097 }
 0x776   : > { %3900 = vmax.xlane.f32.xlu1 %v3899_v61  ;;  %6407 = vrcp.f32 %v3098_v49 }
 0x779   : > { %v3095_v29 = vpop.xlane.xlu1 %3094 }
 0x77a   : > { %6409 = vrcp.f32 %v3095_v29 }
 0x77b   : > { %v6402_v45 = vpop.eup %6401 }
 0x77c   : > { %v3146_v20 = vmul.f32 %v6402_v45, %v8656_v25 }
 0x77d   : > { %v3104_v44 = vpop.xlane.xlu0 %3103  ;;  %v3101_v42 = vpop.xlane.xlu1 %3100 }
 0x77e   : > { %6411 = vrcp.f32 %v3104_v44  ;;  %5776 = vmatmul.mubr.msk.f32.vlgmr.msra.gmra.mxu0 %vm987_vm0, %v3146_v20 }
 0x77f   : > { %v6404_v51 = vpop.eup %6403  ;;  %6413 = vrcp.f32 %v3101_v42  ;;  %5838 = vmatpush3.msra.mxu0 %v8633_v8 }
 0x780   : > { %v6406_v19 = vpop.eup %6405  ;;  %5839 = vmatprep.subr.mxu0 %v8621_v4  ;;  %v3148_v9 = vmul.f32 %v6404_v51, %v8662_v54 }
 0x781   : > { %5840 = vmatpush3.msra.mxu0 %v8621_v4  ;;  %v3110_v29 = vpop.xlane.xlu0 %3109  ;;  %v3107_v40 = vpop.xlane.xlu1 %3106  ;;  %v3147_v25 = vmul.f32 %v6406_v19, %v8664_v12 }
 0x782   : > { %6415 = vrcp.f32 %v3110_v29  ;;  %5841 = vmatprep.subr.mxu0 %v8635_v0  ;;  %v9515_v29 = vld [vmem:[#allocation28_spill] sm:$0xff] }
 0x783   : > { %6417 = vrcp.f32 %v3107_v40  ;;  %5778 = vmatprep.mubr.msk.f32.mxu0 %vm987_vm0, %v3147_v25  ;;  %5842 = vmatpush3.msra.mxu0 %v8635_v0  ;;  %v6408_v54 = vpop.eup %6407 }
 0x784   : > { %5779 = vmatmul.mubr.msk.f32.gmra.mxu0 %vm987_vm0, %v3148_v9  ;;  %5843 = vmatprep.subr.mxu0 %v8637_v27 }
 0x785   : > { %5844 = vmatpush3.msra.mxu0 %v8637_v27  ;;  %v3116_v8 = vpop.xlane.xlu0 %3115  ;;  %v3113_v4 = vpop.xlane.xlu1 %3112  ;;  %v3150_v27 = vmul.f32 %v6408_v54, %v8672_v52 }
 0x786   : > { %6419 = vrcp.f32 %v3116_v8  ;;  %5845 = vmatprep.subr.mxu0 %v8626_v1  ;;  %v9516_v8 = vld [vmem:[#allocation23_spill] sm:$0xff] }
 0x787   : > { %v6410_v12 = vpop.eup %6409  ;;  %6421 = vrcp.f32 %v3113_v4  ;;  %5846 = vmatpush3.msra.mxu0 %v8626_v1 }
 0x788   : > { %5847 = vmatprep.subr.mxu0 %v8643_v7  ;;  %v3149_v0 = vmul.f32 %v6410_v12, %v8677_v41 }
 0x789   : > { %5848 = vmatpush3.msra.mxu0 %v8643_v7  ;;  %v3122_v51 = vpop.xlane.xlu0 %3121  ;;  %v3119_v42 = vpop.xlane.xlu1 %3118 }
 0x78a   : > { %6423 = vrcp.f32 %v3122_v51  ;;  %5849 = vmatprep.subr.mxu0 %v8630_v50  ;;  %5781 = vmatprep.mubr.msk.f32.mxu0 %vm987_vm0, %v3149_v0 }
 0x78b   : > { %v6412_v61 = vpop.eup %6411  ;;  %6425 = vrcp.f32 %v3119_v42  ;;  %5850 = vmatpush3.msra.mxu0 %v8630_v50 }
 0x78c   : > { %v6414_v1 = vpop.eup %6413  ;;  %5782 = vmatmul.mubr.msk.f32.gmra.mxu0 %vm987_vm0, %v3150_v27  ;;  %5851 = vmatprep.subr.mxu0 %v8645_v59  ;;  %v3152_v7 = vmul.f32 %v6412_v61, %v8689_v46 }
 0x78d   : > { %5852 = vmatpush3.msra.mxu0 %v8645_v59  ;;  %v3151_v41 = vmul.f32 %v6414_v1, %v8683_v3  ;;  %v3128_v46 = vpop.xlane.xlu0 %3127 }
 0x78e   : > { %5853 = vmatprep.subr.mxu0 %v8812_v28  ;;  %6427 = vrcp.f32 %v3128_v46 }
 0x78f   : > { %v6416_v49 = vpop.eup %6415  ;;  %5784 = vmatprep.mubr.msk.f32.mxu0 %vm987_vm0, %v3151_v41  ;;  %5854 = vmatpush3.msra.mxu0 %v8812_v28 }
 0x790   : > { %v6418_v52 = vpop.eup %6417  ;;  %5785 = vmatmul.mubr.msk.f32.gmra.mxu0 %vm987_vm0, %v3152_v7  ;;  %5855 = vmatprep.subr.mxu0 %v8753_v58  ;;  %v3154_v50 = vmul.f32 %v6416_v49, %v8685_v35 }
 0x791   : > { %5856 = vmatpush3.msra.mxu0 %v8753_v58  ;;  %v3153_v59 = vmul.f32 %v6418_v52, %v8691_v39  ;;  %v3490_v20 = vpop.permute.xlu0 %3489 }
 0x792   : > { %5857 = vmatprep.subr.mxu0 %v8825_v5 }
 0x793   : > { %v6420_v3 = vpop.eup %6419  ;;  %5787 = vmatprep.mubr.msk.f32.mxu0 %vm987_vm0, %v3153_v59  ;;  %5858 = vmatpush3.msra.mxu0 %v8825_v5 }
 0x794   : > { %v6422_v28 = vpop.eup %6421  ;;  %5788 = vmatmul.mubr.msk.f32.gmra.mxu0 %vm987_vm0, %v3154_v50  ;;  %5859 = vmatprep.subr.mxu0 %v8780_v55  ;;  %v3156_v45 = vmul.f32 %v6420_v3, %v8701_v15 }
 0x795   : > { %5860 = vmatpush3.msra.mxu0 %v8780_v55  ;;  %v3155_v35 = vmul.f32 %v6422_v28, %v8709_v23 }
 0x796   : > { %5861 = vmatprep.subr.mxu0 %v8831_v21 }
 0x797   : > { %v6424_v39 = vpop.eup %6423  ;;  %5790 = vmatprep.mubr.msk.f32.mxu0 %vm987_vm0, %v3155_v35  ;;  %5862 = vmatpush3.msra.mxu0 %v8831_v21 }
 0x798   : > { %v6426_v58 = vpop.eup %6425  ;;  %5791 = vmatmul.mubr.msk.f32.gmra.mxu0 %vm987_vm0, %v3156_v45  ;;  %5863 = vmatprep.subr.mxu0 %v8788_v30  ;;  %v3158_v5 = vmul.f32 %v6424_v39, %v8713_v16 }
 0x799   : > { %5864 = vmatpush3.msra.mxu0 %v8788_v30  ;;  %v3157_v15 = vmul.f32 %v6426_v58, %v8721_v13 }
 0x79a   : > { %5865 = vmatprep.subr.mxu0 %v3490_v20 }
 0x79b   : > { %5793 = vmatprep.mubr.msk.f32.mxu0 %vm987_vm0, %v3157_v15  ;;  %5866 = vmatpush3.msra.mxu0 %v3490_v20  ;;  %v6428_v21 = vpop.eup %6427 }
 0x79c   : > { %5794 = vmatmul.mubr.msk.f32.gmra.mxu0 %vm987_vm0, %v3158_v5  ;;  %v3160_v30 = vmul.f32 %v6428_v21, %v8731_v36  ;;  %v9518_v36 = vld [vmem:[#allocation45_spill] sm:$0xff] }
 0x7b2   : > { %v3125_v23 = vpop.xlane.xlu1 %3124 }
 0x7b3   : > { %6429 = vrcp.f32 %v3125_v23 }
 0x7b6   : > { %v3488_v55 = vpop.permute.xlu1 %3487 }
 0x7b7   : > { %5867 = vmatprep.subr.mxu0 %v3488_v55 }
 0x7b8   : > { %5868 = vmatpush3.msra.mxu0 %v3488_v55 }
 0x7c0   : > { %v6430_v44 = vpop.eup %6429 }
 0x7c1   : > { %v3159_v16 = vmul.f32 %v6430_v44, %v8758_v2  ;;  %v9517_v2 = vld [vmem:[#allocation47_spill] sm:$0xff] }
 0x7c2   : > { %v3859_v19 = vpop.xlane.xlu0 %3858 }
 0x7c3   : > { %v3905_v13 = vsub.f32 %v8762_v62, %v3859_v19  ;;  %5796 = vmatprep.mubr.msk.f32.mxu0 %vm987_vm0, %v3159_v16 }
 0x7c4   : > { %5797 = vmatmul.mubr.msk.f32.gmra.mxu0 %vm987_vm0, %v3160_v30 }
 0x7c5   : > { %v3921_v9 = vmul.f32 1.442695, %v3905_v13  ;;  %5869 = vmatprep.mubr.f32.mxu0 %v9515_v29 }
 0x7c6   : > { %v3865_v40 = vpop.xlane.xlu0 %3864 }
 0x7c7   : > { %6431 = vpow2.f32 %v3921_v9  ;;  %v3907_v25 = vsub.f32 %v8764_v10, %v3865_v40 }
 0x7c8   : > { %5870 = vmatmul.mubr.f32.vlgmr.msra.gmra.mxu0 %v9516_v8 }
 0x7c9   : > { %v3925_v4 = vmul.f32 1.442695, %v3907_v25  ;;  %5872 = vmatprep.mubr.f32.mxu0 %v9517_v2 }
 0x7ca   : > { %v3868_v12 = vpop.xlane.xlu0 %3867 }
 0x7cb   : > { %6433 = vpow2.f32 %v3925_v4  ;;  %v3908_v27 = vsub.f32 %v8770_v33, %v3868_v12 }
 0x7cc   : > { %5873 = vmatmul.mubr.f32.gmra.mxu0 %v9518_v36 }
 0x7cd   : > { %v3927_v7 = vmul.f32 1.442695, %v3908_v27 }
 0x7ce   : > { %v3874_v51 = vpop.xlane.xlu0 %3873 }
 0x7cf   : > { %v3910_v41 = vsub.f32 %v8774_v18, %v3874_v51 }
 0x7d1   : > { %v3931_v3 = vmul.f32 1.442695, %v3910_v41 }
 0x7d2   : > { %v3880_v42 = vpop.xlane.xlu0 %3879 }
 0x7d3   : > { %v3912_v46 = vsub.f32 %v8778_v47, %v3880_v42 }
 0x7d4   : > { %v8910_v62 = vpop.eup %6431 }
 0x7d5   : > { %v3953_v54 = vsel %vm987_vm0, %v8910_v62, 0.0 }
 0x7d6   : > { %3954 = vadd.xlane.f32.xlu1 %v3953_v54  ;;  %v3886_v49 = vpop.xlane.xlu0 %3885 }
 0x7d7   : > { %v3914_v18 = vsub.f32 %v8784_v38, %v3886_v49 }
 0x7d8   : > { %v8914_v0 = vpop.eup %6433 }
 0x7d9   : > { %v3959_v10 = vsel %vm987_vm0, %v8914_v0, 0.0  ;;  %v3939_v47 = vmul.f32 1.442695, %v3914_v18  ;;  %v9522_v18 = vpack.i.bf16 %v8725_v17, %v8679_v56 }
 0x7da   : > { %3960 = vadd.xlane.f32.xlu1 %v3959_v10  ;;  %v3892_v45 = vpop.xlane.xlu0 %3891 }
 0x7de   : > { %v3898_v20 = vpop.xlane.xlu0 %3897 }
 0x7df   : > { %v3918_v38 = vsub.f32 %v8796_v11, %v3898_v20 }
 0x7e1   : > { %v3947_v29 = vmul.f32 1.442695, %v3918_v38 }
 0x7e7   : > { %v3862_v61 = vpop.xlane.xlu1 %3861 }
 0x7e8   : > { %v3906_v1 = vsub.f32 %v8810_v31, %v3862_v61  ;;  %v3935_v31 = vmul.f32 1.442695, %v3912_v46 }
 0x7ea   : > { %v3923_v52 = vmul.f32 1.442695, %v3906_v1 }
 0x7eb   : > { %v3871_v50 = vpop.xlane.xlu1 %3870 }
 0x7ec   : > { %6435 = vpow2.f32 %v3923_v52  ;;  %v3909_v59 = vsub.f32 %v8814_v24, %v3871_v50  ;;  %v3916_v24 = vsub.f32 %v8790_v26, %v3892_v45 }
 0x7ed   : > { %6437 = vpow2.f32 %v3927_v7 }
 0x7ee   : > { %v3929_v28 = vmul.f32 1.442695, %v3909_v59  ;;  %v3943_v21 = vmul.f32 1.442695, %v3916_v24  ;;  %v9529_v24 = vld [vmem:[#allocation25_spill] sm:$0xff] }
 0x7ef   : > { %v3877_v35 = vpop.xlane.xlu1 %3876 }
 0x7f0   : > { %6439 = vpow2.f32 %v3929_v28  ;;  %v3911_v33 = vsub.f32 %v8820_v37, %v3877_v35  ;;  %v9519_v35 = vpack.i.bf16 %v8735_v14, %v8687_v63  ;;  %v9525_v63 = vld [vmem:[#allocation64_spill] sm:$0xff]  ;;  %v9526_v14 = vld [vmem:[#allocation61_spill] sm:$0xff] }
 0x7f1   : > { %6441 = vpow2.f32 %v3931_v3 }
 0x7f2   : > { %v3933_v39 = vmul.f32 1.442695, %v3911_v33  ;;  %v9520_v33 = vpack.i.bf16 %v8739_v43, %v8693_v48  ;;  %v9527_v48 = vpack.i.bf16 %v9525_v63, %v9526_v14  ;;  %v9528_v43 = vld [vmem:[#allocation24_spill] sm:$0xff] }
 0x7f3   : > { %v3883_v58 = vpop.xlane.xlu1 %3882  ;;  %v6139_v20 = vpack.i.bf16 %v9529_v24, %v9528_v43 }
 0x7f4   : > { %6443 = vpow2.f32 %v3933_v39  ;;  %v3913_v5 = vsub.f32 %v8827_v60, %v3883_v58  ;;  %v3904_v60 = vpop.xlane.xlu0 %3903  ;;  %v9523_v39 = vld [vmem:[#allocation62_spill] sm:$0xff] }
 0x7f5   : > { %6445 = vpow2.f32 %v3935_v31  ;;  %v3920_v11 = vsub.f32 %v8804_v22, %v3904_v60  ;;  %v9521_v31 = vpack.i.bf16 %v8749_v32, %v8703_v6  ;;  %v9524_v58 = vld [vmem:[#allocation26_spill] sm:$0xff]  ;;  %v9530_v6 = vld [vmem:[#allocation63_spill] sm:$0xff]  ;;  %v9531_v32 = vld [vmem:[#allocation29_spill] sm:$0xff] }
 0x7f6   : > { %v3937_v15 = vmul.f32 1.442695, %v3913_v5  ;;  %v6154_v5 = vpack.i.bf16 %v9524_v58, %v9523_v39 }
 0x7f7   : > { %v3889_v23 = vpop.xlane.xlu1 %3888  ;;  %v3951_v36 = vmul.f32 1.442695, %v3920_v11 }
 0x7f8   : > { %6447 = vpow2.f32 %v3937_v15  ;;  %v3915_v55 = vsub.f32 %v8833_v57, %v3889_v23 }
 0x7f9   : > { %v8928_v37 = vpop.eup %6435  ;;  %6449 = vpow2.f32 %v3939_v47  ;;  %v6149_v47 = vpack.i.bf16 %v9531_v32, %v9530_v6 }
 0x7fa   : > { %v8930_v44 = vpop.eup %6437  ;;  %v3941_v16 = vmul.f32 1.442695, %v3915_v55  ;;  %v3956_v26 = vsel %vm987_vm0, %v8928_v37, 0.0 }
 0x7fb   : > { %3957 = vadd.xlane.f32.xlu0 %v3956_v26  ;;  %v3895_v19 = vpop.xlane.xlu1 %3894  ;;  %v3962_v57 = vsel %vm987_vm0, %v8930_v44, 0.0 }
 0x7fc   : > { %6451 = vpow2.f32 %v3941_v16  ;;  %v3917_v30 = vsub.f32 %v8837_v53, %v3895_v19 }
 0x7fd   : > { %v8936_v13 = vpop.eup %6439  ;;  %6453 = vpow2.f32 %v3943_v21 }
 0x7fe   : > { %v8940_v9 = vpop.eup %6441  ;;  %v3945_v40 = vmul.f32 1.442695, %v3917_v30  ;;  %v3965_v25 = vsel %vm987_vm0, %v8936_v13, 0.0 }
 0x7ff   : > { %3963 = vadd.xlane.f32.xlu0 %v3962_v57  ;;  %3966 = vadd.xlane.f32.xlu1 %v3965_v25  ;;  %v3901_v8 = vpop.xlane.xlu1 %3900  ;;  %v3968_v2 = vsel %vm987_vm0, %v8940_v9, 0.0 }
 0x800   : > { %6455 = vpow2.f32 %v3945_v40  ;;  %v3919_v53 = vsub.f32 %v8841_v34, %v3901_v8 }
 0x801   : > { %v8946_v4 = vpop.eup %6443  ;;  %6457 = vpow2.f32 %v3947_v29 }
 0x802   : > { %v3949_v54 = vmul.f32 1.442695, %v3919_v53  ;;  %v3971_v22 = vsel %vm987_vm0, %v8946_v4, 0.0  ;;  %v8952_v12 = vpop.eup %6445 }
 0x803   : > { %3969 = vadd.xlane.f32.xlu0 %v3968_v2  ;;  %3972 = vadd.xlane.f32.xlu1 %v3971_v22  ;;  %v3974_v34 = vsel %vm987_vm0, %v8952_v12, 0.0 }
 0x804   : > { %6459 = vpow2.f32 %v3949_v54 }
 0x805   : > { %v8954_v10 = vpop.eup %6447  ;;  %6461 = vpow2.f32 %v3951_v36 }
 0x806   : > { %v3977_v51 = vsel %vm987_vm0, %v8954_v10, 0.0  ;;  %v8960_v42 = vpop.eup %6449 }
 0x807   : > { %3975 = vadd.xlane.f32.xlu0 %v3974_v34  ;;  %3978 = vadd.xlane.f32.xlu1 %v3977_v51  ;;  %v3980_v1 = vsel %vm987_vm0, %v8960_v42, 0.0 }
 0x809   : > { %v8962_v27 = vpop.eup %6451 }
 0x80a   : > { %v8964_v61 = vpop.eup %6453  ;;  %v3983_v7 = vsel %vm987_vm0, %v8962_v27, 0.0 }
 0x80b   : > { %3981 = vadd.xlane.f32.xlu0 %v3980_v1  ;;  %3984 = vadd.xlane.f32.xlu1 %v3983_v7  ;;  %v3986_v49 = vsel %vm987_vm0, %v8964_v61, 0.0 }
 0x80d   : > { %v8970_v41 = vpop.eup %6455 }
 0x80e   : > { %v3989_v52 = vsel %vm987_vm0, %v8970_v41, 0.0  ;;  %v8976_v50 = vpop.eup %6457 }
 0x80f   : > { %3987 = vadd.xlane.f32.xlu0 %v3986_v49  ;;  %3990 = vadd.xlane.f32.xlu1 %v3989_v52  ;;  %v3992_v3 = vsel %vm987_vm0, %v8976_v50, 0.0 }
 0x811   : > { %v8978_v59 = vpop.eup %6459 }
 0x812   : > { %v3995_v46 = vsel %vm987_vm0, %v8978_v59, 0.0  ;;  %v8984_v28 = vpop.eup %6461 }
 0x813   : > { %3993 = vadd.xlane.f32.xlu0 %v3992_v3  ;;  %3996 = vadd.xlane.f32.xlu1 %v3995_v46  ;;  %v3998_v45 = vsel %vm987_vm0, %v8984_v28, 0.0 }
 0x817   : > { %3999 = vadd.xlane.f32.xlu0 %v3998_v45 }
 0x824   : > { %6120 = vrot.lane.b32.xlu1 %v9519_v35, %s6720_s22 }
 0x828   : > { %6135 = vrot.lane.b32.xlu1 %v9520_v33, %s6720_s22 }
 0x82c   : > { %6145 = vrot.lane.b32.xlu1 %v9521_v31, %s6720_s22 }
 0x82d   : > { %6125 = vrot.lane.b32.xlu0 %v9522_v18, %s6720_s22 }
 0x830   : > { %6155 = vrot.lane.b32.xlu1 %v6154_v5, %s6720_s22 }
 0x831   : > { %6130 = vrot.lane.b32.xlu0 %v9527_v48, %s6720_s22 }
 0x835   : > { %6140 = vrot.lane.b32.xlu0 %v6139_v20, %s6720_s22 }
 0x839   : > { %6150 = vrot.lane.b32.xlu0 %v6149_v47, %s6720_s22 }
 0x83e   : > { %v5777_v56 = vpop.f32.mrf.mxu0 }
 0x840   : > { %v3275_v17 = vpop.f32.mrf.mxu0 }
 0x844   : > { %v5780_v15 = vpop.f32.mrf.mxu0 }
 0x846   : > { %v3285_v23 = vpop.f32.mrf.mxu0 }
 0x84c   : > { %v5783_v55 = vpop.f32.mrf.mxu0 }
 0x84e   : > { %v3295_v21 = vpop.f32.mrf.mxu0 }
 0x850   : > { %v5786_v38 = vpop.f32.mrf.mxu0 }
 0x852   : > { %v3305_v16 = vpop.f32.mrf.mxu0 }
 0x854   : > { %v5789_v26 = vpop.f32.mrf.mxu0 }
 0x855   : > { %v6159_v60 = vpack.i.bf16 %v5789_v26, %v5777_v56 }
 0x856   : > { %v3315_v19 = vpop.f32.mrf.mxu0 }
 0x857   : > { %6160 = vrot.lane.b32.xlu1 %v6159_v60, %s6719_s16  ;;  %v6164_v57 = vpack.i.bf16 %v3315_v19, %v3275_v17 }
 0x858   : > { %v5792_v30 = vpop.f32.mrf.mxu0 }
 0x859   : > { %v6169_v25 = vpack.i.bf16 %v5792_v30, %v5780_v15 }
 0x85a   : > { %v3325_v29 = vpop.f32.mrf.mxu0 }
 0x85b   : > { %v6174_v11 = vpack.i.bf16 %v3325_v29, %v3285_v23  ;;  %6165 = vrot.lane.b32.xlu1 %v6164_v57, %s6719_s16 }
 0x85c   : > { %v5795_v40 = vpop.f32.mrf.mxu0 }
 0x85d   : > { %6175 = vrot.lane.b32.xlu0 %v6174_v11, %s6719_s16  ;;  %v6179_v36 = vpack.i.bf16 %v5795_v40, %v5783_v55 }
 0x85e   : > { %v3335_v8 = vpop.f32.mrf.mxu0 }
 0x85f   : > { %v6184_v53 = vpack.i.bf16 %v3335_v8, %v3295_v21  ;;  %6170 = vrot.lane.b32.xlu1 %v6169_v25, %s6719_s16  ;;  %v3955_v2 = vpop.xlane.xlu1 %3954  ;;  %v469_v8 = vld [vmem:[#allocation10 + $0x68] sm:$0xff] }
 0x860   : > { %6463 = vrcp.f32 %v3955_v2  ;;  %v464_v2 = vld [vmem:[#allocation10 + $0x40] sm:$0xff] }
 0x861   : > { %6185 = vrot.lane.b32.xlu0 %v6184_v53, %s6719_s16  ;;  %v465_v53 = vld [vmem:[#allocation10 + $0x48] sm:$0xff] }
 0x863   : > { %6180 = vrot.lane.b32.xlu1 %v6179_v36, %s6719_s16  ;;  %v3961_v34 = vpop.xlane.xlu1 %3960  ;;  %v463_v36 = vld [vmem:[#allocation10 + $0x38] sm:$0xff] }
 0x864   : > { %6465 = vrcp.f32 %v3961_v34  ;;  %v460_v34 = vld [vmem:[#allocation10 + $0x20] sm:$0xff] }
 0x86d   : > { %v6464_v54 = vpop.eup %6463 }
 0x86e   : > { %v4017_v22 = vmul.f32 %v6464_v54, %v8910_v62  ;;  %v462_v54 = vld [vmem:[#allocation10 + $0x30] sm:$0xff] }
 0x870   : > { %5915 = vmatprep.mubr.msk.f32.mxu0 %vm987_vm0, %v4017_v22  ;;  %v461_v22 = vld [vmem:[#allocation10 + $0x28] sm:$0xff] }
 0x871   : > { %v6466_v58 = vpop.eup %6465 }
 0x872   : > { %v4019_v43 = vmul.f32 %v6466_v58, %v8914_v0 }
 0x884   : > { %v5798_v51 = vpop.f32.mrf.mxu0  ;;  %v3958_v1 = vpop.xlane.xlu0 %3957 }
 0x885   : > { %v6189_v7 = vpack.i.bf16 %v5798_v51, %v5786_v38  ;;  %6467 = vrcp.f32 %v3958_v1  ;;  %v459_v51 = vld [vmem:[#allocation10 + $0x18] sm:$0xff] }
 0x886   : > { %v3345_v49 = vpop.f32.mrf.mxu0 }
 0x887   : > { %v6194_v52 = vpack.i.bf16 %v3345_v49, %v3305_v16  ;;  %6190 = vrot.lane.b32.xlu1 %v6189_v7, %s6719_s16 }
 0x888   : > { %v5871_v3 = vpop.f32.mrf.mxu0  ;;  %v3964_v46 = vpop.xlane.xlu0 %3963 }
 0x889   : > { %6469 = vrcp.f32 %v3964_v46  ;;  %v3967_v45 = vpop.xlane.xlu1 %3966  ;;  %6195 = vrot.lane.b32.xlu0 %v6194_v52, %s6719_s16 }
 0x88a   : > { %6471 = vrcp.f32 %v3967_v45  ;;  %v3601_v62 = vpop.f32.mrf.mxu0  ;;  %v457_v45 = vld [vmem:[#allocation10 + $0x8] sm:$0xff] }
 0x88c   : > { %v5874_v35 = vpop.f32.mrf.mxu0  ;;  %v3970_v33 = vpop.xlane.xlu0 %3969 }
 0x88d   : > { %6473 = vrcp.f32 %v3970_v33  ;;  %v3973_v31 = vpop.xlane.xlu1 %3972  ;;  %5907 = vmatprep.subr.mxu0 %v5874_v35 }
 0x88e   : > { %6475 = vrcp.f32 %v3973_v31  ;;  %v3611_v18 = vpop.f32.mrf.mxu0  ;;  %5908 = vmatpush3.msra.mxu0 %v5874_v35  ;;  %v456_v35 = vld [vmem:[#allocation10] sm:$0xff] }
 0x88f   : > { %5909 = vmatprep.subr.mxu0 %v3611_v18 }
 0x890   : > { %5910 = vmatpush3.msra.mxu0 %v3611_v18  ;;  %v3976_v39 = vpop.xlane.xlu0 %3975 }
 0x891   : > { %6477 = vrcp.f32 %v3976_v39  ;;  %v3979_v5 = vpop.xlane.xlu1 %3978  ;;  %5911 = vmatprep.subr.mxu0 %v5871_v3 }
 0x892   : > { %v6468_v63 = vpop.eup %6467  ;;  %6479 = vrcp.f32 %v3979_v5  ;;  %5912 = vmatpush3.msra.mxu0 %v5871_v3  ;;  %v458_v3 = vld [vmem:[#allocation10 + $0x10] sm:$0xff] }
 0x893   : > { %v4018_v14 = vmul.f32 %v6468_v63, %v8928_v37  ;;  %5913 = vmatprep.subr.mxu0 %v3601_v62 }
 0x894   : > { %5914 = vmatpush3.msra.mxu0 %v3601_v62  ;;  %v3982_v48 = vpop.xlane.xlu0 %3981 }
 0x895   : > { %6481 = vrcp.f32 %v3982_v48  ;;  %v3985_v24 = vpop.xlane.xlu1 %3984  ;;  %5916 = vmatmul.mubr.msk.f32.vlgmr.msra.gmra.mxu0 %vm987_vm0, %v4018_v14 }
 0x896   : > { %v6470_v20 = vpop.eup %6469  ;;  %6483 = vrcp.f32 %v3985_v24  ;;  %5918 = vmatprep.mubr.msk.f32.mxu0 %vm987_vm0, %v4019_v43 }
 0x897   : > { %v6472_v6 = vpop.eup %6471  ;;  %v4020_v32 = vmul.f32 %v6470_v20, %v8930_v44 }
 0x898   : > { %v3988_v47 = vpop.xlane.xlu0 %3987  ;;  %v4021_v56 = vmul.f32 %v6472_v6, %v8936_v13 }
 0x899   : > { %6485 = vrcp.f32 %v3988_v47  ;;  %v3991_v37 = vpop.xlane.xlu1 %3990  ;;  %5919 = vmatmul.mubr.msk.f32.gmra.mxu0 %vm987_vm0, %v4020_v32 }
 0x89a   : > { %v6474_v17 = vpop.eup %6473  ;;  %6487 = vrcp.f32 %v3991_v37  ;;  %5921 = vmatprep.mubr.msk.f32.mxu0 %vm987_vm0, %v4021_v56 }
 0x89b   : > { %v6476_v0 = vpop.eup %6475  ;;  %v4022_v15 = vmul.f32 %v6474_v17, %v8940_v9 }
 0x89c   : > { %v3994_v23 = vpop.xlane.xlu0 %3993  ;;  %v4023_v55 = vmul.f32 %v6476_v0, %v8946_v4 }
 0x89d   : > { %6489 = vrcp.f32 %v3994_v23  ;;  %v3997_v21 = vpop.xlane.xlu1 %3996  ;;  %5922 = vmatmul.mubr.msk.f32.gmra.mxu0 %vm987_vm0, %v4022_v15 }
 0x89e   : > { %v6478_v44 = vpop.eup %6477  ;;  %6491 = vrcp.f32 %v3997_v21  ;;  %5924 = vmatprep.mubr.msk.f32.mxu0 %vm987_vm0, %v4023_v55 }
 0x89f   : > { %v6480_v13 = vpop.eup %6479  ;;  %v4024_v38 = vmul.f32 %v6478_v44, %v8952_v12 }
 0x8a0   : > { %v4000_v16 = vpop.xlane.xlu0 %3999  ;;  %v4025_v26 = vmul.f32 %v6480_v13, %v8954_v10 }
 0x8a1   : > { %6493 = vrcp.f32 %v4000_v16  ;;  %5925 = vmatmul.mubr.msk.f32.gmra.mxu0 %vm987_vm0, %v4024_v38  ;;  %v6121_v0 = vpop.permute.xlu1 %6120 }
 0x8a2   : > { %v6482_v9 = vpop.eup %6481  ;;  %5927 = vmatprep.mubr.msk.f32.mxu0 %vm987_vm0, %v4025_v26 }
 0x8a3   : > { %v6484_v4 = vpop.eup %6483  ;;  %v4026_v60 = vmul.f32 %v6482_v9, %v8960_v42 }
 0x8a4   : > { %v4027_v19 = vmul.f32 %v6484_v4, %v8962_v27  ;;  %v6126_v55 = vpop.permute.xlu0 %6125 }
 0x8a5   : > { %5928 = vmatmul.mubr.msk.f32.gmra.mxu0 %vm987_vm0, %v4026_v60  ;;  %v6136_v15 = vpop.permute.xlu1 %6135  ;;  %v6122_v60 = vunpack.i.l.bf16 %v6121_v0 }
 0x8a6   : > { %v6486_v30 = vpop.eup %6485  ;;  %5930 = vmatprep.mubr.msk.f32.mxu0 %vm987_vm0, %v4027_v19 }
 0x8a7   : > { %v6488_v12 = vpop.eup %6487  ;;  %v4028_v57 = vmul.f32 %v6486_v30, %v8964_v61  ;;  %v471_v61 = vld [vmem:[#allocation10 + $0x78] sm:$0xff]  ;;  %v6123_v30 = vunpack.i.h.bf16 %v6121_v0 }
 0x8a8   : > { %v4029_v10 = vmul.f32 %v6488_v12, %v8970_v41  ;;  %v470_v41 = vld [vmem:[#allocation10 + $0x70] sm:$0xff]  ;;  %5939 = vmatprep.subr.mxu0 %v471_v61  ;;  %5995 = vmatprep.subr.mxu1 %v471_v61  ;;  %v6131_v44 = vpop.permute.xlu0 %6130  ;;  %v6128_v12 = vunpack.i.h.bf16 %v6126_v55 }
 0x8a9   : > { %5931 = vmatmul.mubr.msk.f32.gmra.mxu0 %vm987_vm0, %v4028_v57  ;;  %6011 = vmatpush3.msra.mxu1 %v471_v61  ;;  %v6146_v23 = vpop.permute.xlu1 %6145  ;;  %v6127_v57 = vunpack.i.l.bf16 %v6126_v55 }
 0x8aa   : > { %v6490_v29 = vpop.eup %6489  ;;  %5933 = vmatprep.mubr.msk.f32.mxu0 %vm987_vm0, %v4029_v10  ;;  %5940 = vmatpush3.msra.mxu0 %v471_v61  ;;  %v6138_v10 = vunpack.i.h.bf16 %v6136_v15 }
 0x8ab   : > { %v6492_v11 = vpop.eup %6491  ;;  %v4030_v42 = vmul.f32 %v6490_v29, %v8976_v50  ;;  %5941 = vmatprep.subr.mxu0 %v470_v41  ;;  %5996 = vmatprep.subr.mxu1 %v470_v41  ;;  %v468_v50 = vld [vmem:[#allocation10 + $0x60] sm:$0xff]  ;;  %v6137_v29 = vunpack.i.l.bf16 %v6136_v15 }
 0x8ac   : > { %v4031_v27 = vmul.f32 %v6492_v11, %v8978_v59  ;;  %5942 = vmatpush3.msra.mxu0 %v470_v41  ;;  %6012 = vmatpush3.msra.mxu1 %v470_v41  ;;  %v467_v59 = vld [vmem:[#allocation10 + $0x58] sm:$0xff]  ;;  %v6141_v38 = vpop.permute.xlu0 %6140  ;;  %v9532_v41 = vld [vmem:[#allocation30_spill] sm:$0xff] }
 0x8ad   : > { %5934 = vmatmul.mubr.msk.f32.gmra.mxu0 %vm987_vm0, %v4030_v42  ;;  %5943 = vmatprep.subr.mxu0 %v469_v8  ;;  %v9065_v21 = vpop.permute.xlu1 %6155  ;;  %v6133_v42 = vunpack.i.h.bf16 %v6131_v44 }
 0x8ae   : > { %v6494_v40 = vpop.eup %6493  ;;  %5936 = vmatprep.mubr.msk.f32.mxu0 %vm987_vm0, %v4031_v27  ;;  %5997 = vmatprep.subr.mxu1 %v469_v8  ;;  %v6132_v27 = vunpack.i.l.bf16 %v6131_v44 }
 0x8af   : > { %v4032_v25 = vmul.f32 %v6494_v40, %v8984_v28  ;;  %5944 = vmatpush3.msra.mxu0 %v469_v8  ;;  %6013 = vmatpush3.msra.mxu1 %v469_v8  ;;  %v466_v28 = vld [vmem:[#allocation10 + $0x50] sm:$0xff]  ;;  %v6147_v40 = vunpack.i.l.bf16 %v6146_v23  ;;  %v4418_v8 = vsel %vm987_vm0, %v9532_v41, %v6122_v60 }
 0x8b0   : > { %5945 = vmatprep.subr.mxu0 %v468_v50  ;;  %5998 = vmatprep.subr.mxu1 %v468_v50  ;;  %v9067_v26 = vpop.permute.xlu0 %6150 }
 0x8b1   : > { %5937 = vmatmul.mubr.msk.f32.gmra.mxu0 %vm987_vm0, %v4032_v25  ;;  %6014 = vmatpush3.msra.mxu1 %v468_v50  ;;  %v6148_v25 = vunpack.i.h.bf16 %v6146_v23 }
 0x8b2   : > { %5946 = vmatpush3.msra.mxu0 %v468_v50  ;;  %5999 = vmatprep.subr.mxu1 %v467_v59  ;;  %v9533_v50 = vld [vmem:[#allocation39_spill] sm:$0xff] }
 0x8b3   : > { %5947 = vmatprep.subr.mxu0 %v467_v59  ;;  %6015 = vmatpush3.msra.mxu1 %v467_v59 }
 0x8b4   : > { %5948 = vmatpush3.msra.mxu0 %v467_v59  ;;  %6000 = vmatprep.subr.mxu1 %v466_v28  ;;  %v4427_v59 = vsel %vm987_vm0, %v9533_v50, %v6128_v12 }
 0x8b5   : > { %5949 = vmatprep.subr.mxu0 %v466_v28  ;;  %6016 = vmatpush3.msra.mxu1 %v466_v28 }
 0x8b6   : > { %5950 = vmatpush3.msra.mxu0 %v466_v28  ;;  %6001 = vmatprep.subr.mxu1 %v465_v53  ;;  %v6143_v28 = vunpack.i.h.bf16 %v6141_v38 }
 0x8b7   : > { %5951 = vmatprep.subr.mxu0 %v465_v53  ;;  %6017 = vmatpush3.msra.mxu1 %v465_v53 }
 0x8b8   : > { %5952 = vmatpush3.msra.mxu0 %v465_v53  ;;  %6002 = vmatprep.subr.mxu1 %v464_v2  ;;  %v6142_v53 = vunpack.i.l.bf16 %v6141_v38 }
 0x8b9   : > { %5953 = vmatprep.subr.mxu0 %v464_v2  ;;  %6018 = vmatpush3.msra.mxu1 %v464_v2 }
 0x8ba   : > { %5954 = vmatpush3.msra.mxu0 %v464_v2  ;;  %6003 = vmatprep.subr.mxu1 %v463_v36  ;;  %v9534_v2 = vld [vmem:[#allocation52_spill] sm:$0xff] }
 0x8bb   : > { %5955 = vmatprep.subr.mxu0 %v463_v36  ;;  %6019 = vmatpush3.msra.mxu1 %v463_v36 }
 0x8bc   : > { %5956 = vmatpush3.msra.mxu0 %v463_v36  ;;  %6004 = vmatprep.subr.mxu1 %v462_v54  ;;  %v4426_v36 = vsel %vm987_vm0, %v9534_v2, %v6123_v30 }
 0x8bd   : > { %5957 = vmatprep.subr.mxu0 %v462_v54  ;;  %6020 = vmatpush3.msra.mxu1 %v462_v54 }
 0x8be   : > { %5958 = vmatpush3.msra.mxu0 %v462_v54  ;;  %6005 = vmatprep.subr.mxu1 %v461_v22  ;;  %v9535_v54 = vld [vmem:[#allocation32_spill] sm:$0xff] }
 0x8bf   : > { %5959 = vmatprep.subr.mxu0 %v461_v22  ;;  %6021 = vmatpush3.msra.mxu1 %v461_v22 }
 0x8c0   : > { %5960 = vmatpush3.msra.mxu0 %v461_v22  ;;  %6006 = vmatprep.subr.mxu1 %v460_v34  ;;  %v4419_v22 = vsel %vm987_vm0, %v9535_v54, %v6127_v57 }
 0x8c1   : > { %5961 = vmatprep.subr.mxu0 %v460_v34  ;;  %6022 = vmatpush3.msra.mxu1 %v460_v34 }
 0x8c2   : > { %5962 = vmatpush3.msra.mxu0 %v460_v34  ;;  %6007 = vmatprep.subr.mxu1 %v459_v51  ;;  %v9536_v34 = vld [vmem:[#allocation34_spill] sm:$0xff] }
 0x8c3   : > { %5963 = vmatprep.subr.mxu0 %v459_v51  ;;  %6023 = vmatpush3.msra.mxu1 %v459_v51 }
 0x8c4   : > { %5964 = vmatpush3.msra.mxu0 %v459_v51  ;;  %6008 = vmatprep.subr.mxu1 %v458_v3  ;;  %v4421_v51 = vsel %vm987_vm0, %v9536_v34, %v6137_v29 }
 0x8c5   : > { %5965 = vmatprep.subr.mxu0 %v458_v3  ;;  %6024 = vmatpush3.msra.mxu1 %v458_v3 }
 0x8c6   : > { %5966 = vmatpush3.msra.mxu0 %v458_v3  ;;  %6009 = vmatprep.subr.mxu1 %v457_v45  ;;  %v9538_v3 = vld [vmem:[#allocation38_spill] sm:$0xff] }
 0x8c7   : > { %5967 = vmatprep.subr.mxu0 %v457_v45  ;;  %6025 = vmatpush3.msra.mxu1 %v457_v45 }
 0x8c8   : > { %5968 = vmatpush3.msra.mxu0 %v457_v45  ;;  %6010 = vmatprep.subr.mxu1 %v456_v35 }
 0x8c9   : > { %5969 = vmatprep.subr.mxu0 %v456_v35  ;;  %6026 = vmatpush3.msra.mxu1 %v456_v35  ;;  %v6161_v13 = vpop.permute.xlu1 %6160 }
 0x8ca   : > { %5970 = vmatpush3.msra.mxu0 %v456_v35  ;;  %v6162_v45 = vunpack.i.l.bf16 %v6161_v13 }
 0x8cc   : > { %v4436_v15 = vsel %vm4434_vm1, %v4419_v22, %v6162_v45 }
 0x8cd   : > { %v6166_v16 = vpop.permute.xlu1 %6165 }
 0x8cf   : > { %v9071_v4 = vpop.permute.xlu0 %6175 }
 0x8d0   : > { %v6178_v44 = vunpack.i.h.bf16 %v9071_v4 }
 0x8d1   : > { %v9069_v9 = vpop.permute.xlu1 %6170 }
 0x8d2   : > { %v6173_v30 = vunpack.i.h.bf16 %v9069_v9  ;;  %v6172_v12 = vunpack.i.l.bf16 %v9069_v9 }
 0x8d3   : > { %v9075_v11 = vpop.permute.xlu0 %6185 }
 0x8d4   : > { %v6187_v41 = vunpack.i.l.bf16 %v9075_v11  ;;  %v4438_v22 = vsel %vm4434_vm1, %v4421_v51, %v6172_v12 }
 0x8d5   : > { %v9073_v19 = vpop.permute.xlu1 %6180 }
 0x8d6   : > { %v6183_v9 = vunpack.i.h.bf16 %v9073_v19 }
 0x8f9   : > { %v9077_v61 = vpop.permute.xlu1 %6190 }
 0x955   : > { %v5917_v1 = vpop.f32.mrf.mxu0 }
 0x957   : > { %v4147_v7 = vpop.f32.mrf.mxu0 }
 0x959   : > { %v5920_v49 = vpop.f32.mrf.mxu0 }
 0x95b   : > { %v4157_v52 = vpop.f32.mrf.mxu0 }
 0x95d   : > { %v5923_v46 = vpop.f32.mrf.mxu0 }
 0x95f   : > { %v4167_v62 = vpop.f32.mrf.mxu0 }
 0x961   : > { %v5926_v33 = vpop.f32.mrf.mxu0 }
 0x963   : > { %v4177_v31 = vpop.f32.mrf.mxu0 }
 0x965   : > { %v5929_v18 = vpop.f32.mrf.mxu0 }
 0x966   : > { %v6199_v39 = vpack.i.bf16 %v5929_v18, %v5917_v1  ;;  %v6163_v1 = vunpack.i.h.bf16 %v6161_v13  ;;  %v6158_v18 = vunpack.i.h.bf16 %v9065_v21  ;;  %v6177_v13 = vunpack.i.l.bf16 %v9071_v4 }
 0x967   : > { %v4187_v58 = vpop.f32.mrf.mxu0 }
 0x968   : > { %v6204_v5 = vpack.i.bf16 %v4187_v58, %v4147_v7  ;;  %6200 = vrot.lane.b32.xlu1 %v6199_v39, %s6718_s12  ;;  %v9089_v7 = vpop.permute.xlu0 %6195  ;;  %v6168_v39 = vunpack.i.h.bf16 %v6166_v16  ;;  %v6167_v58 = vunpack.i.l.bf16 %v6166_v16 }
 0x969   : > { %v5932_v63 = vpop.f32.mrf.mxu0  ;;  %v6198_v51 = vunpack.i.h.bf16 %v9089_v7 }
 0x96a   : > { %v6209_v14 = vpack.i.bf16 %v5932_v63, %v5920_v49  ;;  %6205 = vrot.lane.b32.xlu0 %v6204_v5, %s6718_s12  ;;  %v9537_v49 = vld [vmem:[#allocation42_spill] sm:$0xff]  ;;  %v9541_v63 = vld [vmem:[#allocation19_spill] sm:$0xff]  ;;  %v4435_v16 = vsel %vm4434_vm1, %v4418_v8, %v6167_v58  ;;  %v4443_v60 = vsel %vm4434_vm1, %v4426_v36, %v6168_v39 }
 0x96b   : > { %v4197_v48 = vpop.f32.mrf.mxu0 }
 0x96c   : > { %v6214_v43 = vpack.i.bf16 %v4197_v48, %v4157_v52  ;;  %6210 = vrot.lane.b32.xlu1 %v6209_v14, %s6718_s12  ;;  %v4429_v52 = vsel %vm987_vm0, %v9537_v49, %v6138_v10  ;;  %v9104_v14 = vsel %vm987_vm0, %v9541_v63, %v6148_v25  ;;  %v6157_v48 = vunpack.i.l.bf16 %v9065_v21  ;;  %v4931_v21 = vld [vmem:[%s9254_s6] ss:$0 sm:$0xff] }
 0x96d   : > { %v5935_v24 = vpop.f32.mrf.mxu0  ;;  %v6188_v25 = vunpack.i.h.bf16 %v9075_v11  ;;  %v4446_v11 = vsel %vm4434_vm1, %v4429_v52, %v6173_v30  ;;  %v6197_v52 = vunpack.i.l.bf16 %v9089_v7  ;;  %v4448_v58 = vsel %vm4434_vm1, %v9104_v14, %v6183_v9 }
 0x96e   : > { %v6219_v20 = vpack.i.bf16 %v5935_v24, %v5923_v46  ;;  %6215 = vrot.lane.b32.xlu0 %v6214_v43, %s6718_s12  ;;  %v9095_v46 = vsel %vm987_vm0, %v9538_v3, %v6147_v40  ;;  %v6153_v43 = vunpack.i.h.bf16 %v9067_v26  ;;  %v9542_v24 = vld [vmem:[#allocation36_spill] sm:$0xff]  ;;  %v6192_v63 = vunpack.i.l.bf16 %v9077_v61 }
 0x96f   : > { %v4207_v6 = vpop.f32.mrf.mxu0 }
 0x970   : > { %v6224_v32 = vpack.i.bf16 %v4207_v6, %v4167_v62  ;;  %6220 = vrot.lane.b32.xlu1 %v6219_v20, %s6718_s12  ;;  %v9539_v62 = vld [vmem:[#allocation33_spill] sm:$0xff]  ;;  %v4422_v20 = vsel %vm987_vm0, %v9542_v24, %v6142_v53  ;;  %v9543_v6 = vld [vmem:[#allocation55_spill] sm:$0xff] }
 0x971   : > { %v5938_v47 = vpop.f32.mrf.mxu0  ;;  %v4420_v35 = vsel %vm987_vm0, %v9539_v62, %v6132_v27 }
 0x972   : > { %v6234_v56 = vpack.i.bf16 %v5938_v47, %v5926_v33  ;;  %6225 = vrot.lane.b32.xlu0 %v6224_v32, %s6718_s12  ;;  %v9540_v33 = vld [vmem:[#allocation41_spill] sm:$0xff]  ;;  %v4430_v32 = vsel %vm987_vm0, %v9543_v6, %v6143_v28  ;;  %v6152_v47 = vunpack.i.l.bf16 %v9067_v26  ;;  %v4437_v53 = vsel %vm4434_vm1, %v4420_v35, %v6177_v13 }
 0x973   : > { %v4217_v37 = vpop.f32.mrf.mxu0  ;;  %v4439_v35 = vsel %vm4434_vm1, %v4422_v20, %v6187_v41 }
 0x974   : > { %v6229_v17 = vpack.i.bf16 %v4217_v37, %v4177_v31  ;;  %6235 = vrot.lane.b32.xlu1 %v6234_v56, %s6718_s12  ;;  %v4428_v31 = vsel %vm987_vm0, %v9540_v33, %v6133_v42  ;;  %v4444_v56 = vsel %vm4434_vm1, %v4427_v59, %v6163_v1  ;;  %v6182_v59 = vunpack.i.l.bf16 %v9073_v19 }
 0x975   : > { %v4445_v2 = vsel %vm4434_vm1, %v4428_v31, %v6178_v44  ;;  %v4447_v33 = vsel %vm4434_vm1, %v4430_v32, %v6188_v25 }
 0x976   : > { %6230 = vrot.lane.b32.xlu0 %v6229_v17, %s6718_s12  ;;  %v4440_v39 = vsel %vm4434_vm1, %v9095_v46, %v6182_v59 }
 0x9da   : > { %v6201_v5 = vpop.permute.xlu1 %6200 }
 0x9db   : > { %v6203_v37 = vunpack.i.h.bf16 %v6201_v5  ;;  %v6202_v17 = vunpack.i.l.bf16 %v6201_v5  ;;  %v6193_v5 = vunpack.i.h.bf16 %v9077_v61  ;;  %v9544_v61 = vld [vmem:[#allocation44_spill] sm:$0xff] }
 0x9dc   : > { %v6206_v0 = vpop.permute.xlu0 %6205  ;;  %v4424_v14 = vsel %vm987_vm0, %v9544_v61, %v6152_v47 }
 0x9dd   : > { %v6208_v23 = vunpack.i.h.bf16 %v6206_v0  ;;  %v6207_v55 = vunpack.i.l.bf16 %v6206_v0  ;;  %v4453_v29 = vsel %vm4451_vm2, %v4436_v15, %v6202_v17  ;;  %v4461_v4 = vsel %vm4451_vm2, %v4444_v56, %v6203_v37  ;;  %v9545_v0 = vld [vmem:[#allocation21_spill] sm:$0xff] }
 0x9de   : > { %v6211_v38 = vpop.permute.xlu1 %6210  ;;  %v4432_v15 = vsel %vm987_vm0, %v9545_v0, %v6153_v43  ;;  %v4441_v44 = vsel %vm4434_vm1, %v4424_v14, %v6197_v52 }
 0x9df   : > { %v4452_v57 = vsel %vm4451_vm2, %v4435_v16, %v6207_v55  ;;  %v4460_v10 = vsel %vm4451_vm2, %v4443_v60, %v6208_v23  ;;  %v6213_v42 = vunpack.i.h.bf16 %v6211_v38  ;;  %v6212_v27 = vunpack.i.l.bf16 %v6211_v38  ;;  %v9546_v23 = vld [vmem:[#allocation50_spill] sm:$0xff]  ;;  %v9547_v38 = vld [vmem:[#allocation60_spill] sm:$0xff] }
 0x9e0   : > { %v6216_v40 = vpop.permute.xlu0 %6215  ;;  %5971 = vmatprep.mubr.f32.mxu0 %v4452_v57  ;;  %5983 = vmatprep.mubr.f32.mxu1 %v4460_v10  ;;  %v4425_v55 = vsel %vm987_vm0, %v9546_v23, %v6157_v48  ;;  %v4449_v13 = vsel %vm4434_vm1, %v4432_v15, %v6198_v51  ;;  %v4433_v16 = vsel %vm987_vm0, %v9547_v38, %v6158_v18 }
 0x9e1   : > { %v6218_v8 = vunpack.i.h.bf16 %v6216_v40  ;;  %v6217_v50 = vunpack.i.l.bf16 %v6216_v40  ;;  %5972 = vmatmul.mubr.f32.vlgmr.msra.gmra.mxu0 %v4453_v29  ;;  %5984 = vmatmul.mubr.f32.vlgmr.msra.gmra.mxu1 %v4461_v4  ;;  %v4455_v19 = vsel %vm4451_vm2, %v4438_v22, %v6212_v27  ;;  %v4463_v3 = vsel %vm4451_vm2, %v4446_v11, %v6213_v42 }
 0x9e2   : > { %v6221_v28 = vpop.permute.xlu1 %6220  ;;  %v4442_v43 = vsel %vm4434_vm1, %v4425_v55, %v6192_v63  ;;  %v4450_v60 = vsel %vm4434_vm1, %v4433_v16, %v6193_v5 }
 0x9e3   : > { %v4454_v36 = vsel %vm4451_vm2, %v4437_v53, %v6217_v50  ;;  %v4462_v54 = vsel %vm4451_vm2, %v4445_v2, %v6218_v8  ;;  %v6223_v34 = vunpack.i.h.bf16 %v6221_v28  ;;  %v6222_v1 = vunpack.i.l.bf16 %v6221_v28 }
 0x9e4   : > { %v6226_v49 = vpop.permute.xlu0 %6225  ;;  %5974 = vmatprep.mubr.f32.mxu0 %v4454_v36  ;;  %5986 = vmatprep.mubr.f32.mxu1 %v4462_v54 }
 0x9e5   : > { %v6228_v45 = vunpack.i.h.bf16 %v6226_v49  ;;  %v6227_v62 = vunpack.i.l.bf16 %v6226_v49  ;;  %5975 = vmatmul.mubr.f32.gmra.mxu0 %v4455_v19  ;;  %5987 = vmatmul.mubr.f32.gmra.mxu1 %v4463_v3  ;;  %v4457_v7 = vsel %vm4451_vm2, %v4440_v39, %v6222_v1  ;;  %v4465_v46 = vsel %vm4451_vm2, %v4448_v58, %v6223_v34 }
 0x9e6   : > { %v6236_v31 = vpop.permute.xlu1 %6235 }
 0x9e7   : > { %v4456_v24 = vsel %vm4451_vm2, %v4439_v35, %v6227_v62  ;;  %v4464_v20 = vsel %vm4451_vm2, %v4447_v33, %v6228_v45  ;;  %v6238_v6 = vunpack.i.h.bf16 %v6236_v31  ;;  %v6237_v32 = vunpack.i.l.bf16 %v6236_v31 }
 0x9e8   : > { %v6231_v56 = vpop.permute.xlu0 %6230  ;;  %5977 = vmatprep.mubr.f32.mxu0 %v4456_v24  ;;  %5989 = vmatprep.mubr.f32.mxu1 %v4464_v20 }
 0x9e9   : > { %v6233_v37 = vunpack.i.h.bf16 %v6231_v56  ;;  %v6232_v17 = vunpack.i.l.bf16 %v6231_v56  ;;  %5978 = vmatmul.mubr.f32.gmra.mxu0 %v4457_v7  ;;  %5990 = vmatmul.mubr.f32.gmra.mxu1 %v4465_v46  ;;  %v4459_v48 = vsel %vm4451_vm2, %v4442_v43, %v6237_v32  ;;  %v4467_v30 = vsel %vm4451_vm2, %v4450_v60, %v6238_v6 }
 0x9eb   : > { %v4458_v47 = vsel %vm4451_vm2, %v4441_v44, %v6232_v17  ;;  %v4466_v26 = vsel %vm4451_vm2, %v4449_v13, %v6233_v37 }
 0x9ec   : > { %5980 = vmatprep.mubr.f32.mxu0 %v4458_v47  ;;  %5992 = vmatprep.mubr.f32.mxu1 %v4466_v26 }
 0x9ed   : > { %5981 = vmatmul.mubr.f32.gmra.mxu0 %v4459_v48  ;;  %5993 = vmatmul.mubr.f32.gmra.mxu1 %v4467_v30 }
 0xaa1   : > { %v5973_v18 = vpop.f32.mrf.mxu0  ;;  %v5985_v12 = vpop.f32.mrf.mxu1 }
 0xaa2   : > { %v4546_v57 = vadd.f32 %v5973_v18, %v4931_v21  ;;  %v4586_v10 = vadd.f32 %v5985_v12, %v4931_v21 }
 0xaa3   : > { %v4540_v29 = vpop.f32.mrf.mxu0  ;;  %v4580_v42 = vpop.f32.mrf.mxu1 }
 0xaa4   : > { %4620 = vst [vmem:[%s9180_s20 + $0x8] sm:$0xff] %v4546_v57  ;;  %4628 = vst [vmem:[%s9180_s20 + $0x48] sm:$0xff] %v4586_v10  ;;  %v4541_v27 = vadd.f32 %v4931_v21, %v4540_v29  ;;  %v4581_v40 = vadd.f32 %v4931_v21, %v4580_v42 }
 0xaa5   : > { %v5976_v4 = vpop.f32.mrf.mxu0  ;;  %v5988_v25 = vpop.f32.mrf.mxu1 }
 0xaa6   : > { %4619 = vst [vmem:[%s9180_s20] sm:$0xff] %v4541_v27  ;;  %4627 = vst [vmem:[%s9180_s20 + $0x40] sm:$0xff] %v4581_v40  ;;  %v4556_v41 = vadd.f32 %v5976_v4, %v4931_v21  ;;  %v4596_v8 = vadd.f32 %v5988_v25, %v4931_v21 }
 0xaa7   : > { %v4550_v50 = vpop.f32.mrf.mxu0  ;;  %v4590_v9 = vpop.f32.mrf.mxu1 }
 0xaa8   : > { %4622 = vst [vmem:[%s9180_s20 + $0x18] sm:$0xff] %v4556_v41  ;;  %4630 = vst [vmem:[%s9180_s20 + $0x58] sm:$0xff] %v4596_v8  ;;  %v4551_v59 = vadd.f32 %v4931_v21, %v4550_v50  ;;  %v4591_v28 = vadd.f32 %v4931_v21, %v4590_v9 }
 0xaa9   : > { %v5979_v53 = vpop.f32.mrf.mxu0  ;;  %v5991_v2 = vpop.f32.mrf.mxu1 }
 0xaaa   : > { %4621 = vst [vmem:[%s9180_s20 + $0x10] sm:$0xff] %v4551_v59  ;;  %4629 = vst [vmem:[%s9180_s20 + $0x50] sm:$0xff] %v4591_v28  ;;  %v4566_v36 = vadd.f32 %v5979_v53, %v4931_v21  ;;  %v4606_v54 = vadd.f32 %v5991_v2, %v4931_v21 }
 0xaab   : > { %v4560_v22 = vpop.f32.mrf.mxu0  ;;  %v4600_v11 = vpop.f32.mrf.mxu1 }
 0xaac   : > { %4624 = vst [vmem:[%s9180_s20 + $0x28] sm:$0xff] %v4566_v36  ;;  %4632 = vst [vmem:[%s9180_s20 + $0x68] sm:$0xff] %v4606_v54  ;;  %v4561_v34 = vadd.f32 %v4931_v21, %v4560_v22  ;;  %v4601_v1 = vadd.f32 %v4931_v21, %v4600_v11 }
 0xaad   : > { %v5982_v49 = vpop.f32.mrf.mxu0  ;;  %v5994_v19 = vpop.f32.mrf.mxu1 }
 0xaae   : > { %4623 = vst [vmem:[%s9180_s20 + $0x20] sm:$0xff] %v4561_v34  ;;  %4631 = vst [vmem:[%s9180_s20 + $0x60] sm:$0xff] %v4601_v1  ;;  %v4576_v3 = vadd.f32 %v5982_v49, %v4931_v21  ;;  %v4616_v45 = vadd.f32 %v5994_v19, %v4931_v21 }
 0xaaf   : > { %v4570_v62 = vpop.f32.mrf.mxu0  ;;  %v4610_v35 = vpop.f32.mrf.mxu1 }
 0xab0   : > { %4626 = vst [vmem:[%s9180_s20 + $0x38] sm:$0xff] %v4576_v3  ;;  %4634 = vst [vmem:[%s9180_s20 + $0x78] sm:$0xff] %v4616_v45  ;;  %v4571_v33 = vadd.f32 %v4931_v21, %v4570_v62  ;;  %v4611_v51 = vadd.f32 %v4931_v21, %v4610_v35 }
 0xab2   : > { %4625 = vst [vmem:[%s9180_s20 + $0x30] sm:$0xff] %v4571_v33  ;;  %4633 = vst [vmem:[%s9180_s20 + $0x70] sm:$0xff] %v4611_v51 }
 0xab3   : > { %6643 = shalt.err (!%p6640_p6)
}
 0xab4   : > { %s6644_s30 = scalar_lea.hbm %s9199_s29, 2048  ;;  %s6648_s16 = scalar_lea.hbm %s9255_s7, 4096 }
 0xab5   : > { %p6645_p13 = scmp.ne.s32.totalorder %s9199_s29, %s6644_s30  ;;  %p6649_p7 = scmp.lt.s32.totalorder %s9199_s29, %s9255_s7 }
 0xab6   : > { %p6650_p0 = scmp.lt.s32.totalorder %s6648_s16, %s6644_s30 }
 0xab7   : > { %p6646_p8 = pnand %p6645_p13, %p9548_p1 }
 0xab8   : > { %p6651_p5 = por %p6650_p0, %p6649_p7 }
 0xab9   : > { %p6647_p11 = pneg %p6646_p8 }
 0xabb   : > { %p6652_p10 = pnand %p6651_p5, %p6647_p11 }
 0xabd   : > { %6655 = shalt.err (!%p6652_p10)
}
 0xabe   : > { %s6722_s11 = smov 128   ;;  %s6723_s20 = smov 8  }
 0xabf   : > { %6043 = dma.vmem_to_hbm [thread:$0]  (%p9548_p1), %s9201_s14, 2048, %s9199_s29, %s4636_s28, %s6722_s11, %s6722_s11, %s6723_s20  }
 0xac0 PF: > { %s4664_s2 = sand.u32 1, %s6694_s24   ;;  %p9549_p2 = scmp.ne.s32.totalorder %s9351_s8, 0 }
 0xac1   : > { %p9550_p3 = scmp.ge.s32.totalorder %s6706_s27, 2  ;;  %s4665_s23 = scalar_lea.sflag [#allocation4], %s4664_s2 }
 0xac3   : > { %p6063_p9 = pnand %p9550_p3, %p9549_p2 }
 0xac5   : > { %p6064_p12 = pneg %p6063_p9 }
 0xac7   : > { %6689 = dma.done.wait (%p6064_p12), %s4665_s23, 2048  }
 0xac8   : > { %6691 = vsyncadd (%p6064_p12), %s4665_s23, 4294965248  ;;  %p24_p4 = scmp.ge.s32.totalorder %s6839_s13, 4   ;;  %s9551_s24 = smov %s6698_s25 }
 0xac9   : > { %s9552_s25 = smov %s6702_s26  ;;  %s9553_s26 = smov %s6860_s18 }
 0xaca   : > { %s9554_s27 = smov %s6839_s13  ;;  %26 = sbr.rel (!%p24_p4) target bundleno = 13 (0xd), region = 118 }
 0xacf   :  { %4670 = vsyncpa [#allocation3], 1 }
 0xad0   :  { %4672 = vsyncpa [#allocation3 + $0x1], 1 }
 0xad1   :  { %4673 = vsyncpa [#allocation6], 1 }
 0xad2   :  { %4675 = vsyncpa [#allocation6 + $0x1], 1 }
 0xad3   :  { %4676 = vsyncpa [#allocation9], 1 }
 0xad4   :  { %4677 = vsyncpa [#allocation4], 1 }
 0xad5   :  { %4679 = vsyncpa [#allocation4 + $0x1], 1 }

</bundles_post_ra>
